<compile_context>
chip_gen: v5e
topology: v5e:2x2
jax: 0.10.0
libtpu: 0.0.40
codegen_flags: <defaults>
</compile_context>

<pallas_src>
import jax
import jax.numpy as jnp
from jax.experimental import pallas as pl
from jax.experimental.pallas import tpu as pltpu

# ---- static problem sizes (mtl_single(sequence_length=45)) ----
SEQ_LEN = 45
B = 2                      # batch
C_IN = 50                  # conv5 in_channels
C_OUT = 50                 # conv5 out_channels
K = 5                      # conv5 kernel_size
L_IN = SEQ_LEN - 25        # 20: length produced by the shared trunk (forward input)
L_OUT = L_IN - (K - 1)     # 16
FLAT = C_OUT * L_OUT       # 800 = num_of_flattened_neurons
H1 = 1024                  # fc1 out_features
H2 = 1                     # fc2 out_features
WIDE = B * L_IN - (K - 1)  # 36: conv positions when both batches are laid side by side


# -----------------------------------------------------------------------------
# Single fused kernel (grid has one step).
#   x_ref  : (B, C_IN, L_IN) f32        wck_ref: (K, C_IN, C_OUT) f32
#   bc_ref : (1, C_OUT) f32             b1_ref : (1, H1) f32
#   w2_ref : (1, H1) f32                b2_ref : (1, 1) f32
#   w1_hbm : (FLAT, H1) bf16  (HBM, manual DMA)
#   out_ref: (B, 1) f32
#   scratch: w1_vmem (FLAT,H1) bf16, flat_ref (B,FLAT) f32, sem DMA semaphore
# -----------------------------------------------------------------------------
def fused_kernel(x_ref, wck_ref, bc_ref, b1_ref, w2_ref, b2_ref, w1_hbm,
                 out_ref, w1_vmem, flat_ref, sem):
    # 1) kick off the full fc1-weight DMA first; everything up to the fc1 dot
    #    runs while it is in flight.
    cp = pltpu.make_async_copy(w1_hbm, w1_vmem, sem)
    cp.start()

    # 2) conv5 + bias + ReLU in (position, channel) layout.
    #    xcat columns: [batch0 t=0..19 | batch1 t=0..19]; after the transpose the
    #    K taps are plain sublane-shifted slices feeding 5 tiny MXU dots.
    xcat = jnp.concatenate([x_ref[0], x_ref[1]], axis=1)       # (C_IN, B*L_IN)
    xt = jnp.transpose(xcat)                                    # (B*L_IN, C_IN)
    yt = jnp.zeros((WIDE, C_OUT), jnp.float32)
    for k in range(K):                                          # static unroll over taps
        yt = yt + jnp.dot(xt[k:k + WIDE, :], wck_ref[k],
                          preferred_element_type=jnp.float32)   # (WIDE, C_OUT)
    yt = jnp.maximum(yt + bc_ref[...], 0.0)
    # rows b*L_IN + l (l < L_OUT) hold conv output [b, :, l]; rows 16..19 mix the
    # two batches and are never read.  Dropout(p=0.2) is identity in eval mode.

    # 3) flatten into (B, FLAT) with ordering f = l*C_OUT + o.  The fc1 weight
    #    rows were permuted host-side to match, so this ordering is free.
    for b in range(B):
        base = b * L_IN
        for l in range(L_OUT):
            flat_ref[b:b + 1, l * C_OUT:(l + 1) * C_OUT] = \
                yt[base + l:base + l + 1, :]

    # 4) wait for the weight, then fc1 (bf16 MXU dot, f32 accumulate) + ReLU,
    #    and fc2 as a VPU multiply + lane reduction (single output neuron).
    cp.wait()
    flat_bf = flat_ref[...].astype(jnp.bfloat16)
    h = jnp.dot(flat_bf, w1_vmem[...],
                preferred_element_type=jnp.float32)             # (B, H1)
    h = jnp.maximum(h + b1_ref[...], 0.0)
    out_ref[...] = jnp.sum(h * w2_ref[...], axis=1, keepdims=True) + b2_ref[...]


def _fused_forward(x, wck, bc, b1_r, w2_r, b2_r, w1_p):
    return pl.pallas_call(
        fused_kernel,
        out_shape=jax.ShapeDtypeStruct((B, H2), jnp.float32),
        grid_spec=pltpu.PrefetchScalarGridSpec(
            num_scalar_prefetch=0,
            grid=(1,),
            in_specs=[
                pl.BlockSpec((B, C_IN, L_IN), lambda i: (0, 0, 0)),    # x
                pl.BlockSpec((K, C_IN, C_OUT), lambda i: (0, 0, 0)),   # conv weight (k,c,o)
                pl.BlockSpec((1, C_OUT), lambda i: (0, 0)),            # conv bias
                pl.BlockSpec((1, H1), lambda i: (0, 0)),               # fc1 bias
                pl.BlockSpec((1, H1), lambda i: (0, 0)),               # fc2 weight
                pl.BlockSpec((1, 1), lambda i: (0, 0)),                # fc2 bias
                pl.BlockSpec(memory_space=pl.ANY),                     # fc1 weight (HBM, bf16)
            ],
            out_specs=pl.BlockSpec((B, H2), lambda i: (0, 0)),
            scratch_shapes=[
                pltpu.VMEM((FLAT, H1), jnp.bfloat16),   # fc1 weight staging buffer
                pltpu.VMEM((B, FLAT), jnp.float32),     # flattened conv activations
                pltpu.SemaphoreType.DMA,                # weight-copy semaphore
            ],
        ),
        compiler_params=pltpu.CompilerParams(
            dimension_semantics=("arbitrary",)),
    )(x, wck, bc, b1_r, w2_r, b2_r, w1_p)


mtl_single_forward = jax.jit(_fused_forward)


def prepare_params(params):
    """One-time weight re-layout / down-cast, OUTSIDE the per-call jit path."""
    w_conv, b_conv, w1, b1, w2, b2 = params
    # conv weight per tap as (c_in, c_out) so conv dots are plain (M,K)x(K,N)
    wck = jnp.transpose(w_conv, (2, 1, 0))                     # (K, C_IN, C_OUT)
    bc = b_conv.reshape(1, C_OUT)
    # fc1 weight: torch layout (H1, FLAT) with FLAT index o*L_OUT + l.
    # Re-order rows to l*C_OUT + o (what the kernel's flatten produces) and cast
    # to bf16 so the streamed bytes are halved.
    w1_p = jnp.transpose(w1).reshape(C_OUT, L_OUT, H1)         # [o, l, n]
    w1_p = jnp.transpose(w1_p, (1, 0, 2)).reshape(FLAT, H1)    # row = l*C_OUT + o
    w1_p = w1_p.astype(jnp.bfloat16)
    b1_r = b1.reshape(1, H1)
    w2_r = w2.reshape(1, H1)        # fc2.weight is (1, 1024)
    b2_r = b2.reshape(1, H2)
    return tuple(jax.block_until_ready(t)
                 for t in (wck, bc, b1_r, w2_r, b2_r, w1_p))


# pure-JAX reference mirroring the PyTorch forward exactly (f32 weights)
def reference_forward(x, params):
    w_conv, b_conv, w1, b1, w2, b2 = params
    y = jnp.zeros((B, C_OUT, L_OUT), jnp.float32)
    for k in range(K):
        y = y + jnp.einsum('oc,bct->bot', w_conv[:, :, k], x[:, :, k:k + L_OUT])
    y = jax.nn.relu(y + b_conv[None, :, None])
    flat = y.reshape(B, -1)
    h = jax.nn.relu(flat @ w1.T + b1)
    return h @ w2.T + b2


if __name__ == "__main__":
    key = jax.random.PRNGKey(0)
    kx, kwc, kbc, kw1, kb1, kw2, kb2 = jax.random.split(key, 7)

    # deterministic synthetic parameters (PyTorch-convention shapes)
    w_conv = 0.05 * jax.random.normal(kwc, (C_OUT, C_IN, K), jnp.float32)
    b_conv = 0.05 * jax.random.normal(kbc, (C_OUT,), jnp.float32)
    w1 = 0.02 * jax.random.normal(kw1, (H1, FLAT), jnp.float32)   # fc1.weight
    b1 = 0.02 * jax.random.normal(kb1, (H1,), jnp.float32)        # fc1.bias
    w2 = 0.02 * jax.random.normal(kw2, (H2, H1), jnp.float32)     # fc2.weight
    b2 = 0.02 * jax.random.normal(kb2, (H2,), jnp.float32)        # fc2.bias
    params = (w_conv, b_conv, w1, b1, w2, b2)

    # input in NCW layout, as the shared trunk would feed conv5
    x = jax.random.normal(kx, (B, C_IN, L_IN), jnp.float32)

    prepped = prepare_params(params)          # one-time host-side re-layout
    out = jax.block_until_ready(mtl_single_forward(x, *prepped))

    ref = reference_forward(x, params)
    assert out.shape == (B, H2)
    # fc1 weight + fc1 activations are bf16 inside the kernel -> looser tolerance
    assert jnp.allclose(out, ref, rtol=2e-2, atol=2e-2), (out, ref)

    print("KERNEL_OK")
</pallas_src>

<mosaic_0001>
module attributes {stable_mosaic.version = 11 : i64} {
  func.func @fused_kernel(%arg0: i32, %arg1: memref<2x50x20xf32, #tpu.memory_space<vmem>>, %arg2: memref<5x50x50xf32, #tpu.memory_space<vmem>>, %arg3: memref<1x50xf32, #tpu.memory_space<vmem>>, %arg4: memref<1x1024xf32, #tpu.memory_space<vmem>>, %arg5: memref<1x1024xf32, #tpu.memory_space<vmem>>, %arg6: memref<1x1xf32, #tpu.memory_space<vmem>>, %arg7: memref<800x1024xbf16, #tpu.memory_space<any>>, %arg8: memref<2x1xf32, #tpu.memory_space<vmem>>, %arg9: memref<800x1024xbf16, #tpu.memory_space<vmem>>, %arg10: memref<2x800xf32, #tpu.memory_space<vmem>>, %arg11: memref<!tpu.dma_semaphore, #tpu.memory_space<semaphore_mem>>) attributes {dimension_semantics = [#tpu.dimension_semantics<arbitrary>], iteration_bounds = array<i64: 1>, scalar_prefetch = 0 : i64, scratch_operands = 3 : i64, tpu.core_type = #tpu.core_type<tc>, window_params = [{pipeline_mode = #tpu.pipeline_mode<synchronous>, transform_indices = @transform_0, window_bounds = array<i64: 2, 50, 20>}, {pipeline_mode = #tpu.pipeline_mode<synchronous>, transform_indices = @transform_1, window_bounds = array<i64: 5, 50, 50>}, {pipeline_mode = #tpu.pipeline_mode<synchronous>, transform_indices = @transform_2, window_bounds = array<i64: 1, 50>}, {pipeline_mode = #tpu.pipeline_mode<synchronous>, transform_indices = @transform_3, window_bounds = array<i64: 1, 1024>}, {pipeline_mode = #tpu.pipeline_mode<synchronous>, transform_indices = @transform_4, window_bounds = array<i64: 1, 1024>}, {pipeline_mode = #tpu.pipeline_mode<synchronous>, transform_indices = @transform_5, window_bounds = array<i64: 1, 1>}, {}, {pipeline_mode = #tpu.pipeline_mode<synchronous>, transform_indices = @transform_7, window_bounds = array<i64: 2, 1>}]} {
    tpu.enqueue_dma source(%arg7 : memref<800x1024xbf16, #tpu.memory_space<any>>) target(%arg9 : memref<800x1024xbf16, #tpu.memory_space<vmem>>) target_semaphore(%arg11 : memref<!tpu.dma_semaphore, #tpu.memory_space<semaphore_mem>>)
    %c0 = arith.constant 0 : index
    %c0_0 = arith.constant 0 : index
    %c0_1 = arith.constant 0 : index
    %0 = vector.load %arg1[%c0, %c0_0, %c0_1] : memref<2x50x20xf32, #tpu.memory_space<vmem>>, vector<1x50x20xf32>
    %1 = vector.shape_cast %0 : vector<1x50x20xf32> to vector<50x20xf32>
    %c1 = arith.constant 1 : index
    %c0_2 = arith.constant 0 : index
    %c0_3 = arith.constant 0 : index
    %2 = vector.load %arg1[%c1, %c0_2, %c0_3] : memref<2x50x20xf32, #tpu.memory_space<vmem>>, vector<1x50x20xf32>
    %3 = vector.shape_cast %2 : vector<1x50x20xf32> to vector<50x20xf32>
    %4 = tpu.concatenate %1, %3 in 1 : vector<50x20xf32>, vector<50x20xf32> -> vector<50x40xf32>
    %5 = tpu.transpose %4, [1, 0] : vector<50x40xf32> -> vector<40x50xf32>
    %cst = arith.constant 0.000000e+00 : f32
    %6 = vector.broadcast %cst : f32 to vector<36x50xf32>
    %7 = vector.extract_strided_slice %5 {offsets = [0, 0], sizes = [36, 50], strides = [1, 1]} : vector<40x50xf32> to vector<36x50xf32>
    %c0_4 = arith.constant 0 : index
    %c0_5 = arith.constant 0 : index
    %c0_6 = arith.constant 0 : index
    %8 = vector.load %arg2[%c0_4, %c0_5, %c0_6] : memref<5x50x50xf32, #tpu.memory_space<vmem>>, vector<1x50x50xf32>
    %9 = vector.shape_cast %8 : vector<1x50x50xf32> to vector<50x50xf32>
    %cst_7 = arith.constant dense<0.000000e+00> : vector<36x50xf32>
    %10 = tpu.matmul %7, %9, %cst_7 {dimension_numbers = #tpu.dot_dimension_numbers<[1], [0], [0], [1], [0, 0, 1, 1], [], []>} : vector<36x50xf32>, vector<50x50xf32>, vector<36x50xf32> -> vector<36x50xf32>
    %11 = arith.addf %6, %10 : vector<36x50xf32>
    %12 = vector.extract_strided_slice %5 {offsets = [1, 0], sizes = [36, 50], strides = [1, 1]} : vector<40x50xf32> to vector<36x50xf32>
    %c1_8 = arith.constant 1 : index
    %c0_9 = arith.constant 0 : index
    %c0_10 = arith.constant 0 : index
    %13 = vector.load %arg2[%c1_8, %c0_9, %c0_10] : memref<5x50x50xf32, #tpu.memory_space<vmem>>, vector<1x50x50xf32>
    %14 = vector.shape_cast %13 : vector<1x50x50xf32> to vector<50x50xf32>
    %cst_11 = arith.constant dense<0.000000e+00> : vector<36x50xf32>
    %15 = tpu.matmul %12, %14, %cst_11 {dimension_numbers = #tpu.dot_dimension_numbers<[1], [0], [0], [1], [0, 0, 1, 1], [], []>} : vector<36x50xf32>, vector<50x50xf32>, vector<36x50xf32> -> vector<36x50xf32>
    %16 = arith.addf %11, %15 : vector<36x50xf32>
    %17 = vector.extract_strided_slice %5 {offsets = [2, 0], sizes = [36, 50], strides = [1, 1]} : vector<40x50xf32> to vector<36x50xf32>
    %c2 = arith.constant 2 : index
    %c0_12 = arith.constant 0 : index
    %c0_13 = arith.constant 0 : index
    %18 = vector.load %arg2[%c2, %c0_12, %c0_13] : memref<5x50x50xf32, #tpu.memory_space<vmem>>, vector<1x50x50xf32>
    %19 = vector.shape_cast %18 : vector<1x50x50xf32> to vector<50x50xf32>
    %cst_14 = arith.constant dense<0.000000e+00> : vector<36x50xf32>
    %20 = tpu.matmul %17, %19, %cst_14 {dimension_numbers = #tpu.dot_dimension_numbers<[1], [0], [0], [1], [0, 0, 1, 1], [], []>} : vector<36x50xf32>, vector<50x50xf32>, vector<36x50xf32> -> vector<36x50xf32>
    %21 = arith.addf %16, %20 : vector<36x50xf32>
    %22 = vector.extract_strided_slice %5 {offsets = [3, 0], sizes = [36, 50], strides = [1, 1]} : vector<40x50xf32> to vector<36x50xf32>
    %c3 = arith.constant 3 : index
    %c0_15 = arith.constant 0 : index
    %c0_16 = arith.constant 0 : index
    %23 = vector.load %arg2[%c3, %c0_15, %c0_16] : memref<5x50x50xf32, #tpu.memory_space<vmem>>, vector<1x50x50xf32>
    %24 = vector.shape_cast %23 : vector<1x50x50xf32> to vector<50x50xf32>
    %cst_17 = arith.constant dense<0.000000e+00> : vector<36x50xf32>
    %25 = tpu.matmul %22, %24, %cst_17 {dimension_numbers = #tpu.dot_dimension_numbers<[1], [0], [0], [1], [0, 0, 1, 1], [], []>} : vector<36x50xf32>, vector<50x50xf32>, vector<36x50xf32> -> vector<36x50xf32>
    %26 = arith.addf %21, %25 : vector<36x50xf32>
    %27 = vector.extract_strided_slice %5 {offsets = [4, 0], sizes = [36, 50], strides = [1, 1]} : vector<40x50xf32> to vector<36x50xf32>
    %c4 = arith.constant 4 : index
    %c0_18 = arith.constant 0 : index
    %c0_19 = arith.constant 0 : index
    %28 = vector.load %arg2[%c4, %c0_18, %c0_19] : memref<5x50x50xf32, #tpu.memory_space<vmem>>, vector<1x50x50xf32>
    %29 = vector.shape_cast %28 : vector<1x50x50xf32> to vector<50x50xf32>
    %cst_20 = arith.constant dense<0.000000e+00> : vector<36x50xf32>
    %30 = tpu.matmul %27, %29, %cst_20 {dimension_numbers = #tpu.dot_dimension_numbers<[1], [0], [0], [1], [0, 0, 1, 1], [], []>} : vector<36x50xf32>, vector<50x50xf32>, vector<36x50xf32> -> vector<36x50xf32>
    %31 = arith.addf %26, %30 : vector<36x50xf32>
    %c0_21 = arith.constant 0 : index
    %c0_22 = arith.constant 0 : index
    %32 = vector.load %arg3[%c0_21, %c0_22] : memref<1x50xf32, #tpu.memory_space<vmem>>, vector<1x50xf32>
    %33 = vector.broadcast %32 : vector<1x50xf32> to vector<36x50xf32>
    %34 = arith.addf %31, %33 : vector<36x50xf32>
    %cst_23 = arith.constant 0.000000e+00 : f32
    %35 = vector.broadcast %cst_23 : f32 to vector<36x50xf32>
    %36 = arith.maximumf %34, %35 : vector<36x50xf32>
    %37 = vector.extract_strided_slice %36 {offsets = [0, 0], sizes = [1, 50], strides = [1, 1]} : vector<36x50xf32> to vector<1x50xf32>
    %c0_24 = arith.constant 0 : index
    %c0_25 = arith.constant 0 : index
    %38 = vector.load %arg10[%c0_24, %c0_25] : memref<2x800xf32, #tpu.memory_space<vmem>>, vector<1x50xf32>
    tpu.vector_store %arg10[%c0_24, %c0_25], %37 {strides = array<i32>} : memref<2x800xf32, #tpu.memory_space<vmem>>, vector<1x50xf32>,
    %39 = vector.extract_strided_slice %36 {offsets = [1, 0], sizes = [1, 50], strides = [1, 1]} : vector<36x50xf32> to vector<1x50xf32>
    %c0_26 = arith.constant 0 : index
    %c50 = arith.constant 50 : index
    %40 = vector.load %arg10[%c0_26, %c50] : memref<2x800xf32, #tpu.memory_space<vmem>>, vector<1x50xf32>
    tpu.vector_store %arg10[%c0_26, %c50], %39 {strides = array<i32>} : memref<2x800xf32, #tpu.memory_space<vmem>>, vector<1x50xf32>,
    %41 = vector.extract_strided_slice %36 {offsets = [2, 0], sizes = [1, 50], strides = [1, 1]} : vector<36x50xf32> to vector<1x50xf32>
    %c0_27 = arith.constant 0 : index
    %c100 = arith.constant 100 : index
    %42 = vector.load %arg10[%c0_27, %c100] : memref<2x800xf32, #tpu.memory_space<vmem>>, vector<1x50xf32>
    tpu.vector_store %arg10[%c0_27, %c100], %41 {strides = array<i32>} : memref<2x800xf32, #tpu.memory_space<vmem>>, vector<1x50xf32>,
    %43 = vector.extract_strided_slice %36 {offsets = [3, 0], sizes = [1, 50], strides = [1, 1]} : vector<36x50xf32> to vector<1x50xf32>
    %c0_28 = arith.constant 0 : index
    %c150 = arith.constant 150 : index
    %44 = vector.load %arg10[%c0_28, %c150] : memref<2x800xf32, #tpu.memory_space<vmem>>, vector<1x50xf32>
    tpu.vector_store %arg10[%c0_28, %c150], %43 {strides = array<i32>} : memref<2x800xf32, #tpu.memory_space<vmem>>, vector<1x50xf32>,
    %45 = vector.extract_strided_slice %36 {offsets = [4, 0], sizes = [1, 50], strides = [1, 1]} : vector<36x50xf32> to vector<1x50xf32>
    %c0_29 = arith.constant 0 : index
    %c200 = arith.constant 200 : index
    %46 = vector.load %arg10[%c0_29, %c200] : memref<2x800xf32, #tpu.memory_space<vmem>>, vector<1x50xf32>
    tpu.vector_store %arg10[%c0_29, %c200], %45 {strides = array<i32>} : memref<2x800xf32, #tpu.memory_space<vmem>>, vector<1x50xf32>,
    %47 = vector.extract_strided_slice %36 {offsets = [5, 0], sizes = [1, 50], strides = [1, 1]} : vector<36x50xf32> to vector<1x50xf32>
    %c0_30 = arith.constant 0 : index
    %c250 = arith.constant 250 : index
    %48 = vector.load %arg10[%c0_30, %c250] : memref<2x800xf32, #tpu.memory_space<vmem>>, vector<1x50xf32>
    tpu.vector_store %arg10[%c0_30, %c250], %47 {strides = array<i32>} : memref<2x800xf32, #tpu.memory_space<vmem>>, vector<1x50xf32>,
    %49 = vector.extract_strided_slice %36 {offsets = [6, 0], sizes = [1, 50], strides = [1, 1]} : vector<36x50xf32> to vector<1x50xf32>
    %c0_31 = arith.constant 0 : index
    %c300 = arith.constant 300 : index
    %50 = vector.load %arg10[%c0_31, %c300] : memref<2x800xf32, #tpu.memory_space<vmem>>, vector<1x50xf32>
    tpu.vector_store %arg10[%c0_31, %c300], %49 {strides = array<i32>} : memref<2x800xf32, #tpu.memory_space<vmem>>, vector<1x50xf32>,
    %51 = vector.extract_strided_slice %36 {offsets = [7, 0], sizes = [1, 50], strides = [1, 1]} : vector<36x50xf32> to vector<1x50xf32>
    %c0_32 = arith.constant 0 : index
    %c350 = arith.constant 350 : index
    %52 = vector.load %arg10[%c0_32, %c350] : memref<2x800xf32, #tpu.memory_space<vmem>>, vector<1x50xf32>
    tpu.vector_store %arg10[%c0_32, %c350], %51 {strides = array<i32>} : memref<2x800xf32, #tpu.memory_space<vmem>>, vector<1x50xf32>,
    %53 = vector.extract_strided_slice %36 {offsets = [8, 0], sizes = [1, 50], strides = [1, 1]} : vector<36x50xf32> to vector<1x50xf32>
    %c0_33 = arith.constant 0 : index
    %c400 = arith.constant 400 : index
    %54 = vector.load %arg10[%c0_33, %c400] : memref<2x800xf32, #tpu.memory_space<vmem>>, vector<1x50xf32>
    tpu.vector_store %arg10[%c0_33, %c400], %53 {strides = array<i32>} : memref<2x800xf32, #tpu.memory_space<vmem>>, vector<1x50xf32>,
    %55 = vector.extract_strided_slice %36 {offsets = [9, 0], sizes = [1, 50], strides = [1, 1]} : vector<36x50xf32> to vector<1x50xf32>
    %c0_34 = arith.constant 0 : index
    %c450 = arith.constant 450 : index
    %56 = vector.load %arg10[%c0_34, %c450] : memref<2x800xf32, #tpu.memory_space<vmem>>, vector<1x50xf32>
    tpu.vector_store %arg10[%c0_34, %c450], %55 {strides = array<i32>} : memref<2x800xf32, #tpu.memory_space<vmem>>, vector<1x50xf32>,
    %57 = vector.extract_strided_slice %36 {offsets = [10, 0], sizes = [1, 50], strides = [1, 1]} : vector<36x50xf32> to vector<1x50xf32>
    %c0_35 = arith.constant 0 : index
    %c500 = arith.constant 500 : index
    %58 = vector.load %arg10[%c0_35, %c500] : memref<2x800xf32, #tpu.memory_space<vmem>>, vector<1x50xf32>
    tpu.vector_store %arg10[%c0_35, %c500], %57 {strides = array<i32>} : memref<2x800xf32, #tpu.memory_space<vmem>>, vector<1x50xf32>,
    %59 = vector.extract_strided_slice %36 {offsets = [11, 0], sizes = [1, 50], strides = [1, 1]} : vector<36x50xf32> to vector<1x50xf32>
    %c0_36 = arith.constant 0 : index
    %c550 = arith.constant 550 : index
    %60 = vector.load %arg10[%c0_36, %c550] : memref<2x800xf32, #tpu.memory_space<vmem>>, vector<1x50xf32>
    tpu.vector_store %arg10[%c0_36, %c550], %59 {strides = array<i32>} : memref<2x800xf32, #tpu.memory_space<vmem>>, vector<1x50xf32>,
    %61 = vector.extract_strided_slice %36 {offsets = [12, 0], sizes = [1, 50], strides = [1, 1]} : vector<36x50xf32> to vector<1x50xf32>
    %c0_37 = arith.constant 0 : index
    %c600 = arith.constant 600 : index
    %62 = vector.load %arg10[%c0_37, %c600] : memref<2x800xf32, #tpu.memory_space<vmem>>, vector<1x50xf32>
    tpu.vector_store %arg10[%c0_37, %c600], %61 {strides = array<i32>} : memref<2x800xf32, #tpu.memory_space<vmem>>, vector<1x50xf32>,
    %63 = vector.extract_strided_slice %36 {offsets = [13, 0], sizes = [1, 50], strides = [1, 1]} : vector<36x50xf32> to vector<1x50xf32>
    %c0_38 = arith.constant 0 : index
    %c650 = arith.constant 650 : index
    %64 = vector.load %arg10[%c0_38, %c650] : memref<2x800xf32, #tpu.memory_space<vmem>>, vector<1x50xf32>
    tpu.vector_store %arg10[%c0_38, %c650], %63 {strides = array<i32>} : memref<2x800xf32, #tpu.memory_space<vmem>>, vector<1x50xf32>,
    %65 = vector.extract_strided_slice %36 {offsets = [14, 0], sizes = [1, 50], strides = [1, 1]} : vector<36x50xf32> to vector<1x50xf32>
    %c0_39 = arith.constant 0 : index
    %c700 = arith.constant 700 : index
    %66 = vector.load %arg10[%c0_39, %c700] : memref<2x800xf32, #tpu.memory_space<vmem>>, vector<1x50xf32>
    tpu.vector_store %arg10[%c0_39, %c700], %65 {strides = array<i32>} : memref<2x800xf32, #tpu.memory_space<vmem>>, vector<1x50xf32>,
    %67 = vector.extract_strided_slice %36 {offsets = [15, 0], sizes = [1, 50], strides = [1, 1]} : vector<36x50xf32> to vector<1x50xf32>
    %c0_40 = arith.constant 0 : index
    %c750 = arith.constant 750 : index
    %68 = vector.load %arg10[%c0_40, %c750] : memref<2x800xf32, #tpu.memory_space<vmem>>, vector<1x50xf32>
    tpu.vector_store %arg10[%c0_40, %c750], %67 {strides = array<i32>} : memref<2x800xf32, #tpu.memory_space<vmem>>, vector<1x50xf32>,
    %69 = vector.extract_strided_slice %36 {offsets = [20, 0], sizes = [1, 50], strides = [1, 1]} : vector<36x50xf32> to vector<1x50xf32>
    %c1_41 = arith.constant 1 : index
    %c0_42 = arith.constant 0 : index
    %70 = vector.load %arg10[%c1_41, %c0_42] : memref<2x800xf32, #tpu.memory_space<vmem>>, vector<1x50xf32>
    tpu.vector_store %arg10[%c1_41, %c0_42], %69 {strides = array<i32>} : memref<2x800xf32, #tpu.memory_space<vmem>>, vector<1x50xf32>,
    %71 = vector.extract_strided_slice %36 {offsets = [21, 0], sizes = [1, 50], strides = [1, 1]} : vector<36x50xf32> to vector<1x50xf32>
    %c1_43 = arith.constant 1 : index
    %c50_44 = arith.constant 50 : index
    %72 = vector.load %arg10[%c1_43, %c50_44] : memref<2x800xf32, #tpu.memory_space<vmem>>, vector<1x50xf32>
    tpu.vector_store %arg10[%c1_43, %c50_44], %71 {strides = array<i32>} : memref<2x800xf32, #tpu.memory_space<vmem>>, vector<1x50xf32>,
    %73 = vector.extract_strided_slice %36 {offsets = [22, 0], sizes = [1, 50], strides = [1, 1]} : vector<36x50xf32> to vector<1x50xf32>
    %c1_45 = arith.constant 1 : index
    %c100_46 = arith.constant 100 : index
    %74 = vector.load %arg10[%c1_45, %c100_46] : memref<2x800xf32, #tpu.memory_space<vmem>>, vector<1x50xf32>
    tpu.vector_store %arg10[%c1_45, %c100_46], %73 {strides = array<i32>} : memref<2x800xf32, #tpu.memory_space<vmem>>, vector<1x50xf32>,
    %75 = vector.extract_strided_slice %36 {offsets = [23, 0], sizes = [1, 50], strides = [1, 1]} : vector<36x50xf32> to vector<1x50xf32>
    %c1_47 = arith.constant 1 : index
    %c150_48 = arith.constant 150 : index
    %76 = vector.load %arg10[%c1_47, %c150_48] : memref<2x800xf32, #tpu.memory_space<vmem>>, vector<1x50xf32>
    tpu.vector_store %arg10[%c1_47, %c150_48], %75 {strides = array<i32>} : memref<2x800xf32, #tpu.memory_space<vmem>>, vector<1x50xf32>,
    %77 = vector.extract_strided_slice %36 {offsets = [24, 0], sizes = [1, 50], strides = [1, 1]} : vector<36x50xf32> to vector<1x50xf32>
    %c1_49 = arith.constant 1 : index
    %c200_50 = arith.constant 200 : index
    %78 = vector.load %arg10[%c1_49, %c200_50] : memref<2x800xf32, #tpu.memory_space<vmem>>, vector<1x50xf32>
    tpu.vector_store %arg10[%c1_49, %c200_50], %77 {strides = array<i32>} : memref<2x800xf32, #tpu.memory_space<vmem>>, vector<1x50xf32>,
    %79 = vector.extract_strided_slice %36 {offsets = [25, 0], sizes = [1, 50], strides = [1, 1]} : vector<36x50xf32> to vector<1x50xf32>
    %c1_51 = arith.constant 1 : index
    %c250_52 = arith.constant 250 : index
    %80 = vector.load %arg10[%c1_51, %c250_52] : memref<2x800xf32, #tpu.memory_space<vmem>>, vector<1x50xf32>
    tpu.vector_store %arg10[%c1_51, %c250_52], %79 {strides = array<i32>} : memref<2x800xf32, #tpu.memory_space<vmem>>, vector<1x50xf32>,
    %81 = vector.extract_strided_slice %36 {offsets = [26, 0], sizes = [1, 50], strides = [1, 1]} : vector<36x50xf32> to vector<1x50xf32>
    %c1_53 = arith.constant 1 : index
    %c300_54 = arith.constant 300 : index
    %82 = vector.load %arg10[%c1_53, %c300_54] : memref<2x800xf32, #tpu.memory_space<vmem>>, vector<1x50xf32>
    tpu.vector_store %arg10[%c1_53, %c300_54], %81 {strides = array<i32>} : memref<2x800xf32, #tpu.memory_space<vmem>>, vector<1x50xf32>,
    %83 = vector.extract_strided_slice %36 {offsets = [27, 0], sizes = [1, 50], strides = [1, 1]} : vector<36x50xf32> to vector<1x50xf32>
    %c1_55 = arith.constant 1 : index
    %c350_56 = arith.constant 350 : index
    %84 = vector.load %arg10[%c1_55, %c350_56] : memref<2x800xf32, #tpu.memory_space<vmem>>, vector<1x50xf32>
    tpu.vector_store %arg10[%c1_55, %c350_56], %83 {strides = array<i32>} : memref<2x800xf32, #tpu.memory_space<vmem>>, vector<1x50xf32>,
    %85 = vector.extract_strided_slice %36 {offsets = [28, 0], sizes = [1, 50], strides = [1, 1]} : vector<36x50xf32> to vector<1x50xf32>
    %c1_57 = arith.constant 1 : index
    %c400_58 = arith.constant 400 : index
    %86 = vector.load %arg10[%c1_57, %c400_58] : memref<2x800xf32, #tpu.memory_space<vmem>>, vector<1x50xf32>
    tpu.vector_store %arg10[%c1_57, %c400_58], %85 {strides = array<i32>} : memref<2x800xf32, #tpu.memory_space<vmem>>, vector<1x50xf32>,
    %87 = vector.extract_strided_slice %36 {offsets = [29, 0], sizes = [1, 50], strides = [1, 1]} : vector<36x50xf32> to vector<1x50xf32>
    %c1_59 = arith.constant 1 : index
    %c450_60 = arith.constant 450 : index
    %88 = vector.load %arg10[%c1_59, %c450_60] : memref<2x800xf32, #tpu.memory_space<vmem>>, vector<1x50xf32>
    tpu.vector_store %arg10[%c1_59, %c450_60], %87 {strides = array<i32>} : memref<2x800xf32, #tpu.memory_space<vmem>>, vector<1x50xf32>,
    %89 = vector.extract_strided_slice %36 {offsets = [30, 0], sizes = [1, 50], strides = [1, 1]} : vector<36x50xf32> to vector<1x50xf32>
    %c1_61 = arith.constant 1 : index
    %c500_62 = arith.constant 500 : index
    %90 = vector.load %arg10[%c1_61, %c500_62] : memref<2x800xf32, #tpu.memory_space<vmem>>, vector<1x50xf32>
    tpu.vector_store %arg10[%c1_61, %c500_62], %89 {strides = array<i32>} : memref<2x800xf32, #tpu.memory_space<vmem>>, vector<1x50xf32>,
    %91 = vector.extract_strided_slice %36 {offsets = [31, 0], sizes = [1, 50], strides = [1, 1]} : vector<36x50xf32> to vector<1x50xf32>
    %c1_63 = arith.constant 1 : index
    %c550_64 = arith.constant 550 : index
    %92 = vector.load %arg10[%c1_63, %c550_64] : memref<2x800xf32, #tpu.memory_space<vmem>>, vector<1x50xf32>
    tpu.vector_store %arg10[%c1_63, %c550_64], %91 {strides = array<i32>} : memref<2x800xf32, #tpu.memory_space<vmem>>, vector<1x50xf32>,
    %93 = vector.extract_strided_slice %36 {offsets = [32, 0], sizes = [1, 50], strides = [1, 1]} : vector<36x50xf32> to vector<1x50xf32>
    %c1_65 = arith.constant 1 : index
    %c600_66 = arith.constant 600 : index
    %94 = vector.load %arg10[%c1_65, %c600_66] : memref<2x800xf32, #tpu.memory_space<vmem>>, vector<1x50xf32>
    tpu.vector_store %arg10[%c1_65, %c600_66], %93 {strides = array<i32>} : memref<2x800xf32, #tpu.memory_space<vmem>>, vector<1x50xf32>,
    %95 = vector.extract_strided_slice %36 {offsets = [33, 0], sizes = [1, 50], strides = [1, 1]} : vector<36x50xf32> to vector<1x50xf32>
    %c1_67 = arith.constant 1 : index
    %c650_68 = arith.constant 650 : index
    %96 = vector.load %arg10[%c1_67, %c650_68] : memref<2x800xf32, #tpu.memory_space<vmem>>, vector<1x50xf32>
    tpu.vector_store %arg10[%c1_67, %c650_68], %95 {strides = array<i32>} : memref<2x800xf32, #tpu.memory_space<vmem>>, vector<1x50xf32>,
    %97 = vector.extract_strided_slice %36 {offsets = [34, 0], sizes = [1, 50], strides = [1, 1]} : vector<36x50xf32> to vector<1x50xf32>
    %c1_69 = arith.constant 1 : index
    %c700_70 = arith.constant 700 : index
    %98 = vector.load %arg10[%c1_69, %c700_70] : memref<2x800xf32, #tpu.memory_space<vmem>>, vector<1x50xf32>
    tpu.vector_store %arg10[%c1_69, %c700_70], %97 {strides = array<i32>} : memref<2x800xf32, #tpu.memory_space<vmem>>, vector<1x50xf32>,
    %99 = vector.extract_strided_slice %36 {offsets = [35, 0], sizes = [1, 50], strides = [1, 1]} : vector<36x50xf32> to vector<1x50xf32>
    %c1_71 = arith.constant 1 : index
    %c750_72 = arith.constant 750 : index
    %100 = vector.load %arg10[%c1_71, %c750_72] : memref<2x800xf32, #tpu.memory_space<vmem>>, vector<1x50xf32>
    tpu.vector_store %arg10[%c1_71, %c750_72], %99 {strides = array<i32>} : memref<2x800xf32, #tpu.memory_space<vmem>>, vector<1x50xf32>,
    tpu.wait_dma2 semaphore(%arg11 : memref<!tpu.dma_semaphore, #tpu.memory_space<semaphore_mem>>) src(%arg7 : memref<800x1024xbf16, #tpu.memory_space<any>>) dst(%arg9 : memref<800x1024xbf16, #tpu.memory_space<vmem>>)
    %c0_73 = arith.constant 0 : index
    %c0_74 = arith.constant 0 : index
    %101 = vector.load %arg10[%c0_73, %c0_74] : memref<2x800xf32, #tpu.memory_space<vmem>>, vector<2x800xf32>
    %102 = arith.truncf %101 : vector<2x800xf32> to vector<2x800xbf16>
    %c0_75 = arith.constant 0 : index
    %c0_76 = arith.constant 0 : index
    %103 = vector.load %arg9[%c0_75, %c0_76] : memref<800x1024xbf16, #tpu.memory_space<vmem>>, vector<800x1024xbf16>
    %cst_77 = arith.constant dense<0.000000e+00> : vector<2x1024xf32>
    %104 = tpu.matmul %102, %103, %cst_77 {dimension_numbers = #tpu.dot_dimension_numbers<[1], [0], [0], [1], [0, 0, 1, 1], [], []>} : vector<2x800xbf16>, vector<800x1024xbf16>, vector<2x1024xf32> -> vector<2x1024xf32>
    %c0_78 = arith.constant 0 : index
    %c0_79 = arith.constant 0 : index
    %105 = vector.load %arg4[%c0_78, %c0_79] : memref<1x1024xf32, #tpu.memory_space<vmem>>, vector<1x1024xf32>
    %106 = vector.broadcast %105 : vector<1x1024xf32> to vector<2x1024xf32>
    %107 = arith.addf %104, %106 : vector<2x1024xf32>
    %cst_80 = arith.constant 0.000000e+00 : f32
    %108 = vector.broadcast %cst_80 : f32 to vector<2x1024xf32>
    %109 = arith.maximumf %107, %108 : vector<2x1024xf32>
    %c0_81 = arith.constant 0 : index
    %c0_82 = arith.constant 0 : index
    %110 = vector.load %arg5[%c0_81, %c0_82] : memref<1x1024xf32, #tpu.memory_space<vmem>>, vector<1x1024xf32>
    %111 = vector.broadcast %110 : vector<1x1024xf32> to vector<2x1024xf32>
    %112 = arith.mulf %109, %111 : vector<2x1024xf32>
    %cst_83 = arith.constant dense<0.000000e+00> : vector<2xf32>
    %113 = vector.multi_reduction <add>, %112, %cst_83 [1] : vector<2x1024xf32> to vector<2xf32>
    %114 = vector.shape_cast %113 : vector<2xf32> to vector<2x1xf32>
    %c0_84 = arith.constant 0 : index
    %c0_85 = arith.constant 0 : index
    %115 = vector.load %arg6[%c0_84, %c0_85] : memref<1x1xf32, #tpu.memory_space<vmem>>, vector<1x1xf32>
    %116 = vector.broadcast %115 : vector<1x1xf32> to vector<2x1xf32>
    %117 = arith.addf %114, %116 : vector<2x1xf32>
    %c0_86 = arith.constant 0 : index
    %c0_87 = arith.constant 0 : index
    %118 = vector.load %arg8[%c0_86, %c0_87] : memref<2x1xf32, #tpu.memory_space<vmem>>, vector<2x1xf32>
    tpu.vector_store %arg8[%c0_86, %c0_87], %117 {strides = array<i32>} : memref<2x1xf32, #tpu.memory_space<vmem>>, vector<2x1xf32>,
    return
  }
  func.func @transform_0(%arg0: i32) -> (i32, i32, i32) {
    %c0_i32 = arith.constant 0 : i32
    %c0_i32_0 = arith.constant 0 : i32
    %c0_i32_1 = arith.constant 0 : i32
    %c0_i32_2 = arith.constant 0 : i32
    return %c0_i32, %c0_i32_0, %c0_i32_1 : i32, i32, i32
  }
  func.func @transform_1(%arg0: i32) -> (i32, i32, i32) {
    %c0_i32 = arith.constant 0 : i32
    %c0_i32_0 = arith.constant 0 : i32
    %c0_i32_1 = arith.constant 0 : i32
    %c0_i32_2 = arith.constant 0 : i32
    return %c0_i32, %c0_i32_0, %c0_i32_1 : i32, i32, i32
  }
  func.func @transform_2(%arg0: i32) -> (i32, i32) {
    %c0_i32 = arith.constant 0 : i32
    %c0_i32_0 = arith.constant 0 : i32
    %c0_i32_1 = arith.constant 0 : i32
    return %c0_i32, %c0_i32_0 : i32, i32
  }
  func.func @transform_3(%arg0: i32) -> (i32, i32) {
    %c0_i32 = arith.constant 0 : i32
    %c0_i32_0 = arith.constant 0 : i32
    %c0_i32_1 = arith.constant 0 : i32
    return %c0_i32, %c0_i32_0 : i32, i32
  }
  func.func @transform_4(%arg0: i32) -> (i32, i32) {
    %c0_i32 = arith.constant 0 : i32
    %c0_i32_0 = arith.constant 0 : i32
    %c0_i32_1 = arith.constant 0 : i32
    return %c0_i32, %c0_i32_0 : i32, i32
  }
  func.func @transform_5(%arg0: i32) -> (i32, i32) {
    %c0_i32 = arith.constant 0 : i32
    %c0_i32_0 = arith.constant 0 : i32
    %c0_i32_1 = arith.constant 0 : i32
    return %c0_i32, %c0_i32_0 : i32, i32
  }
  func.func @transform_7(%arg0: i32) -> (i32, i32) {
    %c0_i32 = arith.constant 0 : i32
    %c0_i32_0 = arith.constant 0 : i32
    %c0_i32_1 = arith.constant 0 : i32
    return %c0_i32, %c0_i32_0 : i32, i32
  }
}

</mosaic_0001>

<bundles_post_ra>
// kernel: _fused_forward.1
= control target key start
LH: loop header
LB: loop body
LE: loop exit
PB: predicated region body
PF: predicated region fallthrough
CT: control target
= control target key end

     0   :  { %s6795_s0 = inlined_call_operand.vmem [shape: f32[2,50,20], index: 0, kind: input, shape index: {}]   ;;  %s6796_s1 = inlined_call_operand.hbm [shape: f32[5,50,50], index: 1, kind: input, shape index: {}]   ;;  %s6797_s2 = inlined_call_operand.hbm [shape: f32[1,50], index: 2, kind: input, shape index: {}]   ;;  %s6798_s3 = inlined_call_operand.hbm [shape: f32[1,1024], index: 3, kind: input, shape index: {}]   ;;  %s6799_s4 = inlined_call_operand.hbm [shape: f32[1,1024], index: 4, kind: input, shape index: {}]   ;;  %s6800_s5 = inlined_call_operand.<no memory space> [shape: f32[1,1], index: 5, kind: input, shape index: {}]   ;;  %s6801_s6 = inlined_call_operand.hbm [shape: bf16[800,1024], index: 6, kind: input, shape index: {}]   ;;  %s6802_s7 = inlined_call_operand.vmem [shape: f32[2,1], index: 7, kind: output, shape index: {}]  }
   0x1   :  { %v12_v0 = vstv %s6800_s5 }
   0x2   :  { %13 = vst [vmem:[#allocation5] sm:$0x1] %v12_v0 }
   0x3   :  { %14 = vsyncpa [#allocation7], 0 }
   0x4   :  { %15 = vsyncpa [#allocation9], 0  ;;  %s37_s28 = sshll.u32 %s6797_s2, 4  ;;  %s38_s28 = int_to_ptr.hbm [resolvable:$true] %s37_s28 }
   0x5   :  { %16 = vsyncpa [#allocation12], 0  ;;  %s6288_s29 = smov [#allocation8]   ;;  %s23_s10 = sshll.u32 %s6796_s1, 4  ;;  %s24_s10 = int_to_ptr.hbm [resolvable:$true] %s23_s10 }
   0x6   :  { %s39_s30 = sshll.u32 %s6288_s29, 4  ;;  %s6289_s11 = smov [#allocation6]   ;;  %s40_s30 = int_to_ptr.vmem [resolvable:$true] %s39_s30 }
   0x7   :  { %42 = dma.hbm_to_vmem [thread:$0]  %s38_s28, 16, %s40_s30, [#allocation9]  }
   0x8   :  { %s25_s5 = sshll.u32 %s6289_s11, 4  ;;  %s6290_s12 = smov 128   ;;  %s26_s5 = int_to_ptr.vmem [resolvable:$true] %s25_s5 }
   0x9   :  { %s6291_s13 = smov 8   ;;  %s48_s2 = sshll.u32 %s6798_s3, 4  ;;  %s49_s2 = int_to_ptr.hbm [resolvable:$true] %s48_s2 }
   0xa   :  { %31 = dma.hbm_to_vmem [thread:$0]  %s24_s10, 4480, %s26_s5, [#allocation7], %s6290_s12, %s6290_s12, %s6291_s13  }
   0xb   :  { %s6292_s16 = smov [#allocation10]   ;;  %s59_s1 = sshll.u32 %s6799_s4, 4  ;;  %s60_s1 = int_to_ptr.hbm [resolvable:$true] %s59_s1 }
   0xc   :  { %s50_s17 = sshll.u32 %s6292_s16, 4  ;;  %s6293_s20 = smov [#allocation11]   ;;  %s51_s17 = int_to_ptr.vmem [resolvable:$true] %s50_s17 }
   0xd   :  { %53 = dma.hbm_to_vmem [thread:$0]  %s49_s2, 128, %s51_s17, [#allocation9]  }
   0xe   :  { %s61_s21 = sshll.u32 %s6293_s20, 4  ;;  %s62_s21 = int_to_ptr.vmem [resolvable:$true] %s61_s21 }
   0xf   :  { %64 = dma.hbm_to_vmem [thread:$0]  %s60_s1, 128, %s62_s21, [#allocation12]  }
  0x10   :  { %6280 = dma.done.wait [#allocation7], 4480  }
  0x11   :  { %6281 = vsyncadd [#allocation7], 4294962816 }
  0x12   :  { %6282 = dma.done.wait [#allocation9], 144  }
  0x13   :  { %6283 = vsyncadd [#allocation9], 4294967152 }
  0x14   :  { %6284 = dma.done.wait [#allocation12], 128  }
  0x15   :  { %6285 = vsyncadd [#allocation12], 4294967168  ;;  %v4063_v1 = vld [vmem:[%s6795_s0 + $0x38] sm:$0xff]  ;;  %v4065_v2 = vld [vmem:[%s6795_s0 + $0x48] sm:$0xff]  ;;  %s6294_s4 = smov 20   ;;  %vm140_vm0 = vcmask 162816  }
  0x16   :  { %119 = vrot.lane.b32.xlu0 %v4063_v1, %s6294_s4  ;;  %123 = vrot.lane.b32.xlu1 %v4065_v2, %s6294_s4  ;;  %v4067_v3 = vld [vmem:[%s6795_s0 + $0x58] sm:$0xff]  ;;  %v4064_v4 = vld [vmem:[%s6795_s0 + $0x40] sm:$0xff]  ;;  %vm6803_vm1 = vcmask 1041408   ;;  %v377_v21 = vld [vmem:[#allocation6 + $0xd8] sm:$0x3]  ;;  %vm210_vm2 = vcmask 408576  }
  0x17   :  { %127 = vrot.lane.b32.xlu2 %v4067_v3, %s6294_s4  ;;  %v4066_v5 = vld [vmem:[%s6795_s0 + $0x50] sm:$0xff]  ;;  %v4068_v6 = vld [vmem:[%s6795_s0 + $0x60] sm:$0xff]  ;;  %v4069_v7 = vld [vmem:[%s6795_s0 + $0x68] sm:$0x3]  ;;  %4088 = vmatpush.msk.msra.mxu3 %vm6803_vm1, %v377_v21  ;;  %vm200_vm3 = vcmask 1046528   ;;  %vm310_vm4 = vcmask 1045504  }
  0x18   :  { %v97_v8 = vld [vmem:[%s6795_s0] sm:$0xff]  ;;  %v98_v11 = vld [vmem:[%s6795_s0 + $0x8] sm:$0xff]  ;;  %v99_v15 = vld [vmem:[%s6795_s0 + $0x10] sm:$0xff]  ;;  %vm378_vm5 = vcmask 1044480   ;;  %vm446_vm6 = vcmask 1043456   ;;  %vm520_vm7 = vcmask 401408  }
  0x19   :  { %v6399_v17 = vld [vmem:[#allocation6 + $0x30] sm:$0x3]  ;;  %v6401_v18 = vld [vmem:[#allocation6 + $0x28] sm:$0xff]  ;;  %v309_v20 = vld [vmem:[#allocation6 + $0xa0] sm:$0x3]  ;;  %s6296_s22 = smov 100  }
  0x1a   :  { %6125 = vmatpush.msk.msra.mxu1 %vm6803_vm1, %v6399_v17  ;;  %v194_v19 = vld [vmem:[#allocation6 + $0x68] sm:$0x3]  ;;  %4082 = vmatpush.msk.msra.mxu2 %vm6803_vm1, %v309_v20  ;;  %v6410_v24 = vld [vmem:[#allocation6 + $0x20] sm:$0xff]  ;;  %v102_v30 = vld [vmem:[%s6795_s0 + $0x28] sm:$0xff]  ;;  %s6297_s23 = smov 66   ;;  %s6298_s24 = smov 16  }
  0x1b   :  { %v100_v23 = vld [vmem:[%s6795_s0 + $0x18] sm:$0xff]  ;;  %4070 = vmatpush.msk.msra.mxu0 %vm6803_vm1, %v194_v19  ;;  %v101_v27 = vld [vmem:[%s6795_s0 + $0x20] sm:$0xff]  ;;  %v103_v33 = vld [vmem:[%s6795_s0 + $0x30] sm:$0x3]  ;;  %s6295_s0 = smov 50   ;;  %s6300_s25 = smov 72  }
  0x1c   :  { %6126 = vmatpush.msra.mxu1 %v6401_v18  ;;  %v193_v35 = vld [vmem:[#allocation6 + $0x60] sm:$0xff]  ;;  %v308_v36 = vld [vmem:[#allocation6 + $0x98] sm:$0xff]  ;;  %v376_v37 = vld [vmem:[#allocation6 + $0xd0] sm:$0xff]  ;;  %s6301_s26 = smov 122   ;;  %s6302_s27 = smov 44   ;;  %vm528_vm8 = vcmask 811408  }
  0x1d   :  { %235 = vmatpush.msra.mxu0 %v193_v35  ;;  %343 = vmatpush.msra.mxu2 %v308_v36  ;;  %v183_v38 = vld [vmem:[#allocation6 + $0x18] sm:$0xff]  ;;  %v307_v40 = vld [vmem:[#allocation6 + $0x90] sm:$0xff]  ;;  %v375_v41 = vld [vmem:[#allocation6 + $0xc8] sm:$0xff]  ;;  %s6303_s28 = smov 88   ;;  %s6304_s29 = smov 116   ;;  %vm539_vm9 = vcmask 1041184  }
  0x1e   :  { %121 = vrot.lane.b32.xlu0 %v4064_v4, %s6294_s4  ;;  %125 = vrot.lane.b32.xlu1 %v4066_v5, %s6294_s4  ;;  %v192_v39 = vld [vmem:[#allocation6 + $0x58] sm:$0xff]  ;;  %v182_v42 = vld [vmem:[#allocation6 + $0x10] sm:$0xff]  ;;  %v306_v44 = vld [vmem:[#allocation6 + $0x88] sm:$0xff]  ;;  %s6305_s30 = smov 94   ;;  %s6306_s8 = smov 38   ;;  %vm540_vm10 = vcmask 174082  }
  0x1f   :  { %129 = vrot.lane.b32.xlu2 %v4068_v6, %s6294_s4  ;;  %6127 = vmatpush.msra.mxu1 %v6410_v24  ;;  %v191_v43 = vld [vmem:[#allocation6 + $0x50] sm:$0xff]  ;;  %v374_v45 = vld [vmem:[#allocation6 + $0xc0] sm:$0xff]  ;;  %v181_v46 = vld [vmem:[#allocation6 + $0x8] sm:$0xff]  ;;  %s6307_s9 = smov 110   ;;  %vm536_vm11 = vcmask 818176   ;;  %vm569_vm13 = vcmask 998400  }
  0x20   :  { %411 = vmatpush.msra.mxu3 %v376_v37  ;;  %236 = vmatpush.msra.mxu0 %v192_v39  ;;  %v190_v47 = vld [vmem:[#allocation6 + $0x48] sm:$0xff]  ;;  %v305_v48 = vld [vmem:[#allocation6 + $0x80] sm:$0xff]  ;;  %v373_v49 = vld [vmem:[#allocation6 + $0xb8] sm:$0xff]  ;;  %vm551_vm14 = vcmask 581808   ;;  %vm641_vm15 = vcmask 719872   ;;  %s6308_s10 = smov 10  }
  0x21   :  { %6128 = vmatpush.msra.mxu1 %v183_v38  ;;  %344 = vmatpush.msra.mxu2 %v307_v40  ;;  %v180_v50 = vld [vmem:[#allocation6] sm:$0xff]  ;;  %v304_v52 = vld [vmem:[#allocation6 + $0x78] sm:$0xff]  ;;  %v372_v53 = vld [vmem:[#allocation6 + $0xb0] sm:$0xff]  ;;  %s91_s12 = sshll.u32 %s6801_s6, 4  ;;  %s6309_s13 = smov [#allocation2]   ;;  %s92_s12 = int_to_ptr.hbm [resolvable:$true] %s91_s12 }
  0x22   :  { %412 = vmatpush.msra.mxu3 %v375_v41  ;;  %237 = vmatpush.msra.mxu0 %v191_v43  ;;  %v189_v51 = vld [vmem:[#allocation6 + $0x40] sm:$0xff]  ;;  %v188_v54 = vld [vmem:[#allocation6 + $0x38] sm:$0xff]  ;;  %v303_v55 = vld [vmem:[#allocation6 + $0x70] sm:$0xff]  ;;  %s93_s14 = sshll.u32 %s6309_s13, 4  ;;  %s6310_s15 = smov 60   ;;  %s94_s14 = int_to_ptr.vmem [resolvable:$true] %s93_s14 }
  0x23   :  { %6129 = vmatpush.msra.mxu1 %v182_v42  ;;  %345 = vmatpush.msra.mxu2 %v306_v44  ;;  %v371_v56 = vld [vmem:[#allocation6 + $0xa8] sm:$0xff]  ;;  %v445_v4 = vld [vmem:[#allocation6 + $0x110] sm:$0x3]  ;;  %v443_v6 = vld [vmem:[#allocation6 + $0x100] sm:$0xff]  ;;  %96 = dma.hbm_to_vmem [thread:$0]  %s92_s12, 51200, %s94_s14, [#allocation4] }
  0x24   :  { %413 = vmatpush.msra.mxu3 %v374_v45  ;;  %238 = vmatpush.msra.mxu0 %v190_v47  ;;  %v444_v5 = vld [vmem:[#allocation6 + $0x108] sm:$0xff]  ;;  %vm6534_vm12 = vmor %vm540_vm10, %vm539_vm9  ;;  %vm582_vm9 = vcmask 762208  }
  0x25   :  { %6130 = vmatpush.msra.mxu1 %v181_v46  ;;  %346 = vmatpush.msra.mxu2 %v305_v48 }
  0x26   :  { %131 = vrot.lane.b32.xlu0 %v4069_v7, %s6294_s4  ;;  %414 = vmatpush.msra.mxu3 %v373_v49  ;;  %s6299_s4 = smov 22  }
  0x27   :  { %6131 = vmatpush.msra.mxu1 %v180_v50  ;;  %239 = vmatpush.msra.mxu0 %v189_v51 }
  0x28   :  { %347 = vmatpush.msra.mxu2 %v304_v52  ;;  %415 = vmatpush.msra.mxu3 %v372_v53 }
  0x29   :  { %240 = vmatpush.msra.mxu0 %v188_v54 }
  0x2a   :  { %348 = vmatpush.msra.mxu2 %v303_v55  ;;  %416 = vmatpush.msra.mxu3 %v371_v56 }
  0x2b   :  { %4076 = vmatpush.msk.msrb.mxu0 %vm6803_vm1, %v6399_v17 }
  0x2d   :  { %280 = vmatpush.msrb.mxu0 %v6401_v18  ;;  %v439_v18 = vld [vmem:[#allocation6 + $0xe0] sm:$0xff] }
  0x2f   :  { %281 = vmatpush.msrb.mxu0 %v6410_v24 }
  0x31   :  { %282 = vmatpush.msrb.mxu0 %v183_v38 }
  0x33   :  { %283 = vmatpush.msrb.mxu0 %v182_v42 }
  0x35   :  { %284 = vmatpush.msrb.mxu0 %v181_v46 }
  0x37   :  { %285 = vmatpush.msrb.mxu0 %v180_v50 }
  0x71   :  { %v128_v26 = vpop.permute.xlu2 %127 }
  0x72   :  { %v145_v28 = vsel %vm140_vm0, %v101_v27, %v128_v26 }
  0x79   :  { %v130_v29 = vpop.permute.xlu2 %129 }
  0x7a   :  { %v146_v31 = vsel %vm140_vm0, %v102_v30, %v130_v29 }
  0x88   :  { %v120_v9 = vpop.permute.xlu0 %119  ;;  %v124_v14 = vpop.permute.xlu1 %123 }
  0x89   :  { %v141_v10 = vsel %vm140_vm0, %v97_v8, %v120_v9  ;;  %v143_v16 = vsel %vm140_vm0, %v99_v15, %v124_v14  ;;  %v442_v14 = vld [vmem:[#allocation6 + $0xf8] sm:$0xff]  ;;  %v441_v15 = vld [vmem:[#allocation6 + $0xf0] sm:$0xff] }
  0x8a   :  { %148 = vxpose.xlu1.b32.start [1/7] (short) (narrow) %v141_v10, 40 }
  0x90   :  { %v122_v12 = vpop.permute.xlu0 %121  ;;  %v126_v22 = vpop.permute.xlu1 %125 }
  0x91   :  { %v142_v13 = vsel %vm140_vm0, %v98_v11, %v122_v12  ;;  %v144_v25 = vsel %vm140_vm0, %v100_v23, %v126_v22 }
  0x92   :  { %149 = vxpose.xlu1.b32.cont [2/7] (short) (narrow) %v142_v13, 40 }
  0x98   :  { %v132_v32 = vpop.permute.xlu0 %131 }
  0x99   :  { %v147_v34 = vsel %vm140_vm0, %v103_v33, %v132_v32  ;;  %vm559_vm0 = vcmask 991808  }
  0x9a   :  { %150 = vxpose.xlu1.b32.cont [3/7] (short) (narrow) %v143_v16, 40  ;;  %v440_v16 = vld [vmem:[#allocation6 + $0xe8] sm:$0xff] }
  0xa2   :  { %151 = vxpose.xlu1.b32.cont [4/7] (short) (narrow) %v144_v25, 40 }
  0xaa   :  { %152 = vxpose.xlu1.b32.cont [5/7] (short) (narrow) %v145_v28, 40 }
  0xb2   :  { %153 = vxpose.xlu1.b32.cont [6/7] (short) (narrow) %v146_v31, 40 }
  0xba   :  { %154 = vxpose.xlu1.b32.end [7/7] (short) (narrow) %v147_v34, 40 }
 0x12e   :  { %v6432_v57 = vpop.trf.xlu1 }
 0x12f   :  { %v201_v59 = vrot.slane %v6432_v57, 1  ;;  %v311_v60 = vrot.slane %v6432_v57, 2  ;;  %v379_v63 = vrot.slane %v6432_v57, 3  ;;  %v447_v33 = vrot.slane %v6432_v57, 4 }
 0x136   :  { %v6434_v58 = vpop.trf.xlu1 }
 0x137   :  { %4078 = vmatmul.msk.f32.vlgmr.msra.gmra.mxu1 %vm210_vm2, %v6434_v58  ;;  %v202_v61 = vrot.slane %v6434_v58, 1  ;;  %v312_v62 = vrot.slane %v6434_v58, 2  ;;  %v380_v0 = vrot.slane %v6434_v58, 3  ;;  %v448_v32 = vrot.slane %v6434_v58, 4 }
 0x139   :  { %v203_v1 = vsel %vm200_vm3, %v201_v59, %v202_v61  ;;  %v313_v2 = vsel %vm310_vm4, %v311_v60, %v312_v62  ;;  %v381_v3 = vsel %vm378_vm5, %v379_v63, %v380_v0  ;;  %v449_v34 = vsel %vm446_vm6, %v447_v33, %v448_v32 }
 0x13a   :  { %4071 = vmatmul.msk.f32.vlgmr.msra.gmra.mxu0 %vm210_vm2, %v203_v1  ;;  %4083 = vmatmul.msk.f32.vlgmr.msra.gmra.mxu2 %vm210_vm2, %v313_v2 }
 0x13b   :  { %4089 = vmatmul.msk.f32.vlgmr.msra.gmra.mxu3 %vm210_vm2, %v381_v3  ;;  %4094 = vmatpush.msk.msra.mxu0 %vm6803_vm1, %v445_v4 }
 0x13d   :  { %479 = vmatpush.msra.mxu0 %v444_v5 }
 0x13e   :  { %v166_v7 = vpop.trf.xlu1 }
 0x13f   :  { %4079 = vmatmul.msk.f32.gmra.mxu1 %vm210_vm2, %v166_v7  ;;  %v204_v8 = vrot.slane %v166_v7, 1  ;;  %v314_v9 = vrot.slane %v166_v7, 2  ;;  %v382_v10 = vrot.slane %v166_v7, 3  ;;  %480 = vmatpush.msra.mxu0 %v443_v6  ;;  %v450_v35 = vrot.slane %v166_v7, 4 }
 0x141   :  { %v205_v11 = vsel %vm200_vm3, %v202_v61, %v204_v8  ;;  %v315_v12 = vsel %vm310_vm4, %v312_v62, %v314_v9  ;;  %v383_v13 = vsel %vm378_vm5, %v380_v0, %v382_v10  ;;  %481 = vmatpush.msra.mxu0 %v442_v14  ;;  %v451_v36 = vsel %vm446_vm6, %v448_v32, %v450_v35  ;;  %v6484_v61 = vld [vmem:[#allocation8] ss:$0 sm:$0xff] }
 0x142   :  { %4072 = vmatmul.msk.f32.gmra.mxu0 %vm210_vm2, %v205_v11  ;;  %4084 = vmatmul.msk.f32.gmra.mxu2 %vm210_vm2, %v315_v12 }
 0x143   :  { %4090 = vmatmul.msk.f32.gmra.mxu3 %vm210_vm2, %v383_v13  ;;  %482 = vmatpush.msra.mxu0 %v441_v15 }
 0x145   :  { %483 = vmatpush.msra.mxu0 %v440_v16 }
 0x146   :  { %v167_v17 = vpop.trf.xlu1 }
 0x147   :  { %4080 = vmatmul.msk.f32.gmra.mxu1 %vm210_vm2, %v167_v17  ;;  %v206_v19 = vrot.slane %v167_v17, 1  ;;  %v316_v20 = vrot.slane %v167_v17, 2  ;;  %v384_v21 = vrot.slane %v167_v17, 3  ;;  %484 = vmatpush.msra.mxu0 %v439_v18  ;;  %v452_v37 = vrot.slane %v167_v17, 4 }
 0x149   :  { %v207_v22 = vsel %vm200_vm3, %v204_v8, %v206_v19  ;;  %v317_v23 = vsel %vm310_vm4, %v314_v9, %v316_v20  ;;  %v385_v24 = vsel %vm378_vm5, %v382_v10, %v384_v21  ;;  %v453_v38 = vsel %vm446_vm6, %v450_v35, %v452_v37 }
 0x14a   :  { %4073 = vmatmul.msk.f32.gmra.mxu0 %vm210_vm2, %v207_v22  ;;  %4085 = vmatmul.msk.f32.gmra.mxu2 %vm210_vm2, %v317_v23 }
 0x14b   :  { %4091 = vmatmul.msk.f32.gmra.mxu3 %vm210_vm2, %v385_v24 }
 0x14e   :  { %v168_v25 = vpop.trf.xlu1 }
 0x14f   :  { %4081 = vmatmul.msk.f32.gmra.mxu1 %vm210_vm2, %v168_v25  ;;  %v208_v26 = vrot.slane %v168_v25, 1  ;;  %v318_v27 = vrot.slane %v168_v25, 2  ;;  %v386_v28 = vrot.slane %v168_v25, 3  ;;  %v454_v39 = vrot.slane %v168_v25, 4 }
 0x151   :  { %v209_v29 = vsel %vm200_vm3, %v206_v19, %v208_v26  ;;  %v319_v30 = vsel %vm310_vm4, %v316_v20, %v318_v27  ;;  %v387_v31 = vsel %vm378_vm5, %v384_v21, %v386_v28  ;;  %v455_v40 = vsel %vm446_vm6, %v452_v37, %v454_v39 }
 0x152   :  { %4074 = vmatmul.msk.f32.gmra.mxu0 %vm210_vm2, %v209_v29  ;;  %4086 = vmatmul.msk.f32.gmra.mxu2 %vm210_vm2, %v319_v30  ;;  %vm573_vm3 = vcmask 354306   ;;  %vm595_vm5 = vcmask 1041136   ;;  %vm596_vm6 = vcmask 124930  }
 0x153   :  { %4092 = vmatmul.msk.f32.gmra.mxu3 %vm210_vm2, %v387_v31  ;;  %vm6564_vm10 = vmor %vm596_vm6, %vm595_vm5  ;;  %vm622_vm5 = vcmask 305154   ;;  %vm618_vm6 = vcmask 949248  }
 0x15a   :  { %4075 = vmatmul.msk.f32.gmra.mxu0 %vm210_vm2, %v208_v26  ;;  %4087 = vmatmul.msk.f32.gmra.mxu2 %vm210_vm2, %v318_v27 }
 0x15b   :  { %4093 = vmatmul.msk.f32.gmra.mxu3 %vm210_vm2, %v386_v28 }
 0x162   :  { %4077 = vmatmul.msk.f32.vlgmr.msrb.gmra.mxu0 %vm210_vm2, %v6432_v57 }
 0x16a   :  { %4095 = vmatmul.msk.f32.vlgmr.msra.gmra.mxu0 %vm210_vm2, %v449_v34 }
 0x172   :  { %4096 = vmatmul.msk.f32.gmra.mxu0 %vm210_vm2, %v451_v36 }
 0x17a   :  { %4097 = vmatmul.msk.f32.gmra.mxu0 %vm210_vm2, %v453_v38 }
 0x182   :  { %4098 = vmatmul.msk.f32.gmra.mxu0 %vm210_vm2, %v455_v40 }
 0x18a   :  { %4099 = vmatmul.msk.f32.gmra.mxu0 %vm210_vm2, %v454_v39  ;;  %vm572_vm2 = vcmask 1041360  }
 0x18b   :  { %vm6553_vm4 = vmor %vm573_vm3, %vm572_vm2  ;;  %vm6804_vm2 = vcmask 942608   ;;  %vm621_vm3 = vcmask 1041312  }
 0x18c   :  { %vm6580_vm1 = vmor %vm622_vm5, %vm621_vm3  ;;  %vm644_vm3 = vcmask 1041088   ;;  %vm645_vm5 = vcmask 75778  }
 0x1b4   :  { %v290_v42 = vpop.f32.mrf.mxu1 }
 0x1b7   :  { %v242_v41 = vpop.f32.mrf.mxu0 }
 0x1bc   :  { %v293_v48 = vpop.f32.mrf.mxu1 }
 0x1bd   :  { %v350_v43 = vpop.f32.mrf.mxu2 }
 0x1be   :  { %v418_v44 = vpop.f32.mrf.mxu3 }
 0x1bf   :  { %v245_v45 = vpop.f32.mrf.mxu0 }
 0x1c0   :  { %v291_v63 = vadd.f32 %v290_v42, %v245_v45 }
 0x1c4   :  { %v296_v11 = vpop.f32.mrf.mxu1 }
 0x1c5   :  { %v353_v46 = vpop.f32.mrf.mxu2 }
 0x1c6   :  { %v421_v47 = vpop.f32.mrf.mxu3  ;;  %v366_v1 = vadd.f32 %v353_v46, %v291_v63 }
 0x1c7   :  { %v248_v49 = vpop.f32.mrf.mxu0 }
 0x1c8   :  { %v294_v50 = vadd.f32 %v293_v48, %v248_v49  ;;  %v434_v4 = vadd.f32 %v421_v47, %v366_v1 }
 0x1cc   :  { %v299_v26 = vpop.f32.mrf.mxu1 }
 0x1cd   :  { %v356_v51 = vpop.f32.mrf.mxu2 }
 0x1ce   :  { %v367_v52 = vadd.f32 %v356_v51, %v294_v50  ;;  %v424_v53 = vpop.f32.mrf.mxu3 }
 0x1cf   :  { %v251_v54 = vpop.f32.mrf.mxu0 }
 0x1d0   :  { %v435_v55 = vadd.f32 %v424_v53, %v367_v52  ;;  %v297_v15 = vadd.f32 %v296_v11, %v251_v54 }
 0x1d5   :  { %v359_v13 = vpop.f32.mrf.mxu2 }
 0x1d6   :  { %v368_v17 = vadd.f32 %v359_v13, %v297_v15  ;;  %v427_v19 = vpop.f32.mrf.mxu3 }
 0x1d7   :  { %v254_v56 = vpop.f32.mrf.mxu0 }
 0x1d8   :  { %v436_v21 = vadd.f32 %v427_v19, %v368_v17  ;;  %v300_v29 = vadd.f32 %v299_v26, %v254_v56 }
 0x1dd   :  { %v362_v27 = vpop.f32.mrf.mxu2 }
 0x1de   :  { %v369_v31 = vadd.f32 %v362_v27, %v300_v29  ;;  %v430_v32 = vpop.f32.mrf.mxu3 }
 0x1df   :  { %v287_v57 = vpop.f32.mrf.mxu0 }
 0x1e0   :  { %v288_v58 = vadd.f32 %v287_v57, %v242_v41  ;;  %v437_v34 = vadd.f32 %v430_v32, %v369_v31 }
 0x1e2   :  { %v365_v59 = vadd.f32 %v350_v43, %v288_v58 }
 0x1e4   :  { %v433_v60 = vadd.f32 %v418_v44, %v365_v59 }
 0x1e7   :  { %v486_v62 = vpop.f32.mrf.mxu0 }
 0x1e8   :  { %v501_v0 = vadd.f32 %v486_v62, %v433_v60 }
 0x1ea   :  { %v510_v2 = vadd.f32 %v6484_v61, %v501_v0 }
 0x1ec   :  { %v515_v3 = vmax.f32 %v510_v2, 0.0 }
 0x1ee   :  { %530 = vst.sshfl [vmem:[#allocation1] sm:$0xff pattern:$0x73625140] %v515_v3  ;;  %v4100_v5 = vrot.slane %v515_v3, 9 }
 0x1ef   :  { %v489_v6 = vpop.f32.mrf.mxu0  ;;  %521 = vst.msk [vmem:[#allocation3] sm:$0x1] %vm520_vm7, %v515_v3 }
 0x1f0   :  { %v502_v7 = vadd.f32 %v489_v6, %v434_v4  ;;  %525 = vrot.lane.b32.xlu2 %v4100_v5, %s6295_s0 }
 0x1f2   :  { %v511_v8 = vadd.f32 %v6484_v61, %v502_v7 }
 0x1f4   :  { %v6490_v9 = vmax.f32 %v511_v8, 0.0 }
 0x1f5   :  { %v532_v10 = vld [vmem:[#allocation1 + $0x1] ss:$4 sm:$0xff] }
 0x1f6   :  { %543 = vst.sshfl [vmem:[#allocation1] sm:$0xff pattern:$0x73625140] %v515_v3  ;;  %533 = vrot.lane.b32.xlu0 %v532_v10, %s6296_s22  ;;  %v4104_v12 = vrot.slane %v6490_v9, 9 }
 0x1f7   :  { %v492_v14 = vpop.f32.mrf.mxu0 }
 0x1f8   :  { %v503_v16 = vadd.f32 %v492_v14, %v435_v55  ;;  %607 = vrot.lane.b32.xlu2 %v4104_v12, %s6297_s23 }
 0x1fa   :  { %v6496_v18 = vadd.f32 %v6484_v61, %v503_v16 }
 0x1fc   :  { %v517_v51 = vmax.f32 %v6496_v18, 0.0 }
 0x1fd   :  { %v545_v20 = vld [vmem:[#allocation1 + $0x1] ss:$4 sm:$0xff] }
 0x1fe   :  { %553 = vst.sshfl [vmem:[#allocation1] sm:$0xff pattern:$0x73625140] %v515_v3  ;;  %600 = vrot.lane.b32.xlu0 %v6490_v9, %s6298_s24  ;;  %v4101_v22 = vrot.slane %v545_v20, 9 }
 0x1ff   :  { %v495_v23 = vpop.f32.mrf.mxu0 }
 0x200   :  { %v504_v24 = vadd.f32 %v495_v23, %v436_v21  ;;  %548 = vrot.lane.b32.xlu2 %v4101_v22, %s6299_s4 }
 0x202   :  { %v513_v25 = vadd.f32 %v6484_v61, %v504_v24 }
 0x204   :  { %v6502_v30 = vmax.f32 %v513_v25, 0.0 }
 0x205   :  { %v555_v28 = vld [vmem:[#allocation1 + $0x2] ss:$4 sm:$0xff] }
 0x206   :  { %561 = vst.sshfl [vmem:[#allocation1] sm:$0xff pattern:$0x73625140] %v515_v3  ;;  %556 = vrot.lane.b32.xlu0 %v555_v28, %s6300_s25  ;;  %v4110_v37 = vrot.slane %v6502_v30, 9 }
 0x207   :  { %v498_v33 = vpop.f32.mrf.mxu0 }
 0x208   :  { %715 = vrot.lane.b32.xlu2 %v6502_v30, %s6300_s25  ;;  %v505_v36 = vadd.f32 %v498_v33, %v437_v34 }
 0x20a   :  { %v514_v38 = vadd.f32 %v6484_v61, %v505_v36 }
 0x20c   :  { %v6507_v40 = vmax.f32 %v514_v38, 0.0 }
 0x20d   :  { %v563_v35 = vld [vmem:[#allocation1 + $0x2] ss:$4 sm:$0xff] }
 0x20e   :  { %576 = vst.sshfl [vmem:[#allocation1] sm:$0xff pattern:$0x73625140] %v515_v3  ;;  %v4102_v42 = vrot.slane %v563_v35, 9  ;;  %v4114_v24 = vrot.slane %v6507_v40, 9 }
 0x210   :  { %721 = vrot.lane.b32.xlu2 %v4110_v37, %s6301_s26 }
 0x215   :  { %v578_v39 = vld [vmem:[#allocation1 + $0x3] ss:$4 sm:$0xff] }
 0x216   :  { %584 = vst.sshfl [vmem:[#allocation1] sm:$0xff pattern:$0x73625140] %v515_v3  ;;  %579 = vrot.lane.b32.xlu0 %v578_v39, %s6302_s27 }
 0x218   :  { %780 = vrot.lane.b32.xlu2 %v6507_v40, %s6303_s28 }
 0x21d   :  { %v586_v41 = vld [vmem:[#allocation1 + $0x3] ss:$4 sm:$0xff] }
 0x21e   :  { %612 = vst.sshfl [vmem:[#allocation1] sm:$0xff pattern:$0x73625140] %v6490_v9  ;;  %v4103_v44 = vrot.slane %v586_v41, 9 }
 0x220   :  { %566 = vrot.lane.b32.xlu2 %v4102_v42, %s6301_s26 }
 0x225   :  { %v614_v43 = vld [vmem:[#allocation1 + $0x1] ss:$4 sm:$0xff] }
 0x226   :  { %625 = vst.sshfl [vmem:[#allocation1] sm:$0xff pattern:$0x73625140] %v6490_v9  ;;  %615 = vrot.lane.b32.xlu0 %v614_v43, %s6304_s29 }
 0x228   :  { %589 = vrot.lane.b32.xlu2 %v4103_v44, %s6305_s30 }
 0x22d   :  { %v627_v45 = vld [vmem:[#allocation1 + $0x1] ss:$4 sm:$0xff] }
 0x22e   :  { %635 = vst.sshfl [vmem:[#allocation1] sm:$0xff pattern:$0x73625140] %v6490_v9  ;;  %v4105_v46 = vrot.slane %v627_v45, 9 }
 0x230   :  { %630 = vrot.lane.b32.xlu2 %v4105_v46, %s6306_s8 }
 0x235   :  { %v637_v47 = vld [vmem:[#allocation1 + $0x2] ss:$4 sm:$0xff] }
 0x236   :  { %638 = vrot.lane.b32.xlu0 %v637_v47, %s6303_s28  ;;  %648 = vst.sshfl [vmem:[#allocation1] sm:$0xff pattern:$0x73625140] %v6490_v9 }
 0x23d   :  { %v6518_v48 = vld [vmem:[#allocation1 + $0x2] ss:$4 sm:$0xff] }
 0x23e   :  { %658 = vst.sshfl [vmem:[#allocation1] sm:$0xff pattern:$0x73625140] %v6490_v9  ;;  %v4106_v36 = vrot.slane %v6518_v48, 9 }
 0x245   :  { %v6521_v49 = vld [vmem:[#allocation1 + $0x3] ss:$4 sm:$0xff] }
 0x246   :  { %666 = vst.sshfl [vmem:[#allocation1] sm:$0xff pattern:$0x73625140] %v6490_v9 }
 0x24a   :  { %v526_v50 = vpop.permute.xlu2 %525 }
 0x24b   :  { %529 = vst.msk [vmem:[#allocation3] sm:$0x1] %vm528_vm8, %v526_v50 }
 0x24d   :  { %v668_v52 = vld [vmem:[#allocation1 + $0x3] ss:$4 sm:$0xff] }
 0x24e   :  { %v4107_v53 = vrot.slane %v668_v52, 9  ;;  %682 = vst.sshfl [vmem:[#allocation1] sm:$0xff pattern:$0x73625140] %v517_v51 }
 0x250   :  { %671 = vrot.lane.b32.xlu2 %v4107_v53, %s6307_s9 }
 0x252   :  { %v6527_v54 = vpop.permute.xlu2 %607 }
 0x255   :  { %v684_v55 = vld [vmem:[#allocation1 + $0x2] ss:$4 sm:$0xff] }
 0x256   :  { %687 = vst.sshfl [vmem:[#allocation1] sm:$0xff pattern:$0x73625140] %v517_v51 }
 0x257   :  { %686 = vst.msk [vmem:[#allocation3 + $0x1] sm:$0x1] %vm520_vm7, %v684_v55  ;;  %vm592_vm7 = vcmask 769024  }
 0x25a   :  { %v549_v56 = vpop.permute.xlu2 %548 }
 0x25d   :  { %v689_v57 = vld [vmem:[#allocation1 + $0x2] ss:$4 sm:$0xff] }
 0x25e   :  { %v4108_v58 = vrot.slane %v689_v57, 9  ;;  %696 = vst.sshfl [vmem:[#allocation1] sm:$0xff pattern:$0x73625140] %v517_v51 }
 0x260   :  { %692 = vrot.lane.b32.xlu0 %v4108_v58, %s6295_s0 }
 0x262   :  { %v6531_v59 = vpop.permute.xlu2 %715 }
 0x265   :  { %v698_v60 = vld [vmem:[#allocation1 + $0x3] ss:$4 sm:$0xff] }
 0x266   :  { %699 = vrot.lane.b32.xlu2 %v698_v60, %s6296_s22  ;;  %705 = vst.sshfl [vmem:[#allocation1] sm:$0xff pattern:$0x73625140] %v517_v51 }
 0x268   :  { %v534_v61 = vpop.permute.xlu0 %533 }
 0x269   :  { %v535_v63 = vrot.slane %v534_v61, 6 }
 0x26a   :  { %v722_v0 = vpop.permute.xlu2 %721 }
 0x26b   :  { %v537_v1 = vsel %vm536_vm11, %v535_v63, %v534_v61  ;;  %v723_v2 = vrot.slane %v722_v0, 6 }
 0x26c   :  { %542 = vst.msk [vmem:[#allocation3] sm:$0x5] %vm6534_vm12, %v537_v1 }
 0x26d   :  { %v6542_v3 = vsel %vm569_vm13, %v723_v2, %v722_v0  ;;  %v707_v4 = vld [vmem:[#allocation1 + $0x3] ss:$4 sm:$0xff]  ;;  %552 = vst.msk [vmem:[#allocation3 + $0x2] sm:$0x1] %vm551_vm14, %v549_v56 }
 0x26e   :  { %v4109_v5 = vrot.slane %v707_v4, 9  ;;  %727 = vst.sshfl [vmem:[#allocation1] sm:$0xff pattern:$0x73625140] %v6502_v30 }
 0x270   :  { %v601_v6 = vpop.permute.xlu0 %600  ;;  %710 = vrot.lane.b32.xlu0 %v4109_v5, %s6299_s4 }
 0x272   :  { %v781_v7 = vpop.permute.xlu2 %780 }
 0x273   :  { %v782_v8 = vrot.slane %v781_v7, 6 }
 0x275   :  { %v6548_v9 = vsel %vm641_vm15, %v782_v8, %v781_v7  ;;  %v729_v10 = vld [vmem:[#allocation1 + $0x1] ss:$4 sm:$0xff] }
 0x276   :  { %730 = vrot.lane.b32.xlu2 %v729_v10, %s6302_s27  ;;  %734 = vst.sshfl [vmem:[#allocation1] sm:$0xff pattern:$0x73625140] %v6502_v30 }
 0x278   :  { %v557_v11 = vpop.permute.xlu0 %556 }
 0x279   :  { %560 = vst.msk [vmem:[#allocation3 + $0x2] sm:$0x1] %vm559_vm0, %v557_v11 }
 0x27a   :  { %v567_v12 = vpop.permute.xlu2 %566 }
 0x27b   :  { %v568_v14 = vrot.slane %v567_v12, 6 }
 0x27d   :  { %v570_v15 = vsel %vm569_vm13, %v568_v14, %v567_v12  ;;  %v736_v16 = vld [vmem:[#allocation1 + $0x1] ss:$4 sm:$0xff]  ;;  %vm603_vm13 = vcmask 532608  }
 0x27e   :  { %575 = vst.msk [vmem:[#allocation3 + $0x2] sm:$0x5] %vm6553_vm4, %v570_v15  ;;  %v4111_v17 = vrot.slane %v736_v16, 9 }
 0x27f   :  { %745 = vst.sshfl [vmem:[#allocation1] sm:$0xff pattern:$0x73625140] %v6502_v30 }
 0x280   :  { %739 = vrot.lane.b32.xlu0 %v4111_v17, %s6305_s30 }
 0x282   :  { %v590_v18 = vpop.permute.xlu2 %589 }
 0x283   :  { %v591_v19 = vrot.slane %v590_v18, 6 }
 0x285   :  { %v593_v23 = vsel %vm592_vm7, %v591_v19, %v590_v18 }
 0x286   :  { %v747_v20 = vld [vmem:[#allocation1 + $0x2] ss:$4 sm:$0xff] }
 0x287   :  { %748 = vrot.lane.b32.xlu2 %v747_v20, %s6298_s24  ;;  %752 = vst.sshfl [vmem:[#allocation1] sm:$0xff pattern:$0x73625140] %v6502_v30 }
 0x288   :  { %v580_v22 = vpop.permute.xlu0 %579 }
 0x289   :  { %583 = vst.msk [vmem:[#allocation3 + $0x4] sm:$0x1] %vm582_vm9, %v580_v22 }
 0x28a   :  { %598 = vst.msk [vmem:[#allocation3 + $0x4] sm:$0x5] %vm6564_vm10, %v593_v23  ;;  %v631_v33 = vpop.permute.xlu2 %630 }
 0x28b   :  { %604 = vst.msk [vmem:[#allocation3 + $0x6] sm:$0x1] %vm603_vm13, %v601_v6 }
 0x28c   :  { %611 = vst.msk [vmem:[#allocation3 + $0x6] sm:$0x1] %vm6804_vm2, %v6527_v54  ;;  %vm6805_vm2 = vcmask 713008  }
 0x28e   :  { %v754_v25 = vld [vmem:[#allocation1 + $0x2] ss:$4 sm:$0xff] }
 0x28f   :  { %788 = vrot.lane.b32.xlu2 %v4114_v24, %s6308_s10  ;;  %v4112_v26 = vrot.slane %v754_v25, 9  ;;  %761 = vst.sshfl [vmem:[#allocation1] sm:$0xff pattern:$0x73625140] %v6502_v30 }
 0x291   :  { %757 = vrot.lane.b32.xlu0 %v4112_v26, %s6297_s23 }
 0x296   :  { %v763_v27 = vld [vmem:[#allocation1 + $0x3] ss:$4 sm:$0xff] }
 0x297   :  { %770 = vst.sshfl [vmem:[#allocation1] sm:$0xff pattern:$0x73625140] %v6502_v30 }
 0x298   :  { %v616_v28 = vpop.permute.xlu0 %615 }
 0x299   :  { %v617_v31 = vrot.slane %v616_v28, 6  ;;  %764 = vrot.lane.b32.xlu0 %v763_v27, %s6304_s29 }
 0x29b   :  { %v619_v32 = vsel %vm618_vm6, %v617_v31, %v616_v28 }
 0x29c   :  { %624 = vst.msk [vmem:[#allocation3 + $0x6] sm:$0x5] %vm6580_vm1, %v619_v32 }
 0x29d   :  { %634 = vst.msk [vmem:[#allocation3 + $0x8] sm:$0x1] %vm6805_vm2, %v631_v33  ;;  %vm6596_vm2 = vmor %vm645_vm5, %vm644_vm3 }
 0x29e   :  { %v772_v34 = vld [vmem:[#allocation1 + $0x3] ss:$4 sm:$0xff] }
 0x29f   :  { %v4113_v30 = vrot.slane %v772_v34, 9  ;;  %792 = vst.sshfl [vmem:[#allocation1] sm:$0xff pattern:$0x73625140] %v6507_v40 }
 0x2a1   :  { %775 = vrot.lane.b32.xlu0 %v4113_v30, %s6306_s8 }
 0x2a6   :  { %v794_v35 = vld [vmem:[#allocation1 + $0x1] ss:$4 sm:$0xff] }
 0x2a7   :  { %795 = vrot.lane.b32.xlu2 %v794_v35, %s6310_s15  ;;  %799 = vst.sshfl [vmem:[#allocation1] sm:$0xff pattern:$0x73625140] %v6507_v40 }
 0x2a8   :  { %v639_v37 = vpop.permute.xlu0 %638 }
 0x2a9   :  { %v640_v39 = vrot.slane %v639_v37, 6  ;;  %653 = vrot.lane.b32.xlu0 %v4106_v36, %s6308_s10 }
 0x2aa   :  { %v672_v40 = vpop.permute.xlu2 %671 }
 0x2ab   :  { %v642_v41 = vsel %vm641_vm15, %v640_v39, %v639_v37  ;;  %vm677_vm15 = vcmask 1041264   ;;  %v673_v62 = vrot.slane %v672_v40, 6 }
 0x2ac   :  { %647 = vst.msk [vmem:[#allocation3 + $0x8] sm:$0x5] %vm6596_vm2, %v642_v41 }
 0x2ae   :  { %v801_v42 = vld [vmem:[#allocation1 + $0x1] ss:$4 sm:$0xff] }
 0x2af   :  { %v4115_v43 = vrot.slane %v801_v42, 9 }
 0x2b1   :  { %804 = vrot.lane.b32.xlu1 %v4115_v43, %s6307_s9  ;;  %661 = vrot.lane.b32.xlu0 %v6521_v49, %s6310_s15 }
 0x2c0   :  { %v700_v44 = vpop.permute.xlu2 %699 }
 0x2c1   :  { %v701_v45 = vrot.slane %v700_v44, 6 }
 0x2c3   :  { %v702_v47 = vsel %vm536_vm11, %v701_v45, %v700_v44  ;;  %vm656_vm11 = vcmask 483408  }
 0x2d0   :  { %v731_v50 = vpop.permute.xlu2 %730 }
 0x2d2   :  { %v693_v46 = vpop.permute.xlu0 %692 }
 0x2d3   :  { %695 = vst.msk [vmem:[#allocation3 + $0x1] sm:$0x1] %vm528_vm8, %v693_v46  ;;  %vm6816_vm8 = vcmask 942608  }
 0x2d4   :  { %704 = vst.msk [vmem:[#allocation3 + $0x1] sm:$0x5] %vm6534_vm12, %v702_v47  ;;  %vm6817_vm12 = vcmask 713008  }
 0x2e1   :  { %v749_v53 = vpop.permute.xlu2 %748 }
 0x2e2   :  { %v711_v48 = vpop.permute.xlu0 %710 }
 0x2e3   :  { %713 = vst.msk [vmem:[#allocation3 + $0x3] sm:$0x1] %vm551_vm14, %v711_v48  ;;  %vm664_vm14 = vcmask 893408  }
 0x2e4   :  { %718 = vst.msk [vmem:[#allocation3 + $0x3] sm:$0x1] %vm559_vm0, %v6531_v59  ;;  %vm678_vm0 = vcmask 256002  }
 0x2e5   :  { %726 = vst.msk [vmem:[#allocation3 + $0x3] sm:$0x5] %vm6553_vm4, %v6542_v3  ;;  %vm674_vm4 = vcmask 900096  }
 0x2e6   :  { %733 = vst.msk [vmem:[#allocation3 + $0x5] sm:$0x1] %vm582_vm9, %v731_v50  ;;  %v675_v1 = vsel %vm674_vm4, %v673_v62, %v672_v40 }
 0x2e9   :  { %v789_v57 = vpop.permute.xlu2 %788 }
 0x2f2   :  { %v740_v49 = vpop.permute.xlu0 %739 }
 0x2f3   :  { %v741_v51 = vrot.slane %v740_v49, 6 }
 0x2f5   :  { %v742_v52 = vsel %vm592_vm7, %v741_v51, %v740_v49 }
 0x2f6   :  { %744 = vst.msk [vmem:[#allocation3 + $0x5] sm:$0x5] %vm6564_vm10, %v742_v52 }
 0x2f7   :  { %751 = vst.msk [vmem:[#allocation3 + $0x7] sm:$0x1] %vm603_vm13, %v749_v53 }
 0x301   :  { %v796_v60 = vpop.permute.xlu2 %795 }
 0x303   :  { %v758_v54 = vpop.permute.xlu0 %757 }
 0x304   :  { %760 = vst.msk [vmem:[#allocation3 + $0x7] sm:$0x1] %vm6816_vm8, %v758_v54 }
 0x30b   :  { %v765_v55 = vpop.permute.xlu0 %764 }
 0x30c   :  { %v766_v56 = vrot.slane %v765_v55, 6 }
 0x30e   :  { %v767_v58 = vsel %vm618_vm6, %v766_v56, %v765_v55 }
 0x30f   :  { %769 = vst.msk [vmem:[#allocation3 + $0x7] sm:$0x5] %vm6580_vm1, %v767_v58  ;;  %vm679_vm1 = vmor %vm678_vm0, %vm677_vm15 }
 0x313   :  { %v776_v59 = vpop.permute.xlu0 %775 }
 0x314   :  { %778 = vst.msk [vmem:[#allocation3 + $0x9] sm:$0x1] %vm6817_vm12, %v776_v59 }
 0x315   :  { %785 = vst.msk [vmem:[#allocation3 + $0x9] sm:$0x5] %vm6596_vm2, %v6548_v9 }
 0x316   :  { %791 = vst.msk [vmem:[#allocation3 + $0xb] sm:$0x1] %vm656_vm11, %v789_v57 }
 0x317   :  { %798 = vst.msk [vmem:[#allocation3 + $0xb] sm:$0x1] %vm664_vm14, %v796_v60 }
 0x31b   :  { %v654_v61 = vpop.permute.xlu0 %653 }
 0x31c   :  { %657 = vst.msk [vmem:[#allocation3 + $0xa] sm:$0x1] %vm656_vm11, %v654_v61 }
 0x323   :  { %v805_v63 = vpop.permute.xlu1 %804  ;;  %v662_v0 = vpop.permute.xlu0 %661 }
 0x324   :  { %v806_v2 = vrot.slane %v805_v63, 6  ;;  %665 = vst.msk [vmem:[#allocation3 + $0xa] sm:$0x1] %vm664_vm14, %v662_v0 }
 0x325   :  { %680 = vst.msk [vmem:[#allocation3 + $0xa] sm:$0x5] %vm679_vm1, %v675_v1 }
 0x326   :  { %v807_v3 = vsel %vm674_vm4, %v806_v2, %v805_v63 }
 0x327   :  { %809 = vst.msk [vmem:[#allocation3 + $0xb] sm:$0x5] %vm679_vm1, %v807_v3 }
 0x328   :  { %6286 = dma.done.wait [#allocation4], 51200 }
 0x329   :  { %6287 = vsyncadd [#allocation4], 4294916096  ;;  %v4598_v4 = vld [vmem:[#allocation2 + $0x3c0] sm:$0xf]  ;;  %vm3260_vm7 = vcmask 261120   ;;  %vm6818_vm9 = vcmask 1041408  }
 0x32a   :  { %v5849_v5 = vld [vmem:[#allocation2 + $0x3dc] sm:$0xf0]  ;;  %vm6819_vm10 = vmmov %vm6818_vm9  ;;  %vm4048_vm11 = vcmask 1024  }
 0x32b   :  { %v4854_v6 = vld [vmem:[#allocation2 + $0x5c0] sm:$0xf]  ;;  %v4599_v7 = vor.u32 %v5849_v5, %v4598_v4  ;;  %vm6820_vm13 = vmmov %vm6818_vm9 }
 0x32c   :  { %v5913_v8 = vld [vmem:[#allocation2 + $0x5dc] sm:$0xf0]  ;;  %vm6821_vm2 = vmmov %vm6818_vm9 }
 0x32d   :  { %v4342_v9 = vld [vmem:[#allocation2 + $0x1c0] sm:$0xf]  ;;  %v4855_v11 = vor.u32 %v5913_v8, %v4854_v6  ;;  %3277 = vmatpush.bf16.msrb.mxu2 %v4599_v7  ;;  %vm6822_vm6 = vmmov %vm6821_vm2 }
 0x32e   :  { %v5785_v10 = vld [vmem:[#allocation2 + $0x1dc] sm:$0xf0]  ;;  %vm6823_vm3 = vmmov %vm6821_vm2 }
 0x32f   :  { %v4343_v12 = vor.u32 %v5785_v10, %v4342_v9  ;;  %v4566_v13 = vld [vmem:[#allocation2 + $0x380] sm:$0xf]  ;;  %3290 = vmatpush.bf16.msrb.mxu3 %v4855_v11  ;;  %vm6824_vm5 = vmmov %vm6821_vm2 }
 0x330   :  { %v5841_v14 = vld [vmem:[#allocation2 + $0x39c] sm:$0xf0]  ;;  %vm6825_vm8 = vmmov %vm6821_vm2 }
 0x331   :  { %v4822_v15 = vld [vmem:[#allocation2 + $0x580] sm:$0xf]  ;;  %v4567_v16 = vor.u32 %v5841_v14, %v4566_v13  ;;  %3264 = vmatpush.bf16.msrb.mxu1 %v4343_v12 }
 0x332   :  { %v5905_v17 = vld [vmem:[#allocation2 + $0x59c] sm:$0xf0] }
 0x333   :  { %v4310_v18 = vld [vmem:[#allocation2 + $0x180] sm:$0xf]  ;;  %v4823_v20 = vor.u32 %v5905_v17, %v4822_v15  ;;  %3278 = vmatpush.bf16.msrb.mxu2 %v4567_v16 }
 0x334   :  { %v5777_v19 = vld [vmem:[#allocation2 + $0x19c] sm:$0xf0] }
 0x335   :  { %v4311_v21 = vor.u32 %v5777_v19, %v4310_v18  ;;  %v4534_v22 = vld [vmem:[#allocation2 + $0x340] sm:$0xf]  ;;  %3291 = vmatpush.bf16.msrb.mxu3 %v4823_v20 }
 0x336   :  { %v5833_v23 = vld [vmem:[#allocation2 + $0x35c] sm:$0xf0] }
 0x337   :  { %v4790_v24 = vld [vmem:[#allocation2 + $0x540] sm:$0xf]  ;;  %v4535_v28 = vor.u32 %v5833_v23, %v4534_v22  ;;  %3265 = vmatpush.bf16.msrb.mxu1 %v4311_v21 }
 0x338   :  { %v5897_v25 = vld [vmem:[#allocation2 + $0x55c] sm:$0xf0] }
 0x339   :  { %v4278_v26 = vld [vmem:[#allocation2 + $0x140] sm:$0xf]  ;;  %v4791_v29 = vor.u32 %v5897_v25, %v4790_v24  ;;  %3279 = vmatpush.bf16.msrb.mxu2 %v4535_v28 }
 0x33a   :  { %v5769_v27 = vld [vmem:[#allocation2 + $0x15c] sm:$0xf0] }
 0x33b   :  { %v4279_v31 = vor.u32 %v5769_v27, %v4278_v26  ;;  %v4502_v32 = vld [vmem:[#allocation2 + $0x300] sm:$0xf]  ;;  %3292 = vmatpush.bf16.msrb.mxu3 %v4791_v29 }
 0x33c   :  { %v5825_v33 = vld [vmem:[#allocation2 + $0x31c] sm:$0xf0] }
 0x33d   :  { %v4758_v34 = vld [vmem:[#allocation2 + $0x500] sm:$0xf]  ;;  %v4503_v37 = vor.u32 %v5825_v33, %v4502_v32  ;;  %3266 = vmatpush.bf16.msrb.mxu1 %v4279_v31 }
 0x33e   :  { %v5889_v30 = vld [vmem:[#allocation2 + $0x51c] sm:$0xf0] }
 0x33f   :  { %v4246_v35 = vld [vmem:[#allocation2 + $0x100] sm:$0xf]  ;;  %v4759_v38 = vor.u32 %v5889_v30, %v4758_v34  ;;  %3280 = vmatpush.bf16.msrb.mxu2 %v4503_v37 }
 0x340   :  { %v5761_v36 = vld [vmem:[#allocation2 + $0x11c] sm:$0xf0] }
 0x341   :  { %v4247_v39 = vor.u32 %v5761_v36, %v4246_v35  ;;  %v4470_v41 = vld [vmem:[#allocation2 + $0x2c0] sm:$0xf]  ;;  %3293 = vmatpush.bf16.msrb.mxu3 %v4759_v38 }
 0x342   :  { %v5817_v42 = vld [vmem:[#allocation2 + $0x2dc] sm:$0xf0] }
 0x343   :  { %v4726_v43 = vld [vmem:[#allocation2 + $0x4c0] sm:$0xf]  ;;  %v4471_v46 = vor.u32 %v5817_v42, %v4470_v41  ;;  %3267 = vmatpush.bf16.msrb.mxu1 %v4247_v39 }
 0x344   :  { %v5881_v40 = vld [vmem:[#allocation2 + $0x4dc] sm:$0xf0] }
 0x345   :  { %v4214_v44 = vld [vmem:[#allocation2 + $0xc0] sm:$0xf]  ;;  %v4727_v47 = vor.u32 %v5881_v40, %v4726_v43  ;;  %3281 = vmatpush.bf16.msrb.mxu2 %v4471_v46  ;;  %v5973_v40 = vld [vmem:[#allocation2 + $0x7c4] sm:$0xf] }
 0x346   :  { %v5753_v45 = vld [vmem:[#allocation2 + $0xdc] sm:$0xf0] }
 0x347   :  { %v4215_v48 = vor.u32 %v5753_v45, %v4214_v44  ;;  %v4438_v50 = vld [vmem:[#allocation2 + $0x280] sm:$0xf]  ;;  %3294 = vmatpush.bf16.msrb.mxu3 %v4727_v47  ;;  %v5112_v44 = vld [vmem:[#allocation2 + $0x7e0] sm:$0xf0]  ;;  %v815_v47 = vld [vmem:[#allocation3 + $0x8] sm:$0x3f] }
 0x348   :  { %v5809_v49 = vld [vmem:[#allocation2 + $0x29c] sm:$0xf0]  ;;  %v5115_v46 = vor.u32 %v5973_v40, %v5112_v44  ;;  %820 = vst [vmem:[#allocation1 + $0x20] ss:$4 sm:$0xff] %v815_v47 }
 0x349   :  { %v4694_v51 = vld [vmem:[#allocation2 + $0x480] sm:$0xf]  ;;  %v4439_v55 = vor.u32 %v5809_v49, %v4438_v50  ;;  %3268 = vmatpush.bf16.msrb.mxu1 %v4215_v48 }
 0x34a   :  { %v5873_v52 = vld [vmem:[#allocation2 + $0x49c] sm:$0xf0]  ;;  %3394 = vmatpush.bf16.msrb.mxu0 %v5115_v46  ;;  %v4600_v46 = vld [vmem:[#allocation2 + $0x3e0] sm:$0xf0] }
 0x34b   :  { %v4182_v53 = vld [vmem:[#allocation2 + $0x80] sm:$0xf]  ;;  %v4695_v56 = vor.u32 %v5873_v52, %v4694_v51  ;;  %3282 = vmatpush.bf16.msrb.mxu2 %v4439_v55 }
 0x34c   :  { %v5745_v54 = vld [vmem:[#allocation2 + $0x9c] sm:$0xf0] }
 0x34d   :  { %v4183_v57 = vor.u32 %v5745_v54, %v4182_v53  ;;  %v4406_v58 = vld [vmem:[#allocation2 + $0x240] sm:$0xf]  ;;  %3295 = vmatpush.bf16.msrb.mxu3 %v4695_v56  ;;  %v5965_v56 = vld [vmem:[#allocation2 + $0x784] sm:$0xf] }
 0x34e   :  { %v5801_v59 = vld [vmem:[#allocation2 + $0x25c] sm:$0xf0] }
 0x34f   :  { %v4662_v60 = vld [vmem:[#allocation2 + $0x440] sm:$0xf]  ;;  %v4407_v0 = vor.u32 %v5801_v59, %v4406_v58  ;;  %3269 = vmatpush.bf16.msrb.mxu1 %v4183_v57  ;;  %v5080_v57 = vld [vmem:[#allocation2 + $0x7a0] sm:$0xf0] }
 0x350   :  { %v5865_v61 = vld [vmem:[#allocation2 + $0x45c] sm:$0xf0]  ;;  %v5083_v59 = vor.u32 %v5965_v56, %v5080_v57  ;;  %v5837_v57 = vld [vmem:[#allocation2 + $0x384] sm:$0xf] }
 0x351   :  { %v4150_v62 = vld [vmem:[#allocation2 + $0x40] sm:$0xf]  ;;  %v4663_v4 = vor.u32 %v5865_v61, %v4662_v60  ;;  %3283 = vmatpush.bf16.msrb.mxu2 %v4407_v0 }
 0x352   :  { %v5737_v63 = vld [vmem:[#allocation2 + $0x5c] sm:$0xf0]  ;;  %3395 = vmatpush.bf16.msrb.mxu0 %v5083_v59  ;;  %v4920_v59 = vld [vmem:[#allocation2 + $0x660] sm:$0xf0] }
 0x353   :  { %v4374_v1 = vld [vmem:[#allocation2 + $0x200] sm:$0xf]  ;;  %v4151_v5 = vor.u32 %v5737_v63, %v4150_v62  ;;  %3296 = vmatpush.bf16.msrb.mxu3 %v4663_v4  ;;  %v5957_v63 = vld [vmem:[#allocation2 + $0x744] sm:$0xf] }
 0x354   :  { %v5793_v2 = vld [vmem:[#allocation2 + $0x21c] sm:$0xf0] }
 0x355   :  { %v4630_v3 = vld [vmem:[#allocation2 + $0x400] sm:$0xf]  ;;  %v4375_v14 = vor.u32 %v5793_v2, %v4374_v1  ;;  %3270 = vmatpush.bf16.msrb.mxu1 %v4151_v5 }
 0x356   :  { %v5857_v6 = vld [vmem:[#allocation2 + $0x41c] sm:$0xf0] }
 0x357   :  { %v5366_v7 = vld [vmem:[#allocation2 + $0x9c0] sm:$0xf]  ;;  %v4631_v17 = vor.u32 %v5857_v6, %v4630_v3  ;;  %3284 = vmatpush.bf16.msrb.mxu2 %v4375_v14  ;;  %v5048_v3 = vld [vmem:[#allocation2 + $0x760] sm:$0xf0] }
 0x358   :  { %v814_v8 = vld [vmem:[#allocation3] sm:$0xff]  ;;  %v5051_v6 = vor.u32 %v5957_v63, %v5048_v3 }
 0x359   :  { %v6041_v9 = vld [vmem:[#allocation2 + $0x9dc] sm:$0xf0]  ;;  %818 = vst [vmem:[#allocation1] ss:$4 sm:$0xff] %v814_v8  ;;  %3297 = vmatpush.bf16.msrb.mxu3 %v4631_v17  ;;  %v5949_v14 = vld [vmem:[#allocation2 + $0x704] sm:$0xf] }
 0x35a   :  { %v5622_v10 = vld [vmem:[#allocation2 + $0xbc0] sm:$0xf]  ;;  %v5367_v18 = vor.u32 %v6041_v9, %v5366_v7  ;;  %3396 = vmatpush.bf16.msrb.mxu0 %v5051_v6  ;;  %v5909_v3 = vld [vmem:[#allocation2 + $0x5c4] sm:$0xf] }
 0x35b   :  { %v6105_v11 = vld [vmem:[#allocation2 + $0xbdc] sm:$0xf0]  ;;  %v4856_v6 = vld [vmem:[#allocation2 + $0x5e0] sm:$0xf0] }
 0x35c   :  { %v4118_v12 = vld [vmem:[#allocation2] sm:$0xf]  ;;  %v5623_v19 = vor.u32 %v6105_v11, %v5622_v10  ;;  %3316 = vmatpush.bf16.msra.mxu2 %v5367_v18 }
 0x35d   :  { %v5729_v13 = vld [vmem:[#allocation2 + $0x1c] sm:$0xf0] }
 0x35e   :  { %v5110_v15 = vld [vmem:[#allocation2 + $0x7c0] sm:$0xf]  ;;  %v4119_v20 = vor.u32 %v5729_v13, %v4118_v12  ;;  %3329 = vmatpush.bf16.msra.mxu3 %v5623_v19 }
 0x35f   :  { %v5977_v16 = vld [vmem:[#allocation2 + $0x7dc] sm:$0xf0] }
 0x360   :  { %v5334_v21 = vld [vmem:[#allocation2 + $0x980] sm:$0xf]  ;;  %v5111_v23 = vor.u32 %v5977_v16, %v5110_v15  ;;  %v823_v31 = vld.sshfl [vmem:[#allocation1 + $0x10] sm:$0xff pattern:$0x73625140]  ;;  %3271 = vmatpush.bf16.msrb.mxu1 %v4119_v20 }
 0x361   :  { %v6033_v22 = vld [vmem:[#allocation2 + $0x99c] sm:$0xf0]  ;;  %v6631_v30 = vpack.c.bf16 %v823_v31, %v823_v31  ;;  %v821_v36 = vld.sshfl [vmem:[#allocation1] sm:$0xff pattern:$0x73625140] }
 0x362   :  { %v5590_v24 = vld [vmem:[#allocation2 + $0xb80] sm:$0xf]  ;;  %v5335_v29 = vor.u32 %v6033_v22, %v5334_v21  ;;  %v6635_v42 = vpack.c.bf16 %v821_v36, %v821_v36  ;;  %v5016_v15 = vld [vmem:[#allocation2 + $0x720] sm:$0xf0] }
 0x363   :  { %v6097_v25 = vld [vmem:[#allocation2 + $0xb9c] sm:$0xf0]  ;;  %3298 = vmatmul.bf16.vlgmr.msrb.gmra.mxu3 %v6631_v30  ;;  %v5019_v18 = vor.u32 %v5949_v14, %v5016_v15  ;;  %v5941_v20 = vld [vmem:[#allocation2 + $0x6c4] sm:$0xf] }
 0x364   :  { %v5078_v26 = vld [vmem:[#allocation2 + $0x780] sm:$0xf]  ;;  %v5591_v33 = vor.u32 %v6097_v25, %v5590_v24  ;;  %3303 = vmatpush.bf16.msra.mxu1 %v5111_v23  ;;  %3317 = vmatpush.bf16.msra.mxu2 %v5335_v29  ;;  %v4984_v24 = vld [vmem:[#allocation2 + $0x6e0] sm:$0xf0] }
 0x365   :  { %v5969_v27 = vld [vmem:[#allocation2 + $0x79c] sm:$0xf0]  ;;  %3272 = vmatmul.bf16.vlgmr.msrb.gmra.mxu1 %v6635_v42  ;;  %3397 = vmatpush.bf16.msrb.mxu0 %v5019_v18  ;;  %v4987_v29 = vor.u32 %v5941_v20, %v4984_v24  ;;  %v824_v63 = vld.sshfl [vmem:[#allocation1 + $0x18] sm:$0xff pattern:$0x73625140] }
 0x366   :  { %v5302_v28 = vld [vmem:[#allocation2 + $0x940] sm:$0xf]  ;;  %v5079_v37 = vor.u32 %v5969_v27, %v5078_v26  ;;  %3330 = vmatpush.bf16.msra.mxu3 %v5591_v33  ;;  %v4888_v14 = vld [vmem:[#allocation2 + $0x620] sm:$0xf0]  ;;  %v5786_v18 = vld [vmem:[#allocation2 + $0x1e4] sm:$0xf0] }
 0x367   :  { %v822_v32 = vld.sshfl [vmem:[#allocation1 + $0x8] sm:$0xff pattern:$0x73625140] }
 0x368   :  { %v6025_v34 = vld [vmem:[#allocation2 + $0x95c] sm:$0xf0]  ;;  %v6633_v35 = vpack.c.bf16 %v822_v32, %v822_v32  ;;  %3304 = vmatpush.bf16.msra.mxu1 %v5079_v37  ;;  %v5933_v37 = vld [vmem:[#allocation2 + $0x684] sm:$0xf] }
 0x369   :  { %v5558_v38 = vld [vmem:[#allocation2 + $0xb40] sm:$0xf]  ;;  %v5303_v45 = vor.u32 %v6025_v34, %v5302_v28  ;;  %3398 = vmatpush.bf16.msrb.mxu0 %v4987_v29  ;;  %v4280_v24 = vld [vmem:[#allocation2 + $0x160] sm:$0xf0] }
 0x36a   :  { %v6089_v39 = vld [vmem:[#allocation2 + $0xb5c] sm:$0xf0]  ;;  %3285 = vmatmul.bf16.vlgmr.msrb.gmra.mxu2 %v6633_v35  ;;  %v4504_v29 = vld [vmem:[#allocation2 + $0x320] sm:$0xf0] }
 0x36b   :  { %v5046_v41 = vld [vmem:[#allocation2 + $0x740] sm:$0xf]  ;;  %v5559_v48 = vor.u32 %v6089_v39, %v5558_v38  ;;  %3318 = vmatpush.bf16.msra.mxu2 %v5303_v45  ;;  %v4952_v38 = vld [vmem:[#allocation2 + $0x6a0] sm:$0xf0] }
 0x36c   :  { %v5961_v43 = vld [vmem:[#allocation2 + $0x75c] sm:$0xf0]  ;;  %v5845_v45 = vld [vmem:[#allocation2 + $0x3c4] sm:$0xf] }
 0x36d   :  { %v5270_v50 = vld [vmem:[#allocation2 + $0x900] sm:$0xf]  ;;  %v5047_v51 = vor.u32 %v5961_v43, %v5046_v41  ;;  %3331 = vmatpush.bf16.msra.mxu3 %v5559_v48  ;;  %v4955_v48 = vor.u32 %v5933_v37, %v4952_v38  ;;  %v4603_v56 = vor.u32 %v5845_v45, %v4600_v46  ;;  %v4792_v37 = vld [vmem:[#allocation2 + $0x560] sm:$0xf0]  ;;  %v4286_v45 = vld [vmem:[#allocation2 + $0x148] sm:$0xf] }
 0x36e   :  { %v6017_v49 = vld [vmem:[#allocation2 + $0x91c] sm:$0xf0]  ;;  %v5757_v38 = vld [vmem:[#allocation2 + $0x104] sm:$0xf]  ;;  %v5770_v46 = vld [vmem:[#allocation2 + $0x164] sm:$0xf0] }
 0x36f   :  { %v5526_v52 = vld [vmem:[#allocation2 + $0xb00] sm:$0xf]  ;;  %v5271_v58 = vor.u32 %v6017_v49, %v5270_v50  ;;  %3305 = vmatpush.bf16.msra.mxu1 %v5047_v51  ;;  %v5781_v49 = vld [vmem:[#allocation2 + $0x1c4] sm:$0xf]  ;;  %3399 = vmatpush.bf16.msrb.mxu0 %v4955_v48 }
 0x370   :  { %v6081_v53 = vld [vmem:[#allocation2 + $0xb1c] sm:$0xf0]  ;;  %v4344_v51 = vld [vmem:[#allocation2 + $0x1e0] sm:$0xf0] }
 0x371   :  { %v5014_v54 = vld [vmem:[#allocation2 + $0x700] sm:$0xf]  ;;  %v5527_v60 = vor.u32 %v6081_v53, %v5526_v52  ;;  %3319 = vmatpush.bf16.msra.mxu2 %v5271_v58  ;;  %v5925_v58 = vld [vmem:[#allocation2 + $0x644] sm:$0xf] }
 0x372   :  { %v5953_v55 = vld [vmem:[#allocation2 + $0x71c] sm:$0xf0] }
 0x373   :  { %v5238_v61 = vld [vmem:[#allocation2 + $0x8c0] sm:$0xf]  ;;  %v5015_v0 = vor.u32 %v5953_v55, %v5014_v54  ;;  %3332 = vmatpush.bf16.msra.mxu3 %v5527_v60  ;;  %v825_v54 = vld.sshfl [vmem:[#allocation1 + $0x20] sm:$0xff pattern:$0x73625140] }
 0x374   :  { %v6009_v62 = vld [vmem:[#allocation2 + $0x8dc] sm:$0xf0] }
 0x375   :  { %v5494_v1 = vld [vmem:[#allocation2 + $0xac0] sm:$0xf]  ;;  %v5239_v7 = vor.u32 %v6009_v62, %v5238_v61  ;;  %3306 = vmatpush.bf16.msra.mxu1 %v5015_v0  ;;  %v4568_v62 = vld [vmem:[#allocation2 + $0x3a0] sm:$0xf0]  ;;  %v4347_v0 = vor.u32 %v5781_v49, %v4344_v51 }
 0x376   :  { %v6073_v2 = vld [vmem:[#allocation2 + $0xadc] sm:$0xf0]  ;;  %v4760_v49 = vld [vmem:[#allocation2 + $0x520] sm:$0xf0] }
 0x377   :  { %v4982_v4 = vld [vmem:[#allocation2 + $0x6c0] sm:$0xf]  ;;  %v5495_v8 = vor.u32 %v6073_v2, %v5494_v1  ;;  %3320 = vmatpush.bf16.msra.mxu2 %v5239_v7  ;;  %v5773_v7 = vld [vmem:[#allocation2 + $0x184] sm:$0xf] }
 0x378   :  { %v5945_v5 = vld [vmem:[#allocation2 + $0x6dc] sm:$0xf0]  ;;  %v5749_v51 = vld [vmem:[#allocation2 + $0xc4] sm:$0xf] }
 0x379   :  { %v5206_v9 = vld [vmem:[#allocation2 + $0x880] sm:$0xf]  ;;  %v4983_v12 = vor.u32 %v5945_v5, %v4982_v4  ;;  %3333 = vmatpush.bf16.msra.mxu3 %v5495_v8  ;;  %v6640_v4 = vpack.c.bf16 %v825_v54, %v825_v54  ;;  %v4312_v8 = vld [vmem:[#allocation2 + $0x1a0] sm:$0xf0] }
 0x37a   :  { %v6001_v10 = vld [vmem:[#allocation2 + $0x89c] sm:$0xf0]  ;;  %v4315_v20 = vor.u32 %v5773_v7, %v4312_v8  ;;  %v827_v54 = vld.sshfl [vmem:[#allocation1 + $0x30] sm:$0xff pattern:$0x73625140] }
 0x37b   :  { %v5462_v11 = vld [vmem:[#allocation2 + $0xa80] sm:$0xf]  ;;  %v5207_v19 = vor.u32 %v6001_v10, %v5206_v9  ;;  %3307 = vmatpush.bf16.msra.mxu1 %v4983_v12  ;;  %v4923_v9 = vor.u32 %v5925_v58, %v4920_v59  ;;  %v4571_v10 = vor.u32 %v5837_v57, %v4568_v62  ;;  %v6644_v12 = vpack.c.bf16 %v824_v63, %v824_v63  ;;  %v4440_v57 = vld [vmem:[#allocation2 + $0x2a0] sm:$0xf0]  ;;  %v4254_v58 = vld [vmem:[#allocation2 + $0x108] sm:$0xf] }
 0x37c   :  { %v6065_v13 = vld [vmem:[#allocation2 + $0xa9c] sm:$0xf0]  ;;  %v5762_v59 = vld [vmem:[#allocation2 + $0x124] sm:$0xf0]  ;;  %v5877_v62 = vld [vmem:[#allocation2 + $0x4c4] sm:$0xf]  ;;  %v6650_v63 = vpack.c.bf16 %v827_v54, %v827_v54 }
 0x37d   :  { %v4950_v16 = vld [vmem:[#allocation2 + $0x680] sm:$0xf]  ;;  %v5463_v21 = vor.u32 %v6065_v13, %v5462_v11  ;;  %3321 = vmatpush.bf16.msra.mxu2 %v5207_v19  ;;  %v5829_v11 = vld [vmem:[#allocation2 + $0x344] sm:$0xf]  ;;  %v4859_v19 = vor.u32 %v5909_v3, %v4856_v6  ;;  %3400 = vmatpush.bf16.msrb.mxu0 %v4923_v9  ;;  %v4255_v7 = vor.u32 %v5762_v59, %v4254_v58  ;;  %v4222_v9 = vld [vmem:[#allocation2 + $0xc8] sm:$0xf] }
 0x37e   :  { %v5937_v17 = vld [vmem:[#allocation2 + $0x69c] sm:$0xf0]  ;;  %v5917_v13 = vld [vmem:[#allocation2 + $0x604] sm:$0xf] }
 0x37f   :  { %v5174_v22 = vld [vmem:[#allocation2 + $0x840] sm:$0xf]  ;;  %v4951_v25 = vor.u32 %v5937_v17, %v4950_v16  ;;  %3334 = vmatpush.bf16.msra.mxu3 %v5463_v21  ;;  %v4536_v16 = vld [vmem:[#allocation2 + $0x360] sm:$0xf0]  ;;  %v4350_v17 = vld [vmem:[#allocation2 + $0x1c8] sm:$0xf] }
 0x380   :  { %v5993_v23 = vld [vmem:[#allocation2 + $0x85c] sm:$0xf0]  ;;  %v5901_v21 = vld [vmem:[#allocation2 + $0x584] sm:$0xf] }
 0x381   :  { %v5430_v26 = vld [vmem:[#allocation2 + $0xa40] sm:$0xf]  ;;  %v5175_v34 = vor.u32 %v5993_v23, %v5174_v22  ;;  %3308 = vmatpush.bf16.msra.mxu1 %v4951_v25  ;;  %v4824_v22 = vld [vmem:[#allocation2 + $0x5a0] sm:$0xf0]  ;;  %v4891_v25 = vor.u32 %v5917_v13, %v4888_v14 }
 0x382   :  { %v6057_v27 = vld [vmem:[#allocation2 + $0xa5c] sm:$0xf0]  ;;  %v5765_v23 = vld [vmem:[#allocation2 + $0x144] sm:$0xf] }
 0x383   :  { %v4918_v28 = vld [vmem:[#allocation2 + $0x640] sm:$0xf]  ;;  %v5431_v39 = vor.u32 %v6057_v27, %v5430_v26  ;;  %3322 = vmatpush.bf16.msra.mxu2 %v5175_v34  ;;  %v4539_v26 = vor.u32 %v5829_v11, %v4536_v16  ;;  %v5821_v27 = vld [vmem:[#allocation2 + $0x304] sm:$0xf]  ;;  %v4283_v34 = vor.u32 %v5765_v23, %v4280_v24  ;;  %3401 = vmatpush.bf16.msrb.mxu0 %v4891_v25  ;;  %v5746_v23 = vld [vmem:[#allocation2 + $0xa4] sm:$0xf0] }
 0x384   :  { %v5929_v31 = vld [vmem:[#allocation2 + $0x65c] sm:$0xf0]  ;;  %v5797_v6 = vld [vmem:[#allocation2 + $0x244] sm:$0xf] }
 0x385   :  { %v5142_v32 = vld [vmem:[#allocation2 + $0x800] sm:$0xf]  ;;  %v4919_v44 = vor.u32 %v5929_v31, %v4918_v28  ;;  %3335 = vmatpush.bf16.msra.mxu3 %v5431_v39  ;;  %v4351_v28 = vor.u32 %v5786_v18, %v4350_v17  ;;  %v4318_v31 = vld [vmem:[#allocation2 + $0x188] sm:$0xf]  ;;  %v4248_v39 = vld [vmem:[#allocation2 + $0x120] sm:$0xf0] }
 0x386   :  { %v5985_v33 = vld [vmem:[#allocation2 + $0x81c] sm:$0xf0]  ;;  %v4251_v48 = vor.u32 %v5757_v38, %v4248_v39  ;;  %3402 = vmatmul.bf16.vlgmr.msrb.gmra.mxu0 %v6644_v12  ;;  %v4408_v8 = vld [vmem:[#allocation2 + $0x260] sm:$0xf0]  ;;  %v4158_v39 = vld [vmem:[#allocation2 + $0x48] sm:$0xf] }
 0x387   :  { %v5398_v36 = vld [vmem:[#allocation2 + $0xa00] sm:$0xf]  ;;  %v5143_v52 = vor.u32 %v5985_v33, %v5142_v32  ;;  %3309 = vmatpush.bf16.msra.mxu1 %v4919_v44  ;;  %v5778_v32 = vld [vmem:[#allocation2 + $0x1a4] sm:$0xf0]  ;;  %v4827_v33 = vor.u32 %v5901_v21, %v4824_v22  ;;  %3446 = vmatpush.bf16.msra.mxu0 %v4351_v28  ;;  %v4472_v44 = vld [vmem:[#allocation2 + $0x2e0] sm:$0xf0]  ;;  %v4411_v18 = vor.u32 %v5797_v6, %v4408_v8 }
 0x388   :  { %v6049_v41 = vld [vmem:[#allocation2 + $0xa1c] sm:$0xf0]  ;;  %v5869_v14 = vld [vmem:[#allocation2 + $0x484] sm:$0xf]  ;;  %v4190_v22 = vld [vmem:[#allocation2 + $0x88] sm:$0xf] }
 0x389   :  { %v5686_v43 = vld [vmem:[#allocation2 + $0xc40] sm:$0xf]  ;;  %v5399_v55 = vor.u32 %v6049_v41, %v5398_v36  ;;  %3323 = vmatpush.bf16.msra.mxu2 %v5143_v52  ;;  %v5893_v36 = vld [vmem:[#allocation2 + $0x544] sm:$0xf]  ;;  %v4507_v41 = vor.u32 %v5821_v27, %v4504_v29 }
 0x38a   :  { %v6121_v40 = vld [vmem:[#allocation2 + $0xc5c] sm:$0xf0]  ;;  %v4216_v52 = vld [vmem:[#allocation2 + $0xe0] sm:$0xf0] }
 0x38b   :  { %v4886_v47 = vld [vmem:[#allocation2 + $0x600] sm:$0xf]  ;;  %v5687_v60 = vor.u32 %v6121_v40, %v5686_v43  ;;  %3336 = vmatpush.bf16.msra.mxu3 %v5399_v55  ;;  %v5813_v43 = vld [vmem:[#allocation2 + $0x2c4] sm:$0xf]  ;;  %v4319_v40 = vor.u32 %v5778_v32, %v4318_v31 }
 0x38c   :  { %v5921_v50 = vld [vmem:[#allocation2 + $0x61c] sm:$0xf0]  ;;  %3324 = vmatmul.bf16.vlgmr.msra.gmra.mxu2 %v6640_v4  ;;  %v5805_v55 = vld [vmem:[#allocation2 + $0x284] sm:$0xf] }
 0x38d   :  { %v826_v53 = vld.sshfl [vmem:[#allocation1 + $0x28] sm:$0xff pattern:$0x73625140]  ;;  %v4887_v61 = vor.u32 %v5921_v50, %v4886_v47  ;;  %3368 = vmatpush.bf16.msrb.mxu2 %v4603_v56  ;;  %v4795_v47 = vor.u32 %v5893_v36, %v4792_v37  ;;  %3447 = vmatpush.bf16.msra.mxu0 %v4319_v40  ;;  %v4287_v56 = vor.u32 %v5770_v46, %v4286_v45 }
 0x38e   :  { %v5654_v1 = vld [vmem:[#allocation2 + $0xc00] sm:$0xf]  ;;  %v6642_v5 = vpack.c.bf16 %v826_v53, %v826_v53  ;;  %v5885_v50 = vld [vmem:[#allocation2 + $0x504] sm:$0xf]  ;;  %v4475_v53 = vor.u32 %v5813_v43, %v4472_v44  ;;  %v4443_v3 = vor.u32 %v5805_v55, %v4440_v57  ;;  %v4191_v37 = vor.u32 %v5746_v23, %v4190_v22  ;;  %v4126_v55 = vld [vmem:[#allocation2 + $0x8] sm:$0xf] }
 0x38f   :  { %v6113_v2 = vld [vmem:[#allocation2 + $0xc1c] sm:$0xf0]  ;;  %3348 = vmatpush.bf16.msrb.mxu3 %v5687_v60  ;;  %3310 = vmatpush.bf16.msra.mxu1 %v4887_v61  ;;  %v4763_v60 = vor.u32 %v5885_v50, %v4760_v49  ;;  %v4219_v61 = vor.u32 %v5749_v51, %v4216_v52  ;;  %v5733_v16 = vld [vmem:[#allocation2 + $0x44] sm:$0xf]  ;;  %v4574_v23 = vld [vmem:[#allocation2 + $0x388] sm:$0xf] }
 0x390   :  { %v5655_v15 = vor.u32 %v6113_v2, %v5654_v1  ;;  %3337 = vmatmul.bf16.vlgmr.msra.gmra.mxu3 %v6642_v5  ;;  %v5741_v1 = vld [vmem:[#allocation2 + $0x84] sm:$0xf] }
 0x391   :  { %3369 = vmatpush.bf16.msrb.mxu2 %v4571_v10  ;;  %v4184_v2 = vld [vmem:[#allocation2 + $0xa0] sm:$0xf0]  ;;  %3448 = vmatpush.bf16.msra.mxu0 %v4287_v56  ;;  %v5754_v10 = vld [vmem:[#allocation2 + $0xe4] sm:$0xf0] }
 0x392   :  { %3311 = vmatmul.bf16.vlgmr.msra.gmra.mxu1 %v6644_v12  ;;  %v4187_v13 = vor.u32 %v5741_v1, %v4184_v2  ;;  %v4152_v17 = vld [vmem:[#allocation2 + $0x60] sm:$0xf0]  ;;  %v5730_v56 = vld [vmem:[#allocation2 + $0x24] sm:$0xf0] }
 0x393   :  { %3355 = vmatpush.bf16.msrb.mxu1 %v4347_v0  ;;  %3349 = vmatpush.bf16.msrb.mxu3 %v5655_v15  ;;  %v4728_v0 = vld [vmem:[#allocation2 + $0x4e0] sm:$0xf0]  ;;  %v4155_v25 = vor.u32 %v5733_v16, %v4152_v17  ;;  %v6042_v1 = vld [vmem:[#allocation2 + $0x9e4] sm:$0xf0] }
 0x394   :  { %v4731_v11 = vor.u32 %v5877_v62, %v4728_v0  ;;  %v4696_v15 = vld [vmem:[#allocation2 + $0x4a0] sm:$0xf0]  ;;  %v5374_v0 = vld [vmem:[#allocation2 + $0x9c8] sm:$0xf] }
 0x395   :  { %3370 = vmatpush.bf16.msrb.mxu2 %v4539_v26  ;;  %3449 = vmatpush.bf16.msra.mxu0 %v4255_v7  ;;  %v4376_v21 = vld [vmem:[#allocation2 + $0x220] sm:$0xf0]  ;;  %v4699_v24 = vor.u32 %v5869_v14, %v4696_v15  ;;  %v4127_v7 = vor.u32 %v5730_v56, %v4126_v55  ;;  %v5375_v14 = vor.u32 %v6042_v1, %v5374_v0  ;;  %v5342_v17 = vld [vmem:[#allocation2 + $0x988] sm:$0xf] }
 0x396   :  { %v5861_v26 = vld [vmem:[#allocation2 + $0x444] sm:$0xf]  ;;  %v5246_v56 = vld [vmem:[#allocation2 + $0x8c8] sm:$0xf] }
 0x397   :  { %3381 = vmatpush.bf16.msra.mxu3 %v4859_v19  ;;  %3356 = vmatpush.bf16.msrb.mxu1 %v4315_v20  ;;  %v5789_v19 = vld [vmem:[#allocation2 + $0x204] sm:$0xf]  ;;  %v4223_v20 = vor.u32 %v5754_v10, %v4222_v9  ;;  %v4606_v9 = vld [vmem:[#allocation2 + $0x3c8] sm:$0xf] }
 0x398   :  { %v6101_v27 = vld [vmem:[#allocation2 + $0xbc4] sm:$0xf]  ;;  %v5850_v10 = vld [vmem:[#allocation2 + $0x3e4] sm:$0xf0] }
 0x399   :  { %3371 = vmatpush.bf16.msrb.mxu2 %v4507_v41  ;;  %v5624_v28 = vld [vmem:[#allocation2 + $0xbe0] sm:$0xf0]  ;;  %3450 = vmatpush.bf16.msra.mxu0 %v4223_v20  ;;  %v5738_v41 = vld [vmem:[#allocation2 + $0x64] sm:$0xf0] }
 0x39a   :  { %v4664_v29 = vld [vmem:[#allocation2 + $0x460] sm:$0xf0]  ;;  %v5627_v38 = vor.u32 %v6101_v27, %v5624_v28  ;;  %v5818_v0 = vld [vmem:[#allocation2 + $0x2e4] sm:$0xf0] }
 0x39b   :  { %3382 = vmatpush.bf16.msra.mxu3 %v4827_v33  ;;  %3357 = vmatpush.bf16.msrb.mxu1 %v4283_v34  ;;  %v5725_v31 = vld [vmem:[#allocation2 + $0x4] sm:$0xf]  ;;  %v4379_v33 = vor.u32 %v5789_v19, %v4376_v21  ;;  %v4667_v43 = vor.u32 %v5861_v26, %v4664_v29  ;;  %v4607_v19 = vor.u32 %v5850_v10, %v4606_v9  ;;  %v5310_v29 = vld [vmem:[#allocation2 + $0x948] sm:$0xf] }
 0x39c   :  { %v4120_v32 = vld [vmem:[#allocation2 + $0x20] sm:$0xf0]  ;;  %v5214_v9 = vld [vmem:[#allocation2 + $0x888] sm:$0xf] }
 0x39d   :  { %3372 = vmatpush.bf16.msrb.mxu2 %v4475_v53  ;;  %v6037_v34 = vld [vmem:[#allocation2 + $0x9c4] sm:$0xf]  ;;  %v4123_v40 = vor.u32 %v5725_v31, %v4120_v32  ;;  %3451 = vmatpush.bf16.msra.mxu0 %v4191_v37  ;;  %v4159_v53 = vor.u32 %v5738_v41, %v4158_v39  ;;  %v6026_v31 = vld [vmem:[#allocation2 + $0x964] sm:$0xf0] }
 0x39e   :  { %v5368_v36 = vld [vmem:[#allocation2 + $0x9e0] sm:$0xf0]  ;;  %v4542_v37 = vld [vmem:[#allocation2 + $0x348] sm:$0xf] }
 0x39f   :  { %3383 = vmatpush.bf16.msra.mxu3 %v4795_v47  ;;  %3358 = vmatpush.bf16.msrb.mxu1 %v4251_v48  ;;  %v6093_v44 = vld [vmem:[#allocation2 + $0xb84] sm:$0xf]  ;;  %v5371_v46 = vor.u32 %v6037_v34, %v5368_v36  ;;  %v6002_v10 = vld [vmem:[#allocation2 + $0x8a4] sm:$0xf0] }
 0x3a0   :  { %5716 = vmatmul.msk.bf16.vlgmr.msrb.gmra.mxu3 %vm3260_vm7, %v6650_v63  ;;  %v5592_v45 = vld [vmem:[#allocation2 + $0xba0] sm:$0xf0] }
 0x3a1   :  { %3373 = vmatpush.bf16.msrb.mxu2 %v4443_v3  ;;  %v5853_v47 = vld [vmem:[#allocation2 + $0x404] sm:$0xf]  ;;  %v5595_v54 = vor.u32 %v6093_v44, %v5592_v45  ;;  %3452 = vmatpush.bf16.msra.mxu0 %v4159_v53  ;;  %v5278_v44 = vld [vmem:[#allocation2 + $0x908] sm:$0xf] }
 0x3a2   :  { %v4632_v48 = vld [vmem:[#allocation2 + $0x420] sm:$0xf0]  ;;  %v6018_v45 = vld [vmem:[#allocation2 + $0x924] sm:$0xf0] }
 0x3a3   :  { %3384 = vmatpush.bf16.msra.mxu3 %v4763_v60  ;;  %3359 = vmatpush.bf16.msrb.mxu1 %v4219_v61  ;;  %v6117_v50 = vld [vmem:[#allocation2 + $0xc44] sm:$0xf]  ;;  %v4635_v57 = vor.u32 %v5853_v47, %v4632_v48 }
 0x3a4   :  { %v5688_v49 = vld [vmem:[#allocation2 + $0xc60] sm:$0xf0] }
 0x3a5   :  { %3374 = vmatpush.bf16.msrb.mxu2 %v4411_v18  ;;  %v6029_v51 = vld [vmem:[#allocation2 + $0x984] sm:$0xf]  ;;  %v5691_v60 = vor.u32 %v6117_v50, %v5688_v49  ;;  %v6034_v18 = vld [vmem:[#allocation2 + $0x9a4] sm:$0xf0]  ;;  %3453 = vmatpush.bf16.msra.mxu0 %v4127_v7 }
 0x3a6   :  { %v5336_v52 = vld [vmem:[#allocation2 + $0x9a0] sm:$0xf0]  ;;  %v5343_v27 = vor.u32 %v6034_v18, %v5342_v17  ;;  %v4510_v49 = vld [vmem:[#allocation2 + $0x308] sm:$0xf] }
 0x3a7   :  { %3385 = vmatpush.bf16.msra.mxu3 %v4731_v11  ;;  %3360 = vmatpush.bf16.msrb.mxu1 %v4187_v13  ;;  %v6085_v58 = vld [vmem:[#allocation2 + $0xb44] sm:$0xf]  ;;  %v5339_v61 = vor.u32 %v6029_v51, %v5336_v52  ;;  %v5826_v51 = vld [vmem:[#allocation2 + $0x324] sm:$0xf0] }
 0x3a8   :  { %v5560_v59 = vld [vmem:[#allocation2 + $0xb60] sm:$0xf0]  ;;  %3454 = vmatmul.bf16.vlgmr.msra.gmra.mxu0 %v6635_v42  ;;  %v5810_v17 = vld [vmem:[#allocation2 + $0x2a4] sm:$0xf0] }
 0x3a9   :  { %3375 = vmatpush.bf16.msrb.mxu2 %v4379_v33  ;;  %v6109_v62 = vld [vmem:[#allocation2 + $0xc04] sm:$0xf]  ;;  %v5563_v8 = vor.u32 %v6085_v58, %v5560_v59  ;;  %3498 = vmatpush.bf16.msrb.mxu0 %v5375_v14  ;;  %v4511_v58 = vor.u32 %v5826_v51, %v4510_v49  ;;  %v5898_v49 = vld [vmem:[#allocation2 + $0x564] sm:$0xf0] }
 0x3aa   :  { %v5656_v2 = vld [vmem:[#allocation2 + $0xc20] sm:$0xf0]  ;;  %v5630_v51 = vld [vmem:[#allocation2 + $0xbc8] sm:$0xf] }
 0x3ab   :  { %3386 = vmatpush.bf16.msra.mxu3 %v4699_v24  ;;  %3361 = vmatpush.bf16.msrb.mxu1 %v4155_v25  ;;  %v6021_v3 = vld [vmem:[#allocation2 + $0x944] sm:$0xf]  ;;  %v5659_v15 = vor.u32 %v6109_v62, %v5656_v2  ;;  %v5842_v24 = vld [vmem:[#allocation2 + $0x3a4] sm:$0xf0] }
 0x3ac   :  { %3376 = vmatmul.bf16.vlgmr.msrb.gmra.mxu2 %v6633_v35  ;;  %v5304_v6 = vld [vmem:[#allocation2 + $0x960] sm:$0xf0]  ;;  %v4575_v32 = vor.u32 %v5842_v24, %v4574_v23  ;;  %v4478_v62 = vld [vmem:[#allocation2 + $0x2c8] sm:$0xf] }
 0x3ad   :  { %3420 = vmatpush.bf16.msra.mxu2 %v5627_v38  ;;  %v6077_v11 = vld [vmem:[#allocation2 + $0xb04] sm:$0xf]  ;;  %v5307_v16 = vor.u32 %v6021_v3, %v5304_v6  ;;  %v5834_v38 = vld [vmem:[#allocation2 + $0x364] sm:$0xf0]  ;;  %3499 = vmatpush.bf16.msrb.mxu0 %v5343_v27 }
 0x3ae   :  { %v5528_v13 = vld [vmem:[#allocation2 + $0xb20] sm:$0xf0]  ;;  %v5118_v3 = vld [vmem:[#allocation2 + $0x7c8] sm:$0xf] }
 0x3af   :  { %3387 = vmatpush.bf16.msra.mxu3 %v4667_v43  ;;  %3362 = vmatpush.bf16.msrb.mxu1 %v4123_v40  ;;  %v6013_v20 = vld [vmem:[#allocation2 + $0x904] sm:$0xf]  ;;  %v5531_v22 = vor.u32 %v6077_v11, %v5528_v13  ;;  %v5311_v43 = vor.u32 %v6026_v31, %v5310_v29  ;;  %v4479_v11 = vor.u32 %v5818_v0, %v4478_v62  ;;  %v5086_v23 = vld [vmem:[#allocation2 + $0x788] sm:$0xf]  ;;  %v4576_v62 = vld [vmem:[#allocation2 + $0x3a8] sm:$0xf0] }
 0x3b0   :  { %v5272_v21 = vld [vmem:[#allocation2 + $0x920] sm:$0xf0]  ;;  %v5970_v24 = vld [vmem:[#allocation2 + $0x7a4] sm:$0xf0] }
 0x3b1   :  { %3421 = vmatpush.bf16.msra.mxu2 %v5595_v54  ;;  %v6069_v25 = vld [vmem:[#allocation2 + $0xac4] sm:$0xf]  ;;  %v5275_v28 = vor.u32 %v6013_v20, %v5272_v21  ;;  %3500 = vmatpush.bf16.msrb.mxu0 %v5311_v43  ;;  %v5279_v54 = vor.u32 %v6018_v45, %v5278_v44  ;;  %v5914_v20 = vld [vmem:[#allocation2 + $0x5e4] sm:$0xf0]  ;;  %v5215_v21 = vor.u32 %v6002_v10, %v5214_v9 }
 0x3b2   :  { %3363 = vmatmul.bf16.vlgmr.msrb.gmra.mxu1 %v6635_v42  ;;  %v5496_v26 = vld [vmem:[#allocation2 + $0xae0] sm:$0xf0]  ;;  %v5994_v27 = vld [vmem:[#allocation2 + $0x864] sm:$0xf0] }
 0x3b3   :  { %3407 = vmatpush.bf16.msra.mxu1 %v5371_v46  ;;  %3388 = vmatpush.bf16.msra.mxu3 %v4635_v57  ;;  %v6005_v33 = vld [vmem:[#allocation2 + $0x8c4] sm:$0xf]  ;;  %v5499_v36 = vor.u32 %v6069_v25, %v5496_v26  ;;  %v4543_v46 = vor.u32 %v5834_v38, %v4542_v37  ;;  %v6010_v57 = vld [vmem:[#allocation2 + $0x8e4] sm:$0xf0] }
 0x3b4   :  { %v5240_v34 = vld [vmem:[#allocation2 + $0x8e0] sm:$0xf0]  ;;  %v5247_v6 = vor.u32 %v6010_v57, %v5246_v56  ;;  %v5182_v26 = vld [vmem:[#allocation2 + $0x848] sm:$0xf] }
 0x3b5   :  { %3422 = vmatpush.bf16.msra.mxu2 %v5563_v8  ;;  %v6061_v39 = vld [vmem:[#allocation2 + $0xa84] sm:$0xf]  ;;  %v5243_v40 = vor.u32 %v6005_v33, %v5240_v34  ;;  %3501 = vmatpush.bf16.msrb.mxu0 %v5279_v54  ;;  %v5978_v8 = vld [vmem:[#allocation2 + $0x7e4] sm:$0xf0] }
 0x3b6   :  { %3389 = vmatmul.bf16.vlgmr.msra.gmra.mxu3 %v6631_v30  ;;  %v5464_v41 = vld [vmem:[#allocation2 + $0xaa0] sm:$0xf0]  ;;  %v5119_v18 = vor.u32 %v5978_v8, %v5118_v3  ;;  %v4414_v29 = vld [vmem:[#allocation2 + $0x248] sm:$0xf] }
 0x3b7   :  { %3439 = vmatpush.bf16.msrb.mxu3 %v5691_v60  ;;  %3408 = vmatpush.bf16.msra.mxu1 %v5339_v61  ;;  %v5997_v47 = vld [vmem:[#allocation2 + $0x884] sm:$0xf]  ;;  %v5467_v50 = vor.u32 %v6061_v39, %v5464_v41  ;;  %v5802_v31 = vld [vmem:[#allocation2 + $0x264] sm:$0xf0]  ;;  %v5183_v39 = vor.u32 %v5994_v27, %v5182_v26  ;;  %v4512_v26 = vld [vmem:[#allocation2 + $0x328] sm:$0xf0] }
 0x3b8   :  { %v5208_v48 = vld [vmem:[#allocation2 + $0x8a0] sm:$0xf0]  ;;  %v4830_v33 = vld [vmem:[#allocation2 + $0x588] sm:$0xf]  ;;  %v4415_v41 = vor.u32 %v5802_v31, %v4414_v29 }
 0x3b9   :  { %3423 = vmatpush.bf16.msra.mxu2 %v5531_v22  ;;  %v6053_v52 = vld [vmem:[#allocation2 + $0xa44] sm:$0xf]  ;;  %v5211_v55 = vor.u32 %v5997_v47, %v5208_v48  ;;  %3502 = vmatpush.bf16.msrb.mxu0 %v5247_v6  ;;  %v5906_v34 = vld [vmem:[#allocation2 + $0x5a4] sm:$0xf0]  ;;  %v5846_v47 = vld [vmem:[#allocation2 + $0x3cc] sm:$0xf] }
 0x3ba   :  { %v5432_v53 = vld [vmem:[#allocation2 + $0xa60] sm:$0xf0]  ;;  %v5962_v37 = vld [vmem:[#allocation2 + $0x764] sm:$0xf0]  ;;  %v4831_v45 = vor.u32 %v5906_v34, %v4830_v33  ;;  %v4608_v48 = vld [vmem:[#allocation2 + $0x3e8] sm:$0xf0] }
 0x3bb   :  { %3440 = vmatpush.bf16.msrb.mxu3 %v5659_v15  ;;  %3409 = vmatpush.bf16.msra.mxu1 %v5307_v16  ;;  %v5989_v59 = vld [vmem:[#allocation2 + $0x844] sm:$0xf]  ;;  %v5435_v61 = vor.u32 %v6053_v52, %v5432_v53  ;;  %v4446_v16 = vld [vmem:[#allocation2 + $0x288] sm:$0xf]  ;;  %v4611_v57 = vor.u32 %v5846_v47, %v4608_v48  ;;  %v5782_v48 = vld [vmem:[#allocation2 + $0x1cc] sm:$0xf] }
 0x3bc   :  { %v5176_v60 = vld [vmem:[#allocation2 + $0x860] sm:$0xf0]  ;;  %v4447_v25 = vor.u32 %v5810_v17, %v4446_v16  ;;  %v4382_v38 = vld [vmem:[#allocation2 + $0x208] sm:$0xf] }
 0x3bd   :  { %3424 = vmatpush.bf16.msra.mxu2 %v5499_v36  ;;  %v6045_v1 = vld [vmem:[#allocation2 + $0xa04] sm:$0xf]  ;;  %v5179_v7 = vor.u32 %v5989_v59, %v5176_v60  ;;  %3503 = vmatpush.bf16.msrb.mxu0 %v5215_v21  ;;  %v5054_v36 = vld [vmem:[#allocation2 + $0x748] sm:$0xf] }
 0x3be   :  { %v5400_v2 = vld [vmem:[#allocation2 + $0xa20] sm:$0xf0]  ;;  %v5794_v43 = vld [vmem:[#allocation2 + $0x224] sm:$0xf0] }
 0x3bf   :  { %3459 = vmatpush.bf16.msra.mxu3 %v4607_v19  ;;  %3410 = vmatpush.bf16.msra.mxu1 %v5275_v28  ;;  %v5981_v13 = vld [vmem:[#allocation2 + $0x804] sm:$0xf]  ;;  %v5403_v15 = vor.u32 %v6045_v1, %v5400_v2  ;;  %v4862_v19 = vld [vmem:[#allocation2 + $0x5c8] sm:$0xf]  ;;  %v4383_v56 = vor.u32 %v5794_v43, %v4382_v38 }
 0x3c0   :  { %v5144_v14 = vld [vmem:[#allocation2 + $0x820] sm:$0xf0]  ;;  %v4863_v28 = vor.u32 %v5914_v20, %v4862_v19  ;;  %v5986_v44 = vld [vmem:[#allocation2 + $0x824] sm:$0xf0] }
 0x3c1   :  { %3425 = vmatpush.bf16.msra.mxu2 %v5467_v50  ;;  %v5147_v22 = vor.u32 %v5981_v13, %v5144_v14  ;;  %v5055_v50 = vor.u32 %v5962_v37, %v5054_v36  ;;  %v6106_v52 = vld [vmem:[#allocation2 + $0xbe4] sm:$0xf0]  ;;  %3504 = vmatpush.bf16.msrb.mxu0 %v5183_v39  ;;  %v5830_v13 = vld [vmem:[#allocation2 + $0x34c] sm:$0xf] }
 0x3c2   :  { %v5022_v53 = vld [vmem:[#allocation2 + $0x708] sm:$0xf]  ;;  %v5631_v59 = vor.u32 %v6106_v52, %v5630_v51  ;;  %v4544_v14 = vld [vmem:[#allocation2 + $0x368] sm:$0xf0] }
 0x3c3   :  { %3460 = vmatpush.bf16.msra.mxu3 %v4575_v32  ;;  %3411 = vmatpush.bf16.msra.mxu1 %v5243_v40  ;;  %v5087_v32 = vor.u32 %v5970_v24, %v5086_v23  ;;  %v5150_v40 = vld [vmem:[#allocation2 + $0x808] sm:$0xf]  ;;  %v4547_v21 = vor.u32 %v5830_v13, %v4544_v14  ;;  %v5814_v39 = vld [vmem:[#allocation2 + $0x2cc] sm:$0xf] }
 0x3c4   :  { %v5954_v54 = vld [vmem:[#allocation2 + $0x724] sm:$0xf0]  ;;  %v5766_v14 = vld [vmem:[#allocation2 + $0x14c] sm:$0xf] }
 0x3c5   :  { %3426 = vmatpush.bf16.msra.mxu2 %v5435_v61  ;;  %v4766_v60 = vld [vmem:[#allocation2 + $0x508] sm:$0xf]  ;;  %v5838_v61 = vld [vmem:[#allocation2 + $0x38c] sm:$0xf]  ;;  %v5023_v0 = vor.u32 %v5954_v54, %v5022_v53 }
 0x3c6   :  { %5717 = vmatmul.msk.bf16.vlgmr.msrb.gmra.mxu3 %vm3260_vm7, %v6650_v63  ;;  %v5890_v1 = vld [vmem:[#allocation2 + $0x524] sm:$0xf0]  ;;  %v4579_v8 = vor.u32 %v5838_v61, %v4576_v62  ;;  %v5806_v54 = vld [vmem:[#allocation2 + $0x28c] sm:$0xf] }
 0x3c7   :  { %3461 = vmatpush.bf16.msra.mxu3 %v4543_v46  ;;  %3412 = vmatpush.bf16.msra.mxu1 %v5211_v55  ;;  %v4798_v46 = vld [vmem:[#allocation2 + $0x548] sm:$0xf]  ;;  %v5151_v55 = vor.u32 %v5986_v44, %v5150_v40  ;;  %v4767_v9 = vor.u32 %v5890_v1, %v4766_v60  ;;  %v4320_v1 = vld [vmem:[#allocation2 + $0x1a8] sm:$0xf0] }
 0x3c8   :  { %v5598_v2 = vld [vmem:[#allocation2 + $0xb88] sm:$0xf] }
 0x3c9   :  { %3427 = vmatpush.bf16.msra.mxu2 %v5403_v15  ;;  %v6098_v3 = vld [vmem:[#allocation2 + $0xba4] sm:$0xf0]  ;;  %3505 = vmatpush.bf16.msrb.mxu0 %v5151_v55  ;;  %v4448_v55 = vld [vmem:[#allocation2 + $0x2a8] sm:$0xf0] }
 0x3ca   :  { %v4990_v6 = vld [vmem:[#allocation2 + $0x6c8] sm:$0xf]  ;;  %v5599_v10 = vor.u32 %v6098_v3, %v5598_v2  ;;  %v4451_v2 = vor.u32 %v5806_v54, %v4448_v55  ;;  %v4800_v54 = vld [vmem:[#allocation2 + $0x568] sm:$0xf0] }
 0x3cb   :  { %3462 = vmatpush.bf16.msra.mxu3 %v4511_v58  ;;  %3413 = vmatpush.bf16.msra.mxu1 %v5179_v7  ;;  %v4799_v58 = vor.u32 %v5898_v49, %v4798_v46  ;;  %v5946_v7 = vld [vmem:[#allocation2 + $0x6e4] sm:$0xf0] }
 0x3cc   :  { %3428 = vmatmul.bf16.vlgmr.msra.gmra.mxu2 %v6642_v5  ;;  %v4991_v15 = vor.u32 %v5946_v7, %v4990_v6  ;;  %v5882_v16 = vld [vmem:[#allocation2 + $0x4e4] sm:$0xf0]  ;;  %3506 = vmatmul.bf16.vlgmr.msrb.gmra.mxu0 %v6640_v4  ;;  %v5798_v7 = vld [vmem:[#allocation2 + $0x24c] sm:$0xf] }
 0x3cd   :  { %3485 = vmatpush.bf16.msrb.mxu2 %v5119_v18  ;;  %3550 = vmatpush.bf16.msra.mxu0 %v4611_v57  ;;  %v5566_v17 = vld [vmem:[#allocation2 + $0xb48] sm:$0xf] }
 0x3ce   :  { %v6090_v18 = vld [vmem:[#allocation2 + $0xb64] sm:$0xf0] }
 0x3cf   :  { %3463 = vmatpush.bf16.msra.mxu3 %v4479_v11  ;;  %3414 = vmatpush.bf16.msra.mxu1 %v5147_v22  ;;  %v4734_v11 = vld [vmem:[#allocation2 + $0x4c8] sm:$0xf]  ;;  %v5567_v23 = vor.u32 %v6090_v18, %v5566_v17  ;;  %v4288_v17 = vld [vmem:[#allocation2 + $0x168] sm:$0xf0] }
 0x3d0   :  { %v4958_v19 = vld [vmem:[#allocation2 + $0x688] sm:$0xf]  ;;  %v4735_v22 = vor.u32 %v5882_v16, %v4734_v11  ;;  %v5910_v18 = vld [vmem:[#allocation2 + $0x5cc] sm:$0xf] }
 0x3d1   :  { %3486 = vmatpush.bf16.msrb.mxu2 %v5087_v32  ;;  %v5938_v20 = vld [vmem:[#allocation2 + $0x6a4] sm:$0xf0]  ;;  %3551 = vmatpush.bf16.msra.mxu0 %v4579_v8  ;;  %v4416_v8 = vld [vmem:[#allocation2 + $0x268] sm:$0xf0] }
 0x3d2   :  { %3415 = vmatmul.bf16.vlgmr.msra.gmra.mxu1 %v6640_v4  ;;  %v4702_v24 = vld [vmem:[#allocation2 + $0x488] sm:$0xf]  ;;  %v4959_v27 = vor.u32 %v5938_v20, %v4958_v19  ;;  %v4864_v19 = vld [vmem:[#allocation2 + $0x5e8] sm:$0xf0]  ;;  %v4419_v20 = vor.u32 %v5798_v7, %v4416_v8 }
 0x3d3   :  { %3464 = vmatpush.bf16.msra.mxu3 %v4447_v25  ;;  %3472 = vmatpush.bf16.msrb.mxu1 %v4863_v28  ;;  %v5822_v25 = vld [vmem:[#allocation2 + $0x30c] sm:$0xf]  ;;  %v5874_v28 = vld [vmem:[#allocation2 + $0x4a4] sm:$0xf0] }
 0x3d4   :  { %v5534_v29 = vld [vmem:[#allocation2 + $0xb08] sm:$0xf]  ;;  %v4515_v34 = vor.u32 %v5822_v25, %v4512_v26  ;;  %v4703_v36 = vor.u32 %v5874_v28, %v4702_v24  ;;  %v4384_v24 = vld [vmem:[#allocation2 + $0x228] sm:$0xf0] }
 0x3d5   :  { %3487 = vmatpush.bf16.msrb.mxu2 %v5055_v50  ;;  %v6082_v31 = vld [vmem:[#allocation2 + $0xb24] sm:$0xf0]  ;;  %3552 = vmatpush.bf16.msra.mxu0 %v4547_v21  ;;  %v4352_v50 = vld [vmem:[#allocation2 + $0x1e8] sm:$0xf0] }
 0x3d6   :  { %v4926_v32 = vld [vmem:[#allocation2 + $0x648] sm:$0xf]  ;;  %v5535_v37 = vor.u32 %v6082_v31, %v5534_v29  ;;  %v4355_v60 = vor.u32 %v5782_v48, %v4352_v50  ;;  %v5632_v28 = vld [vmem:[#allocation2 + $0xbe8] sm:$0xf0]  ;;  %v4291_v29 = vor.u32 %v5766_v14, %v4288_v17  ;;  %v4867_v31 = vor.u32 %v5910_v18, %v4864_v19 }
 0x3d7   :  { %3465 = vmatpush.bf16.msra.mxu3 %v4415_v41  ;;  %3473 = vmatpush.bf16.msrb.mxu1 %v4831_v45  ;;  %v5930_v33 = vld [vmem:[#allocation2 + $0x664] sm:$0xf0]  ;;  %v4480_v41 = vld [vmem:[#allocation2 + $0x2e8] sm:$0xf0] }
 0x3d8   :  { %v4670_v38 = vld [vmem:[#allocation2 + $0x448] sm:$0xf]  ;;  %v4927_v43 = vor.u32 %v5930_v33, %v4926_v32  ;;  %v4483_v49 = vor.u32 %v5814_v39, %v4480_v41  ;;  %v5974_v32 = vld [vmem:[#allocation2 + $0x7cc] sm:$0xf] }
 0x3d9   :  { %3488 = vmatpush.bf16.msrb.mxu2 %v5023_v0  ;;  %v5866_v40 = vld [vmem:[#allocation2 + $0x464] sm:$0xf0]  ;;  %3553 = vmatpush.bf16.msra.mxu0 %v4515_v34  ;;  %v5774_v0 = vld [vmem:[#allocation2 + $0x18c] sm:$0xf] }
 0x3da   :  { %v5502_v44 = vld [vmem:[#allocation2 + $0xac8] sm:$0xf]  ;;  %v4671_v51 = vor.u32 %v5866_v40, %v4670_v38  ;;  %v4323_v13 = vor.u32 %v5774_v0, %v4320_v1  ;;  %v5120_v33 = vld [vmem:[#allocation2 + $0x7e8] sm:$0xf0] }
 0x3db   :  { %3466 = vmatpush.bf16.msra.mxu3 %v4383_v56  ;;  %3474 = vmatpush.bf16.msrb.mxu1 %v4799_v58  ;;  %v6074_v45 = vld [vmem:[#allocation2 + $0xae4] sm:$0xf0]  ;;  %v5758_v34 = vld [vmem:[#allocation2 + $0x10c] sm:$0xf]  ;;  %v5123_v40 = vor.u32 %v5974_v32, %v5120_v33 }
 0x3dc   :  { %v4894_v46 = vld [vmem:[#allocation2 + $0x608] sm:$0xf]  ;;  %v5503_v52 = vor.u32 %v6074_v45, %v5502_v44  ;;  %v4832_v38 = vld [vmem:[#allocation2 + $0x5a8] sm:$0xf0] }
 0x3dd   :  { %3489 = vmatpush.bf16.msrb.mxu2 %v4991_v15  ;;  %v5922_v47 = vld [vmem:[#allocation2 + $0x624] sm:$0xf0]  ;;  %3554 = vmatpush.bf16.msra.mxu0 %v4483_v49  ;;  %v5966_v44 = vld [vmem:[#allocation2 + $0x78c] sm:$0xf] }
 0x3de   :  { %3467 = vmatmul.bf16.vlgmr.msra.gmra.mxu3 %v6633_v35  ;;  %v4638_v53 = vld [vmem:[#allocation2 + $0x408] sm:$0xf]  ;;  %v4895_v56 = vor.u32 %v5922_v47, %v4894_v46  ;;  %v6094_v45 = vld [vmem:[#allocation2 + $0xb8c] sm:$0xf] }
 0x3df   :  { %3511 = vmatpush.bf16.msrb.mxu3 %v5631_v59  ;;  %3475 = vmatpush.bf16.msrb.mxu1 %v4767_v9  ;;  %v5858_v57 = vld [vmem:[#allocation2 + $0x424] sm:$0xf0]  ;;  %v5600_v46 = vld [vmem:[#allocation2 + $0xba8] sm:$0xf0] }
 0x3e0   :  { %v5470_v58 = vld [vmem:[#allocation2 + $0xa88] sm:$0xf]  ;;  %v4639_v3 = vor.u32 %v5858_v57, %v4638_v53  ;;  %v5088_v50 = vld [vmem:[#allocation2 + $0x7a8] sm:$0xf0]  ;;  %v5603_v55 = vor.u32 %v6094_v45, %v5600_v46 }
 0x3e1   :  { %3490 = vmatpush.bf16.msrb.mxu2 %v4959_v27  ;;  %v6066_v59 = vld [vmem:[#allocation2 + $0xaa4] sm:$0xf0]  ;;  %3555 = vmatpush.bf16.msra.mxu0 %v4451_v2  ;;  %v6102_v27 = vld [vmem:[#allocation2 + $0xbcc] sm:$0xf] }
 0x3e2   :  { %v5694_v61 = vld [vmem:[#allocation2 + $0xc48] sm:$0xf]  ;;  %v5471_v6 = vor.u32 %v6066_v59, %v5470_v58  ;;  %v5750_v49 = vld [vmem:[#allocation2 + $0xcc] sm:$0xf]  ;;  %v3273_v7 = vpop.f32.mrf.mxu1 }
 0x3e3   :  { %3512 = vmatpush.bf16.msrb.mxu3 %v5599_v10  ;;  %3476 = vmatpush.bf16.msrb.mxu1 %v4735_v22  ;;  %v6122_v62 = vld [vmem:[#allocation2 + $0xc64] sm:$0xf0]  ;;  %v5894_v53 = vld [vmem:[#allocation2 + $0x54c] sm:$0xf] }
 0x3e4   :  { %v5438_v9 = vld [vmem:[#allocation2 + $0xa48] sm:$0xf]  ;;  %v5695_v11 = vor.u32 %v6122_v62, %v5694_v61  ;;  %v6086_v58 = vld [vmem:[#allocation2 + $0xb4c] sm:$0xf]  ;;  %v4803_v61 = vor.u32 %v5894_v53, %v4800_v54 }
 0x3e5   :  { %3491 = vmatpush.bf16.msrb.mxu2 %v4927_v43  ;;  %v6058_v10 = vld [vmem:[#allocation2 + $0xa64] sm:$0xf0]  ;;  %3556 = vmatpush.bf16.msra.mxu0 %v4419_v20  ;;  %v5635_v43 = vor.u32 %v6102_v27, %v5632_v28  ;;  %v5568_v59 = vld [vmem:[#allocation2 + $0xb68] sm:$0xf0] }
 0x3e6   :  { %v5662_v15 = vld [vmem:[#allocation2 + $0xc08] sm:$0xf]  ;;  %v5439_v21 = vor.u32 %v6058_v10, %v5438_v9  ;;  %v5958_v62 = vld [vmem:[#allocation2 + $0x74c] sm:$0xf]  ;;  %v5571_v8 = vor.u32 %v6086_v58, %v5568_v59 }
 0x3e7   :  { %3513 = vmatpush.bf16.msrb.mxu3 %v5567_v23  ;;  %3477 = vmatpush.bf16.msrb.mxu1 %v4703_v36  ;;  %v6114_v16 = vld [vmem:[#allocation2 + $0xc24] sm:$0xf0]  ;;  %v5790_v23 = vld [vmem:[#allocation2 + $0x20c] sm:$0xf] }
 0x3e8   :  { %v5406_v22 = vld [vmem:[#allocation2 + $0xa08] sm:$0xf]  ;;  %v5663_v26 = vor.u32 %v6114_v16, %v5662_v15  ;;  %v4256_v36 = vld [vmem:[#allocation2 + $0x128] sm:$0xf0]  ;;  %v4387_v39 = vor.u32 %v5790_v23, %v4384_v24 }
 0x3e9   :  { %3492 = vmatpush.bf16.msrb.mxu2 %v4895_v56  ;;  %v6050_v25 = vld [vmem:[#allocation2 + $0xa24] sm:$0xf0]  ;;  %v4259_v47 = vor.u32 %v5758_v34, %v4256_v36  ;;  %v5091_v56 = vor.u32 %v5966_v44, %v5088_v50  ;;  %v5056_v0 = vld [vmem:[#allocation2 + $0x768] sm:$0xf0] }
 0x3ea   :  { %v5407_v41 = vor.u32 %v6050_v25, %v5406_v22  ;;  %3557 = vmatpush.bf16.msra.mxu0 %v4387_v39  ;;  %v5742_v1 = vld [vmem:[#allocation2 + $0x8c] sm:$0xf]  ;;  %v5059_v9 = vor.u32 %v5958_v62, %v5056_v0  ;;  %v3299_v22 = vpop.f32.mrf.mxu3  ;;  %v3275_v39 = vpop.f32.mrf.mxu1 }
 0x3eb   :  { %3514 = vmatpush.bf16.msrb.mxu3 %v5535_v37  ;;  %3478 = vmatpush.bf16.msrb.mxu1 %v4671_v51  ;;  %v5902_v37 = vld [vmem:[#allocation2 + $0x58c] sm:$0xf] }
 0x3ec   :  { %3493 = vmatmul.bf16.vlgmr.msrb.gmra.mxu2 %v6644_v12  ;;  %v4835_v48 = vor.u32 %v5902_v37, %v4832_v38  ;;  %v6666_v51 = vld [vmem:[#allocation10] sm:$0xff] }
 0x3ed   :  { %3537 = vmatpush.bf16.msra.mxu2 %v4355_v60  ;;  %v1244_v57 = vperm.slane %v6666_v51, 0  ;;  %v4192_v2 = vld [vmem:[#allocation2 + $0xa8] sm:$0xf0]  ;;  %3558 = vmatmul.bf16.vlgmr.msra.gmra.mxu0 %v6633_v35  ;;  %v3286_v23 = vpop.f32.mrf.mxu2 }
 0x3ee   :  { %3602 = vmatpush.bf16.msrb.mxu0 %v5635_v43  ;;  %v4195_v14 = vor.u32 %v5742_v1, %v4192_v2  ;;  %v5950_v16 = vld [vmem:[#allocation2 + $0x70c] sm:$0xf] }
 0x3ef   :  { %3515 = vmatpush.bf16.msrb.mxu3 %v5503_v52  ;;  %3479 = vmatpush.bf16.msrb.mxu1 %v4639_v3  ;;  %v4224_v52 = vld [vmem:[#allocation2 + $0xe8] sm:$0xf0]  ;;  %v3274_v10 = vadd.f32 %v3273_v7, %v1244_v57 }
 0x3f0   :  { %v4227_v60 = vor.u32 %v5750_v49, %v4224_v52  ;;  %v5886_v3 = vld [vmem:[#allocation2 + $0x50c] sm:$0xf] }
 0x3f1   :  { %3538 = vmatpush.bf16.msra.mxu2 %v4323_v13  ;;  %v5536_v13 = vld [vmem:[#allocation2 + $0xb28] sm:$0xf0] }
 0x3f2   :  { %3480 = vmatmul.bf16.vlgmr.msrb.gmra.mxu1 %v6631_v30  ;;  %3603 = vmatpush.bf16.msrb.mxu0 %v5603_v55  ;;  %v5024_v17 = vld [vmem:[#allocation2 + $0x728] sm:$0xf0]  ;;  %v3301_v58 = vpop.f32.mrf.mxu3 }
 0x3f3   :  { %3516 = vmatpush.bf16.msrb.mxu3 %v5471_v6  ;;  %3530 = vmatpush.bf16.msra.mxu1 %v5695_v11  ;;  %v4768_v6 = vld [vmem:[#allocation2 + $0x528] sm:$0xf0]  ;;  %v5027_v25 = vor.u32 %v5950_v16, %v5024_v17  ;;  %v5062_v58 = vld [vmem:[#allocation2 + $0x750] sm:$0xf] }
 0x3f4   :  { %v6078_v11 = vld [vmem:[#allocation2 + $0xb0c] sm:$0xf]  ;;  %v4771_v15 = vor.u32 %v5886_v3, %v4768_v6 }
 0x3f5   :  { %3539 = vmatpush.bf16.msra.mxu2 %v4291_v29  ;;  %v5734_v18 = vld [vmem:[#allocation2 + $0x4c] sm:$0xf]  ;;  %v5539_v24 = vor.u32 %v6078_v11, %v5536_v13  ;;  %v3288_v59 = vpop.f32.mrf.mxu2 }
 0x3f6   :  { %v4160_v19 = vld [vmem:[#allocation2 + $0x68] sm:$0xf0]  ;;  %3604 = vmatpush.bf16.msrb.mxu0 %v5571_v8  ;;  %v5963_v59 = vld [vmem:[#allocation2 + $0x76c] sm:$0xf0] }
 0x3f7   :  { %3517 = vmatpush.bf16.msrb.mxu3 %v5439_v21  ;;  %3531 = vmatpush.bf16.msra.mxu1 %v5663_v26  ;;  %v5878_v20 = vld [vmem:[#allocation2 + $0x4cc] sm:$0xf]  ;;  %v3287_v26 = vadd.f32 %v3286_v23, %v3274_v10  ;;  %v4163_v29 = vor.u32 %v5734_v18, %v4160_v19 }
 0x3f8   :  { %v4736_v21 = vld [vmem:[#allocation2 + $0x4e8] sm:$0xf0] }
 0x3f9   :  { %3540 = vmatpush.bf16.msra.mxu2 %v4259_v47  ;;  %v6070_v27 = vld [vmem:[#allocation2 + $0xacc] sm:$0xf] }
 0x3fa   :  { %v5504_v28 = vld [vmem:[#allocation2 + $0xae8] sm:$0xf0]  ;;  %3605 = vmatpush.bf16.msrb.mxu0 %v5539_v24 }
 0x3fb   :  { %3563 = vmatpush.bf16.msrb.mxu1 %v4867_v31  ;;  %3518 = vmatpush.bf16.msrb.mxu3 %v5407_v41  ;;  %v4739_v31 = vor.u32 %v5878_v20, %v4736_v21  ;;  %v5942_v32 = vld [vmem:[#allocation2 + $0x6cc] sm:$0xf]  ;;  %v6673_v41 = vadd.f32 %v3299_v22, %v3287_v26  ;;  %v5507_v44 = vor.u32 %v6070_v27, %v5504_v28  ;;  %v4358_v21 = vld [vmem:[#allocation2 + $0x1d0] sm:$0xf] }
 0x3fc   :  { %v4992_v33 = vld [vmem:[#allocation2 + $0x6e8] sm:$0xf0]  ;;  %v5787_v22 = vld [vmem:[#allocation2 + $0x1ec] sm:$0xf0] }
 0x3fd   :  { %3541 = vmatpush.bf16.msra.mxu2 %v4227_v60  ;;  %v5726_v34 = vld [vmem:[#allocation2 + $0xc] sm:$0xf]  ;;  %v4995_v45 = vor.u32 %v5942_v32, %v4992_v33  ;;  %v5126_v26 = vld [vmem:[#allocation2 + $0x7d0] sm:$0xf] }
 0x3fe   :  { %3519 = vmatmul.bf16.vlgmr.msrb.gmra.mxu3 %v6642_v5  ;;  %v4128_v36 = vld [vmem:[#allocation2 + $0x28] sm:$0xf0]  ;;  %3606 = vmatpush.bf16.msrb.mxu0 %v5507_v44  ;;  %v5979_v27 = vld [vmem:[#allocation2 + $0x7ec] sm:$0xf0] }
 0x3ff   :  { %3576 = vmatpush.bf16.msra.mxu3 %v5123_v40  ;;  %3564 = vmatpush.bf16.msrb.mxu1 %v4835_v48  ;;  %v5870_v37 = vld [vmem:[#allocation2 + $0x48c] sm:$0xf]  ;;  %v4131_v48 = vor.u32 %v5726_v34, %v4128_v36  ;;  %v4614_v34 = vld [vmem:[#allocation2 + $0x3d0] sm:$0xf]  ;;  %v5127_v39 = vor.u32 %v5979_v27, %v5126_v26 }
 0x400   :  { %v4704_v38 = vld [vmem:[#allocation2 + $0x4a8] sm:$0xf0]  ;;  %v5851_v36 = vld [vmem:[#allocation2 + $0x3ec] sm:$0xf0] }
 0x401   :  { %3542 = vmatpush.bf16.msra.mxu2 %v4195_v14  ;;  %v6038_v43 = vld [vmem:[#allocation2 + $0x9cc] sm:$0xf]  ;;  %v4707_v50 = vor.u32 %v5870_v37, %v4704_v38  ;;  %v4359_v37 = vor.u32 %v5787_v22, %v4358_v21  ;;  %v4326_v38 = vld [vmem:[#allocation2 + $0x190] sm:$0xf] }
 0x402   :  { %5718 = vmatmul.msk.bf16.vlgmr.msra.gmra.mxu1 %vm3260_vm7, %v6650_v63  ;;  %v5376_v40 = vld [vmem:[#allocation2 + $0x9e8] sm:$0xf0]  ;;  %v5779_v44 = vld [vmem:[#allocation2 + $0x1ac] sm:$0xf0] }
 0x403   :  { %3577 = vmatpush.bf16.msra.mxu3 %v5091_v56  ;;  %3565 = vmatpush.bf16.msrb.mxu1 %v4803_v61  ;;  %v6062_v46 = vld [vmem:[#allocation2 + $0xa8c] sm:$0xf]  ;;  %v5379_v53 = vor.u32 %v6038_v43, %v5376_v40  ;;  %v4230_v22 = vld [vmem:[#allocation2 + $0xd0] sm:$0xf] }
 0x404   :  { %v5472_v47 = vld [vmem:[#allocation2 + $0xaa8] sm:$0xf0]  ;;  %v4998_v27 = vld [vmem:[#allocation2 + $0x6d0] sm:$0xf] }
 0x405   :  { %3543 = vmatpush.bf16.msra.mxu2 %v4163_v29  ;;  %v5934_v49 = vld [vmem:[#allocation2 + $0x68c] sm:$0xf]  ;;  %v5475_v60 = vor.u32 %v6062_v46, %v5472_v47  ;;  %v5971_v46 = vld [vmem:[#allocation2 + $0x7ac] sm:$0xf0]  ;;  %v4615_v47 = vor.u32 %v5851_v36, %v4614_v34 }
 0x406   :  { %v4960_v52 = vld [vmem:[#allocation2 + $0x6a8] sm:$0xf0]  ;;  %v5915_v36 = vld [vmem:[#allocation2 + $0x5ec] sm:$0xf0] }
 0x407   :  { %3578 = vmatpush.bf16.msra.mxu3 %v5059_v9  ;;  %3566 = vmatpush.bf16.msrb.mxu1 %v4771_v15  ;;  %v5862_v54 = vld [vmem:[#allocation2 + $0x44c] sm:$0xf]  ;;  %v4963_v61 = vor.u32 %v5934_v49, %v4960_v52  ;;  %v4582_v49 = vld [vmem:[#allocation2 + $0x390] sm:$0xf] }
 0x408   :  { %v4672_v55 = vld [vmem:[#allocation2 + $0x468] sm:$0xf0]  ;;  %3607 = vmatpush.bf16.msrb.mxu0 %v5475_v60  ;;  %v5843_v52 = vld [vmem:[#allocation2 + $0x3ac] sm:$0xf0] }
 0x409   :  { %v6030_v56 = vld [vmem:[#allocation2 + $0x98c] sm:$0xf]  ;;  %3544 = vmatpush.bf16.msra.mxu2 %v4131_v48  ;;  %v4675_v1 = vor.u32 %v5862_v54, %v4672_v55  ;;  %v4294_v54 = vld [vmem:[#allocation2 + $0x150] sm:$0xf] }
 0x40a   :  { %v5344_v57 = vld [vmem:[#allocation2 + $0x9a8] sm:$0xf0] }
 0x40b   :  { %3579 = vmatpush.bf16.msra.mxu3 %v5027_v25  ;;  %3567 = vmatpush.bf16.msrb.mxu1 %v4739_v31  ;;  %v6054_v62 = vld [vmem:[#allocation2 + $0xa4c] sm:$0xf]  ;;  %v5347_v6 = vor.u32 %v6030_v56, %v5344_v57  ;;  %v5771_v57 = vld [vmem:[#allocation2 + $0x16c] sm:$0xf0] }
 0x40c   :  { %v5440_v0 = vld [vmem:[#allocation2 + $0xa68] sm:$0xf0]  ;;  %3545 = vmatmul.bf16.vlgmr.msra.gmra.mxu2 %v6635_v42 }
 0x40d   :  { %v5926_v2 = vld [vmem:[#allocation2 + $0x64c] sm:$0xf]  ;;  %3589 = vmatpush.bf16.msrb.mxu2 %v5379_v53  ;;  %v5443_v14 = vor.u32 %v6054_v62, %v5440_v0  ;;  %v4327_v53 = vor.u32 %v5779_v44, %v4326_v38  ;;  %v5819_v38 = vld [vmem:[#allocation2 + $0x2ec] sm:$0xf0] }
 0x40e   :  { %v4928_v3 = vld [vmem:[#allocation2 + $0x668] sm:$0xf0]  ;;  %v4198_v44 = vld [vmem:[#allocation2 + $0x90] sm:$0xf] }
 0x40f   :  { %3580 = vmatpush.bf16.msra.mxu3 %v4995_v45  ;;  %3568 = vmatpush.bf16.msrb.mxu1 %v4707_v50  ;;  %v6022_v7 = vld [vmem:[#allocation2 + $0x94c] sm:$0xf]  ;;  %v4931_v15 = vor.u32 %v5926_v2, %v4928_v3  ;;  %v5094_v45 = vld [vmem:[#allocation2 + $0x790] sm:$0xf]  ;;  %v3312_v60 = vpop.f32.mrf.mxu1 }
 0x410   :  { %v5854_v8 = vld [vmem:[#allocation2 + $0x40c] sm:$0xf]  ;;  %3608 = vmatpush.bf16.msrb.mxu0 %v5443_v14  ;;  %v5095_v55 = vor.u32 %v5971_v46, %v5094_v45  ;;  %v4550_v2 = vld [vmem:[#allocation2 + $0x350] sm:$0xf]  ;;  %v3325_v14 = vpop.f32.mrf.mxu2 }
 0x411   :  { %v4640_v9 = vld [vmem:[#allocation2 + $0x428] sm:$0xf0]  ;;  %3590 = vmatpush.bf16.msrb.mxu2 %v5347_v6  ;;  %v5835_v3 = vld [vmem:[#allocation2 + $0x36c] sm:$0xf0]  ;;  %v4295_v6 = vor.u32 %v5771_v57, %v4294_v54 }
 0x412   :  { %v5312_v10 = vld [vmem:[#allocation2 + $0x968] sm:$0xf0]  ;;  %v4643_v19 = vor.u32 %v5854_v8, %v4640_v9  ;;  %v5063_v8 = vor.u32 %v5963_v59, %v5062_v58  ;;  %v5747_v45 = vld [vmem:[#allocation2 + $0xac] sm:$0xf0] }
 0x413   :  { %v6118_v11 = vld [vmem:[#allocation2 + $0xc4c] sm:$0xf]  ;;  %3581 = vmatpush.bf16.msra.mxu3 %v4963_v61  ;;  %3569 = vmatpush.bf16.msrb.mxu1 %v4675_v1  ;;  %v5315_v23 = vor.u32 %v6022_v7, %v5312_v10  ;;  %v4583_v61 = vor.u32 %v5843_v52, %v4582_v49  ;;  %v3313_v1 = vadd.f32 %v3312_v60, %v6673_v41  ;;  %v4262_v7 = vld [vmem:[#allocation2 + $0x110] sm:$0xf]  ;;  %v3338_v41 = vpop.f32.mrf.mxu3 }
 0x414   :  { %v5696_v13 = vld [vmem:[#allocation2 + $0xc68] sm:$0xf0]  ;;  %v5763_v10 = vld [vmem:[#allocation2 + $0x12c] sm:$0xf0]  ;;  %v4199_v57 = vor.u32 %v5747_v45, %v4198_v44  ;;  %v1245_v45 = vperm.slane %v6666_v51, 1 }
 0x415   :  { %v5918_v16 = vld [vmem:[#allocation2 + $0x60c] sm:$0xf]  ;;  %v5699_v24 = vor.u32 %v6118_v11, %v5696_v13  ;;  %3591 = vmatpush.bf16.msrb.mxu2 %v5315_v23  ;;  %v5030_v11 = vld [vmem:[#allocation2 + $0x710] sm:$0xf]  ;;  %v4263_v21 = vor.u32 %v5763_v10, %v4262_v7 }
 0x416   :  { %v6046_v17 = vld [vmem:[#allocation2 + $0xa0c] sm:$0xf]  ;;  %v5955_v13 = vld [vmem:[#allocation2 + $0x72c] sm:$0xf0] }
 0x417   :  { %v5408_v18 = vld [vmem:[#allocation2 + $0xa28] sm:$0xf0]  ;;  %3582 = vmatpush.bf16.msra.mxu3 %v4931_v15  ;;  %3570 = vmatpush.bf16.msrb.mxu1 %v4643_v19  ;;  %v4551_v15 = vor.u32 %v5835_v3, %v4550_v2  ;;  %v4518_v19 = vld [vmem:[#allocation2 + $0x310] sm:$0xf]  ;;  %v5031_v23 = vor.u32 %v5955_v13, %v5030_v11  ;;  %v3314_v34 = vpop.f32.mrf.mxu1 }
 0x418   :  { %v4896_v20 = vld [vmem:[#allocation2 + $0x628] sm:$0xf0]  ;;  %v5411_v32 = vor.u32 %v6046_v17, %v5408_v18  ;;  %v3326_v18 = vadd.f32 %v3325_v14, %v3313_v1  ;;  %v4966_v49 = vld [vmem:[#allocation2 + $0x690] sm:$0xf] }
 0x419   :  { %v6014_v25 = vld [vmem:[#allocation2 + $0x90c] sm:$0xf]  ;;  %v4899_v33 = vor.u32 %v5918_v16, %v4896_v20  ;;  %v5827_v20 = vld [vmem:[#allocation2 + $0x32c] sm:$0xf0] }
 0x41a   :  { %v5280_v28 = vld [vmem:[#allocation2 + $0x928] sm:$0xf0]  ;;  %3609 = vmatpush.bf16.msrb.mxu0 %v5411_v32  ;;  %3571 = vmatmul.bf16.vlgmr.msrb.gmra.mxu1 %v6631_v30  ;;  %v6680_v26 = vadd.f32 %v3338_v41, %v3326_v18  ;;  %v5939_v52 = vld [vmem:[#allocation2 + $0x6ac] sm:$0xf0] }
 0x41b   :  { %v6110_v29 = vld [vmem:[#allocation2 + $0xc0c] sm:$0xf]  ;;  %3621 = vmatpush.bf16.msra.mxu1 %v5699_v24  ;;  %v5283_v43 = vor.u32 %v6014_v25, %v5280_v28  ;;  %3583 = vmatpush.bf16.msra.mxu3 %v4899_v33  ;;  %v5755_v25 = vld [vmem:[#allocation2 + $0xec] sm:$0xf0]  ;;  %v4967_v60 = vor.u32 %v5939_v52, %v4966_v49 }
 0x41c   :  { %v5664_v31 = vld [vmem:[#allocation2 + $0xc28] sm:$0xf0]  ;;  %v5947_v28 = vld [vmem:[#allocation2 + $0x6ec] sm:$0xf0] }
 0x41d   :  { %v5667_v40 = vor.u32 %v6110_v29, %v5664_v31  ;;  %v6006_v48 = vld [vmem:[#allocation2 + $0x8cc] sm:$0xf]  ;;  %3592 = vmatpush.bf16.msrb.mxu2 %v5283_v43  ;;  %3610 = vmatmul.bf16.vlgmr.msrb.gmra.mxu0 %v6642_v5  ;;  %v4519_v29 = vor.u32 %v5827_v20, %v4518_v19  ;;  %v4870_v33 = vld [vmem:[#allocation2 + $0x5d0] sm:$0xf]  ;;  %v4999_v43 = vor.u32 %v5947_v28, %v4998_v27 }
 0x41e   :  { %v5248_v50 = vld [vmem:[#allocation2 + $0x8e8] sm:$0xf0]  ;;  %3667 = vmatpush.bf16.msra.mxu0 %v5127_v39  ;;  %3584 = vmatmul.bf16.vlgmr.msra.gmra.mxu3 %v6644_v12  ;;  %v4231_v39 = vor.u32 %v5755_v25, %v4230_v22  ;;  %v4871_v46 = vor.u32 %v5915_v36, %v4870_v33  ;;  %v5907_v54 = vld [vmem:[#allocation2 + $0x5ac] sm:$0xf0]  ;;  %v4360_v33 = vld [vmem:[#allocation2 + $0x1f0] sm:$0xf0] }
 0x41f   :  { %3628 = vmatpush.bf16.msrb.mxu3 %v4359_v37  ;;  %3622 = vmatpush.bf16.msra.mxu1 %v5667_v40  ;;  %v5251_v56 = vor.u32 %v6006_v48, %v5248_v50  ;;  %v5998_v62 = vld [vmem:[#allocation2 + $0x88c] sm:$0xf]  ;;  %v4486_v37 = vld [vmem:[#allocation2 + $0x2d0] sm:$0xf]  ;;  %v3327_v50 = vpop.f32.mrf.mxu2 }
 0x420   :  { %v5216_v0 = vld [vmem:[#allocation2 + $0x8a8] sm:$0xf0]  ;;  %v4838_v48 = vld [vmem:[#allocation2 + $0x590] sm:$0xf]  ;;  %v4328_v50 = vld [vmem:[#allocation2 + $0x1b0] sm:$0xf0] }
 0x421   :  { %3593 = vmatpush.bf16.msrb.mxu2 %v5251_v56  ;;  %v5219_v9 = vor.u32 %v5998_v62, %v5216_v0  ;;  %v5990_v16 = vld [vmem:[#allocation2 + $0x84c] sm:$0xf]  ;;  %v5811_v56 = vld [vmem:[#allocation2 + $0x2ac] sm:$0xf0] }
 0x422   :  { %3668 = vmatpush.bf16.msra.mxu0 %v5095_v55  ;;  %v5184_v17 = vld [vmem:[#allocation2 + $0x868] sm:$0xf0]  ;;  %v4454_v55 = vld [vmem:[#allocation2 + $0x290] sm:$0xf] }
 0x423   :  { %3641 = vmatpush.bf16.msrb.mxu1 %v4615_v47  ;;  %3629 = vmatpush.bf16.msrb.mxu3 %v4327_v53  ;;  %v5187_v24 = vor.u32 %v5990_v16, %v5184_v17  ;;  %v5982_v31 = vld [vmem:[#allocation2 + $0x80c] sm:$0xf]  ;;  %v4487_v47 = vor.u32 %v5819_v38, %v4486_v37  ;;  %v3340_v53 = vpop.f32.mrf.mxu3  ;;  %v4166_v58 = vld [vmem:[#allocation2 + $0x50] sm:$0xf]  ;;  %v4455_v62 = vor.u32 %v5811_v56, %v4454_v55 }
 0x424   :  { %v5152_v32 = vld [vmem:[#allocation2 + $0x828] sm:$0xf0]  ;;  %v5739_v59 = vld [vmem:[#allocation2 + $0x6c] sm:$0xf0] }
 0x425   :  { %3594 = vmatpush.bf16.msrb.mxu2 %v5219_v9  ;;  %v5155_v40 = vor.u32 %v5982_v31, %v5152_v32  ;;  %v4806_v0 = vld [vmem:[#allocation2 + $0x550] sm:$0xf]  ;;  %v5783_v32 = vld [vmem:[#allocation2 + $0x1d4] sm:$0xf] }
 0x426   :  { %3669 = vmatpush.bf16.msra.mxu0 %v5063_v8  ;;  %v4934_v1 = vld [vmem:[#allocation2 + $0x650] sm:$0xf]  ;;  %v4167_v8 = vor.u32 %v5739_v59, %v4166_v58 }
 0x427   :  { %3642 = vmatpush.bf16.msrb.mxu1 %v4583_v61  ;;  %3630 = vmatpush.bf16.msrb.mxu3 %v4295_v6  ;;  %v4839_v61 = vor.u32 %v5907_v54, %v4838_v48  ;;  %v5931_v2 = vld [vmem:[#allocation2 + $0x66c] sm:$0xf0]  ;;  %v5775_v48 = vld [vmem:[#allocation2 + $0x194] sm:$0xf] }
 0x428   :  { %v5899_v3 = vld [vmem:[#allocation2 + $0x56c] sm:$0xf0]  ;;  %v4935_v14 = vor.u32 %v5931_v2, %v4934_v1  ;;  %v5767_v2 = vld [vmem:[#allocation2 + $0x154] sm:$0xf] }
 0x429   :  { %3595 = vmatpush.bf16.msrb.mxu2 %v5187_v24  ;;  %v4422_v6 = vld [vmem:[#allocation2 + $0x250] sm:$0xf]  ;;  %v4807_v16 = vor.u32 %v5899_v3, %v4806_v0  ;;  %v4331_v0 = vor.u32 %v5775_v48, %v4328_v50  ;;  %v4296_v3 = vld [vmem:[#allocation2 + $0x170] sm:$0xf0] }
 0x42a   :  { %3670 = vmatpush.bf16.msra.mxu0 %v5031_v23  ;;  %5719 = vmatmul.msk.bf16.vlgmr.msra.gmra.mxu1 %vm3260_vm7, %v6650_v63  ;;  %v5803_v7 = vld [vmem:[#allocation2 + $0x26c] sm:$0xf0] }
 0x42b   :  { %3643 = vmatpush.bf16.msrb.mxu1 %v4551_v15  ;;  %3631 = vmatpush.bf16.msrb.mxu3 %v4263_v21  ;;  %v4134_v9 = vld [vmem:[#allocation2 + $0x10] sm:$0xf]  ;;  %v6685_v15 = vpop.f32.mrf.mxu0  ;;  %v4423_v17 = vor.u32 %v5803_v7, %v4422_v6  ;;  %v3351_v20 = vpop.f32.mrf.mxu3 }
 0x42c   :  { %v5731_v10 = vld [vmem:[#allocation2 + $0x2c] sm:$0xf0]  ;;  %v6688_v24 = vadd.f32 %v3351_v20, %v6680_v26  ;;  %v4264_v20 = vld [vmem:[#allocation2 + $0x130] sm:$0xf0] }
 0x42d   :  { %3596 = vmatpush.bf16.msrb.mxu2 %v5155_v40  ;;  %v5382_v11 = vld [vmem:[#allocation2 + $0x9d0] sm:$0xf]  ;;  %v4135_v25 = vor.u32 %v5731_v10, %v4134_v9 }
 0x42e   :  { %3671 = vmatpush.bf16.msra.mxu0 %v4999_v43  ;;  %v6043_v13 = vld [vmem:[#allocation2 + $0x9ec] sm:$0xf0] }
 0x42f   :  { %3644 = vmatpush.bf16.msrb.mxu1 %v4519_v29  ;;  %3632 = vmatpush.bf16.msrb.mxu3 %v4231_v39  ;;  %v4774_v41 = vld [vmem:[#allocation2 + $0x510] sm:$0xf]  ;;  %v5383_v29 = vor.u32 %v6043_v13, %v5382_v11  ;;  %v3364_v59 = vpop.f32.mrf.mxu1  ;;  %v3377_v13 = vpop.f32.mrf.mxu2 }
 0x430   :  { %3597 = vmatmul.bf16.vlgmr.msrb.gmra.mxu2 %v6640_v4  ;;  %v4902_v18 = vld [vmem:[#allocation2 + $0x610] sm:$0xf] }
 0x431   :  { %3654 = vmatpush.bf16.msra.mxu2 %v4871_v46  ;;  %v5923_v19 = vld [vmem:[#allocation2 + $0x62c] sm:$0xf0]  ;;  %v4363_v46 = vor.u32 %v5783_v32, %v4360_v33 }
 0x432   :  { %3672 = vmatpush.bf16.msra.mxu0 %v4967_v60  ;;  %v5891_v21 = vld [vmem:[#allocation2 + $0x52c] sm:$0xf0]  ;;  %v4903_v31 = vor.u32 %v5923_v19, %v4902_v18  ;;  %v5759_v19 = vld [vmem:[#allocation2 + $0x114] sm:$0xf] }
 0x433   :  { %3645 = vmatpush.bf16.msrb.mxu1 %v4487_v47  ;;  %3633 = vmatpush.bf16.msrb.mxu3 %v4199_v57  ;;  %v4390_v22 = vld [vmem:[#allocation2 + $0x210] sm:$0xf]  ;;  %v4775_v34 = vor.u32 %v5891_v21, %v4774_v41  ;;  %v3405_v49 = vpop.f32.mrf.mxu0  ;;  %v3353_v58 = vpop.f32.mrf.mxu3  ;;  %v4299_v41 = vor.u32 %v5767_v2, %v4296_v3  ;;  %v5839_v3 = vld [vmem:[#allocation2 + $0x394] sm:$0xf] }
 0x434   :  { %v5795_v23 = vld [vmem:[#allocation2 + $0x22c] sm:$0xf0]  ;;  %v4616_v58 = vld [vmem:[#allocation2 + $0x3f0] sm:$0xf0] }
 0x435   :  { %3655 = vmatpush.bf16.msra.mxu2 %v4839_v61  ;;  %v5638_v27 = vld [vmem:[#allocation2 + $0xbd0] sm:$0xf]  ;;  %v4391_v36 = vor.u32 %v5795_v23, %v4390_v22 }
 0x436   :  { %v6107_v28 = vld [vmem:[#allocation2 + $0xbec] sm:$0xf0]  ;;  %3673 = vmatpush.bf16.msra.mxu0 %v4935_v14 }
 0x437   :  { %3646 = vmatpush.bf16.msrb.mxu1 %v4455_v62  ;;  %3634 = vmatpush.bf16.msrb.mxu3 %v4167_v8  ;;  %v5350_v37 = vld [vmem:[#allocation2 + $0x990] sm:$0xf]  ;;  %v5639_v39 = vor.u32 %v6107_v28, %v5638_v27  ;;  %v3365_v62 = vadd.f32 %v3364_v59, %v1245_v45  ;;  %v3379_v49 = vpop.f32.mrf.mxu2  ;;  %v5743_v59 = vld [vmem:[#allocation2 + $0x94] sm:$0xf] }
 0x438   :  { %v6035_v38 = vld [vmem:[#allocation2 + $0x9ac] sm:$0xf0]  ;;  %v5096_v49 = vld [vmem:[#allocation2 + $0x7b0] sm:$0xf0] }
 0x439   :  { %3656 = vmatpush.bf16.msra.mxu2 %v4807_v16  ;;  %v4742_v43 = vld [vmem:[#allocation2 + $0x4d0] sm:$0xf]  ;;  %v5351_v47 = vor.u32 %v6035_v38, %v5350_v37 }
 0x43a   :  { %v5883_v40 = vld [vmem:[#allocation2 + $0x4ec] sm:$0xf0]  ;;  %3674 = vmatpush.bf16.msra.mxu0 %v4903_v31  ;;  %v3366_v31 = vpop.f32.mrf.mxu1 }
 0x43b   :  { %3647 = vmatpush.bf16.msrb.mxu1 %v4423_v17  ;;  %3635 = vmatpush.bf16.msrb.mxu3 %v4135_v25  ;;  %v5606_v26 = vld [vmem:[#allocation2 + $0xb90] sm:$0xf]  ;;  %v4743_v52 = vor.u32 %v5883_v40, %v4742_v43  ;;  %v3378_v17 = vadd.f32 %v3377_v13, %v3365_v62  ;;  %v3390_v38 = vpop.f32.mrf.mxu3  ;;  %v4232_v43 = vld [vmem:[#allocation2 + $0xf0] sm:$0xf0] }
 0x43c   :  { %v6099_v44 = vld [vmem:[#allocation2 + $0xbac] sm:$0xf0]  ;;  %v4168_v13 = vld [vmem:[#allocation2 + $0x70] sm:$0xf0] }
 0x43d   :  { %3657 = vmatpush.bf16.msra.mxu2 %v4775_v34  ;;  %v5318_v53 = vld [vmem:[#allocation2 + $0x950] sm:$0xf]  ;;  %v5607_v55 = vor.u32 %v6099_v44, %v5606_v26  ;;  %3675 = vmatmul.bf16.vlgmr.msra.gmra.mxu0 %v6644_v12  ;;  %v3391_v45 = vadd.f32 %v3390_v38, %v3378_v17  ;;  %v6698_v17 = vpop.f32.mrf.mxu0  ;;  %v4840_v38 = vld [vmem:[#allocation2 + $0x5b0] sm:$0xf0] }
 0x43e   :  { %v6027_v54 = vld [vmem:[#allocation2 + $0x96c] sm:$0xf0]  ;;  %3636 = vmatmul.bf16.vlgmr.msrb.gmra.mxu3 %v6635_v42  ;;  %3719 = vmatpush.bf16.msrb.mxu0 %v4363_v46 }
 0x43f   :  { %3680 = vmatpush.bf16.msra.mxu3 %v5383_v29  ;;  %3648 = vmatpush.bf16.msrb.mxu1 %v4391_v36  ;;  %v4710_v56 = vld [vmem:[#allocation2 + $0x490] sm:$0xf]  ;;  %v5319_v1 = vor.u32 %v6027_v54, %v5318_v53  ;;  %v4267_v36 = vor.u32 %v5759_v19, %v4264_v20  ;;  %v4872_v19 = vld [vmem:[#allocation2 + $0x5f0] sm:$0xf0] }
 0x440   :  { %v5875_v57 = vld [vmem:[#allocation2 + $0x4ac] sm:$0xf0] }
 0x441   :  { %v5574_v60 = vld [vmem:[#allocation2 + $0xb50] sm:$0xf]  ;;  %3658 = vmatpush.bf16.msra.mxu2 %v4743_v52  ;;  %v4711_v6 = vor.u32 %v5875_v57, %v4710_v56  ;;  %v5847_v52 = vld [vmem:[#allocation2 + $0x3d4] sm:$0xf] }
 0x442   :  { %v6091_v61 = vld [vmem:[#allocation2 + $0xb6c] sm:$0xf0]  ;;  %3649 = vmatmul.bf16.vlgmr.msrb.gmra.mxu1 %v6633_v35  ;;  %3720 = vmatpush.bf16.msrb.mxu0 %v4331_v0  ;;  %v4619_v2 = vor.u32 %v5847_v52, %v4616_v58 }
 0x443   :  { %3693 = vmatpush.bf16.msra.mxu1 %v5639_v39  ;;  %3681 = vmatpush.bf16.msra.mxu3 %v5351_v47  ;;  %v5286_v7 = vld [vmem:[#allocation2 + $0x910] sm:$0xf]  ;;  %v5575_v9 = vor.u32 %v6091_v61, %v5574_v60  ;;  %v5751_v39 = vld [vmem:[#allocation2 + $0xd4] sm:$0xf] }
 0x444   :  { %v6019_v8 = vld [vmem:[#allocation2 + $0x92c] sm:$0xf0]  ;;  %v4235_v56 = vor.u32 %v5751_v39, %v4232_v43  ;;  %v4200_v60 = vld [vmem:[#allocation2 + $0xb0] sm:$0xf0] }
 0x445   :  { %v4678_v10 = vld [vmem:[#allocation2 + $0x450] sm:$0xf]  ;;  %v5287_v18 = vor.u32 %v6019_v8, %v5286_v7  ;;  %3659 = vmatpush.bf16.msra.mxu2 %v4711_v6  ;;  %v6039_v43 = vld [vmem:[#allocation2 + $0x9d4] sm:$0xf]  ;;  %v3457_v52 = vpop.f32.mrf.mxu0 }
 0x446   :  { %v5867_v11 = vld [vmem:[#allocation2 + $0x46c] sm:$0xf0]  ;;  %3721 = vmatpush.bf16.msrb.mxu0 %v4299_v41 }
 0x447   :  { %3694 = vmatpush.bf16.msra.mxu1 %v5607_v55  ;;  %v5542_v14 = vld [vmem:[#allocation2 + $0xb10] sm:$0xf]  ;;  %3682 = vmatpush.bf16.msra.mxu3 %v5319_v1  ;;  %v4679_v21 = vor.u32 %v5867_v11, %v4678_v10  ;;  %v6695_v55 = vadd.f32 %v6685_v15, %v3391_v45  ;;  %v4203_v15 = vor.u32 %v5743_v59, %v4200_v60  ;;  %v3392_v10 = vpop.f32.mrf.mxu3  ;;  %v5735_v11 = vld [vmem:[#allocation2 + $0x54] sm:$0xf] }
 0x448   :  { %v6083_v16 = vld [vmem:[#allocation2 + $0xb2c] sm:$0xf0]  ;;  %v4520_v45 = vld [vmem:[#allocation2 + $0x330] sm:$0xf0] }
 0x449   :  { %v5254_v22 = vld [vmem:[#allocation2 + $0x8d0] sm:$0xf]  ;;  %v5543_v25 = vor.u32 %v6083_v16, %v5542_v14  ;;  %3660 = vmatpush.bf16.msra.mxu2 %v4679_v21  ;;  %v6031_v59 = vld [vmem:[#allocation2 + $0x994] sm:$0xf] }
 0x44a   :  { %v6011_v23 = vld [vmem:[#allocation2 + $0x8ec] sm:$0xf0]  ;;  %3722 = vmatpush.bf16.msrb.mxu0 %v4267_v36  ;;  %v5352_v60 = vld [vmem:[#allocation2 + $0x9b0] sm:$0xf0] }
 0x44b   :  { %3695 = vmatpush.bf16.msra.mxu1 %v5575_v9  ;;  %v4646_v27 = vld [vmem:[#allocation2 + $0x410] sm:$0xf]  ;;  %3683 = vmatpush.bf16.msra.mxu3 %v5287_v18  ;;  %v5255_v37 = vor.u32 %v6011_v23, %v5254_v22  ;;  %v4584_v9 = vld [vmem:[#allocation2 + $0x3b0] sm:$0xf0]  ;;  %v4171_v23 = vor.u32 %v5735_v11, %v4168_v13 }
 0x44c   :  { %v5859_v28 = vld [vmem:[#allocation2 + $0x42c] sm:$0xf0]  ;;  %v5911_v18 = vld [vmem:[#allocation2 + $0x5d4] sm:$0xf]  ;;  %v4587_v20 = vor.u32 %v5839_v3, %v4584_v9  ;;  %v5355_v9 = vor.u32 %v6031_v59, %v5352_v60 }
 0x44d   :  { %v5702_v29 = vld [vmem:[#allocation2 + $0xc50] sm:$0xf]  ;;  %v4647_v40 = vor.u32 %v5859_v28, %v4646_v27  ;;  %v5831_v27 = vld [vmem:[#allocation2 + $0x354] sm:$0xf]  ;;  %v4875_v31 = vor.u32 %v5911_v18, %v4872_v19 }
 0x44e   :  { %v6123_v32 = vld [vmem:[#allocation2 + $0xc6c] sm:$0xf0]  ;;  %3723 = vmatpush.bf16.msrb.mxu0 %v4235_v56  ;;  %v4552_v28 = vld [vmem:[#allocation2 + $0x370] sm:$0xf0] }
 0x44f   :  { %v5510_v33 = vld [vmem:[#allocation2 + $0xad0] sm:$0xf]  ;;  %3696 = vmatpush.bf16.msra.mxu1 %v5543_v25  ;;  %v5703_v46 = vor.u32 %v6123_v32, %v5702_v29  ;;  %3684 = vmatpush.bf16.msra.mxu3 %v5255_v37  ;;  %v5975_v29 = vld [vmem:[#allocation2 + $0x7d4] sm:$0xf]  ;;  %v4555_v39 = vor.u32 %v5831_v27, %v4552_v28  ;;  %v3429_v10 = vpop.f32.mrf.mxu2 }
 0x450   :  { %v6075_v34 = vld [vmem:[#allocation2 + $0xaec] sm:$0xf0]  ;;  %3661 = vmatpush.bf16.msra.mxu2 %v4647_v40  ;;  %v5128_v32 = vld [vmem:[#allocation2 + $0x7f0] sm:$0xf0] }
 0x451   :  { %v5222_v26 = vld [vmem:[#allocation2 + $0x890] sm:$0xf]  ;;  %v5511_v47 = vor.u32 %v6075_v34, %v5510_v33  ;;  %v5727_v33 = vld [vmem:[#allocation2 + $0x14] sm:$0xf] }
 0x452   :  { %v6003_v44 = vld [vmem:[#allocation2 + $0x8ac] sm:$0xf0]  ;;  %3724 = vmatpush.bf16.msrb.mxu0 %v4203_v15  ;;  %v4136_v34 = vld [vmem:[#allocation2 + $0x30] sm:$0xf0] }
 0x453   :  { %v5670_v48 = vld [vmem:[#allocation2 + $0xc10] sm:$0xf]  ;;  %v5223_v57 = vor.u32 %v6003_v44, %v5222_v26  ;;  %3697 = vmatpush.bf16.msra.mxu1 %v5511_v47  ;;  %3662 = vmatmul.bf16.vlgmr.msra.gmra.mxu2 %v6631_v30  ;;  %v5903_v37 = vld [vmem:[#allocation2 + $0x594] sm:$0xf]  ;;  %v5131_v26 = vor.u32 %v5975_v29, %v5128_v32  ;;  %v4139_v47 = vor.u32 %v5727_v33, %v4136_v34  ;;  %v1246_v34 = vperm.slane %v6666_v51, 2 }
 0x454   :  { %v6115_v50 = vld [vmem:[#allocation2 + $0xc2c] sm:$0xf0]  ;;  %3712 = vmatpush.bf16.msrb.mxu2 %v5703_v46  ;;  %v5384_v40 = vld [vmem:[#allocation2 + $0x9f0] sm:$0xf0]  ;;  %v3442_v46 = vpop.f32.mrf.mxu3 }
 0x455   :  { %v5478_v53 = vld [vmem:[#allocation2 + $0xa90] sm:$0xf]  ;;  %v5671_v0 = vor.u32 %v6115_v50, %v5670_v48  ;;  %3685 = vmatpush.bf16.msra.mxu3 %v5223_v57  ;;  %v5823_v44 = vld [vmem:[#allocation2 + $0x314] sm:$0xf]  ;;  %v4843_v48 = vor.u32 %v5903_v37, %v4840_v38  ;;  %v5387_v56 = vor.u32 %v6039_v43, %v5384_v40  ;;  %v3416_v57 = vpop.f32.mrf.mxu1  ;;  %v6712_v38 = vpop.f32.mrf.mxu0 }
 0x456   :  { %v6067_v54 = vld [vmem:[#allocation2 + $0xaac] sm:$0xf0]  ;;  %3725 = vmatpush.bf16.msrb.mxu0 %v4171_v23  ;;  %v5967_v50 = vld [vmem:[#allocation2 + $0x794] sm:$0xf]  ;;  %v4523_v58 = vor.u32 %v5823_v44, %v4520_v45 }
 0x457   :  { %v5190_v61 = vld [vmem:[#allocation2 + $0x850] sm:$0xf]  ;;  %v5479_v1 = vor.u32 %v6067_v54, %v5478_v53  ;;  %v5895_v53 = vld [vmem:[#allocation2 + $0x554] sm:$0xf] }
 0x458   :  { %v5995_v62 = vld [vmem:[#allocation2 + $0x86c] sm:$0xf0]  ;;  %3713 = vmatpush.bf16.msrb.mxu2 %v5671_v0  ;;  %v4808_v54 = vld [vmem:[#allocation2 + $0x570] sm:$0xf0] }
 0x459   :  { %v5446_v6 = vld [vmem:[#allocation2 + $0xa50] sm:$0xf]  ;;  %v5191_v8 = vor.u32 %v5995_v62, %v5190_v61  ;;  %3698 = vmatpush.bf16.msra.mxu1 %v5479_v1  ;;  %v3417_v61 = vadd.f32 %v3416_v57, %v6695_v55  ;;  %v5099_v62 = vor.u32 %v5967_v50, %v5096_v49  ;;  %v5815_v0 = vld [vmem:[#allocation2 + $0x2d4] sm:$0xf]  ;;  %v4811_v3 = vor.u32 %v5895_v53, %v4808_v54 }
 0x45a   :  { %v6059_v7 = vld [vmem:[#allocation2 + $0xa6c] sm:$0xf0]  ;;  %v4488_v1 = vld [vmem:[#allocation2 + $0x2f0] sm:$0xf0]  ;;  %3726 = vmatpush.bf16.msrb.mxu0 %v4139_v47  ;;  %v3456_v54 = vadd.f32 %v6698_v17, %v1246_v34 }
 0x45b   :  { %v5158_v14 = vld [vmem:[#allocation2 + $0x810] sm:$0xf]  ;;  %v5447_v41 = vor.u32 %v6059_v7, %v5446_v6  ;;  %3686 = vmatpush.bf16.msra.mxu3 %v5191_v8  ;;  %v5959_v6 = vld [vmem:[#allocation2 + $0x754] sm:$0xf]  ;;  %v4491_v55 = vor.u32 %v5815_v0, %v4488_v1 }
 0x45c   :  { %v5987_v16 = vld [vmem:[#allocation2 + $0x82c] sm:$0xf0]  ;;  %3732 = vmatpush.bf16.msra.mxu2 %v4619_v2  ;;  %v5064_v7 = vld [vmem:[#allocation2 + $0x770] sm:$0xf0] }
 0x45d   :  { %v5414_v21 = vld [vmem:[#allocation2 + $0xa10] sm:$0xf]  ;;  %v5159_v25 = vor.u32 %v5987_v16, %v5158_v14  ;;  %3699 = vmatpush.bf16.msra.mxu1 %v5447_v41  ;;  %v5887_v15 = vld [vmem:[#allocation2 + $0x514] sm:$0xf]  ;;  %3727 = vmatmul.bf16.vlgmr.msrb.gmra.mxu0 %v6635_v42  ;;  %v3992_v14 = vmax.f32 %v6688_v24, 0.0  ;;  %v3430_v41 = vadd.f32 %v3429_v10, %v3417_v61  ;;  %v5067_v18 = vor.u32 %v5959_v6, %v5064_v7  ;;  %v3418_v33 = vpop.f32.mrf.mxu1 }
 0x45e   :  { %v6051_v22 = vld [vmem:[#allocation2 + $0xa2c] sm:$0xf0]  ;;  %v4776_v8 = vld [vmem:[#allocation2 + $0x530] sm:$0xf0]  ;;  %3771 = vmatpush.bf16.msra.mxu0 %v5387_v56  ;;  %v3431_v56 = vpop.f32.mrf.mxu2 }
 0x45f   :  { %v5415_v36 = vor.u32 %v6051_v22, %v5414_v21  ;;  %3687 = vmatpush.bf16.msra.mxu3 %v5159_v25  ;;  %v6702_v2 = vld [vmem:[#allocation11] sm:$0xff]  ;;  %v3444_v21 = vpop.f32.mrf.mxu3  ;;  %v4779_v22 = vor.u32 %v5887_v15, %v4776_v8  ;;  %v3443_v27 = vadd.f32 %v3442_v46, %v3430_v41 }
 0x460   :  { %3733 = vmatpush.bf16.msra.mxu2 %v4587_v20  ;;  %v6023_v11 = vld [vmem:[#allocation2 + $0x954] sm:$0xf]  ;;  %v4002_v16 = vperm.slane %v6702_v2, 0  ;;  %v4003_v28 = vperm.slane %v6702_v2, 1  ;;  %v5852_v56 = vld [vmem:[#allocation2 + $0x3f4] sm:$0xf0] }
 0x461   :  { %3700 = vmatpush.bf16.msra.mxu1 %v5415_v36  ;;  %v5320_v13 = vld [vmem:[#allocation2 + $0x970] sm:$0xf0]  ;;  %v3993_v43 = vmax.f32 %v3443_v27, 0.0 }
 0x462   :  { %3688 = vmatmul.bf16.vlgmr.msra.gmra.mxu3 %v6640_v4  ;;  %v5807_v19 = vld [vmem:[#allocation2 + $0x294] sm:$0xf]  ;;  %3772 = vmatpush.bf16.msra.mxu0 %v5355_v9 }
 0x463   :  { %3745 = vmatpush.bf16.msrb.mxu3 %v4875_v31  ;;  %5720 = vmatmul.msk.bf16.vlgmr.msrb.gmra.mxu2 %vm3260_vm7, %v6650_v63  ;;  %v4456_v20 = vld [vmem:[#allocation2 + $0x2b0] sm:$0xf0]  ;;  %v5323_v31 = vor.u32 %v6023_v11, %v5320_v13 }
 0x464   :  { %3734 = vmatpush.bf16.msra.mxu2 %v4555_v39  ;;  %3701 = vmatmul.bf16.vlgmr.msra.gmra.mxu1 %v6642_v5  ;;  %v5951_v23 = vld [vmem:[#allocation2 + $0x714] sm:$0xf]  ;;  %v4459_v32 = vor.u32 %v5807_v19, %v4456_v20  ;;  %v4018_v39 = vmul.f32 %v4002_v16, %v3992_v14  ;;  %v3509_v16 = vpop.f32.mrf.mxu0 }
 0x465   :  { %3758 = vmatpush.bf16.msrb.mxu1 %v5131_v26  ;;  %v5032_v25 = vld [vmem:[#allocation2 + $0x730] sm:$0xf0] }
 0x466   :  { %v5879_v29 = vld [vmem:[#allocation2 + $0x4d4] sm:$0xf]  ;;  %v5035_v40 = vor.u32 %v5951_v23, %v5032_v25  ;;  %3773 = vmatpush.bf16.msra.mxu0 %v5323_v31  ;;  %v4026_v59 = vsel %vm6818_vm9, %v4018_v39, 0.0 }
 0x467   :  { %3746 = vmatpush.bf16.msrb.mxu3 %v4843_v48  ;;  %v4744_v24 = vld [vmem:[#allocation2 + $0x4f0] sm:$0xf0]  ;;  %v4019_v48 = vmul.f32 %v4003_v28, %v3993_v43  ;;  %v3468_v9 = vpop.f32.mrf.mxu3 }
 0x468   :  { %3735 = vmatpush.bf16.msra.mxu2 %v4523_v58  ;;  %v6015_v36 = vld [vmem:[#allocation2 + $0x914] sm:$0xf]  ;;  %v4747_v45 = vor.u32 %v5879_v29, %v4744_v24  ;;  %v6719_v11 = vadd.f32 %v3468_v9, %v3456_v54  ;;  %v5844_v9 = vld [vmem:[#allocation2 + $0x3b4] sm:$0xf0] }
 0x469   :  { %3759 = vmatpush.bf16.msrb.mxu1 %v5099_v62  ;;  %v5288_v37 = vld [vmem:[#allocation2 + $0x930] sm:$0xf0]  ;;  %v4027_v60 = vsel %vm6819_vm10, %v4019_v48, 0.0 }
 0x46a   :  { %v5799_v26 = vld [vmem:[#allocation2 + $0x254] sm:$0xf]  ;;  %v5291_v52 = vor.u32 %v6015_v36, %v5288_v37  ;;  %v6717_v1 = vadd.f32 %v4027_v60, %v4026_v59 }
 0x46b   :  { %3747 = vmatpush.bf16.msrb.mxu3 %v4811_v3  ;;  %v4424_v44 = vld [vmem:[#allocation2 + $0x270] sm:$0xf0] }
 0x46c   :  { %3736 = vmatpush.bf16.msra.mxu2 %v4491_v55  ;;  %v5943_v46 = vld [vmem:[#allocation2 + $0x6d4] sm:$0xf]  ;;  %v4427_v51 = vor.u32 %v5799_v26, %v4424_v44  ;;  %3774 = vmatpush.bf16.msra.mxu0 %v5291_v52 }
 0x46d   :  { %3760 = vmatpush.bf16.msrb.mxu1 %v5067_v18  ;;  %v5000_v47 = vld [vmem:[#allocation2 + $0x6f0] sm:$0xf0] }
 0x46e   :  { %v5871_v50 = vld [vmem:[#allocation2 + $0x494] sm:$0xf]  ;;  %v5003_v61 = vor.u32 %v5943_v46, %v5000_v47  ;;  %v4366_v46 = vld [vmem:[#allocation2 + $0x1d8] sm:$0xf] }
 0x46f   :  { %3748 = vmatpush.bf16.msrb.mxu3 %v4779_v22  ;;  %v4712_v49 = vld [vmem:[#allocation2 + $0x4b0] sm:$0xf0]  ;;  %v5788_v47 = vld [vmem:[#allocation2 + $0x1f4] sm:$0xf0]  ;;  %v3470_v48 = vpop.f32.mrf.mxu3 }
 0x470   :  { %3737 = vmatpush.bf16.msra.mxu2 %v4459_v32  ;;  %v5791_v53 = vld [vmem:[#allocation2 + $0x214] sm:$0xf]  ;;  %v4715_v3 = vor.u32 %v5871_v50, %v4712_v49  ;;  %v4622_v49 = vld [vmem:[#allocation2 + $0x3d8] sm:$0xf]  ;;  %v4367_v59 = vor.u32 %v5788_v47, %v4366_v46 }
 0x471   :  { %v6007_v57 = vld [vmem:[#allocation2 + $0x8d4] sm:$0xf]  ;;  %3761 = vmatpush.bf16.msrb.mxu1 %v5035_v40  ;;  %v5892_v46 = vld [vmem:[#allocation2 + $0x534] sm:$0xf0] }
 0x472   :  { %v5256_v58 = vld [vmem:[#allocation2 + $0x8f0] sm:$0xf0] }
 0x473   :  { %v4392_v62 = vld [vmem:[#allocation2 + $0x230] sm:$0xf0]  ;;  %3749 = vmatpush.bf16.msrb.mxu3 %v4747_v45  ;;  %v5259_v10 = vor.u32 %v6007_v57, %v5256_v58  ;;  %v4878_v57 = vld [vmem:[#allocation2 + $0x5d8] sm:$0xf] }
 0x474   :  { %v6103_v0 = vld [vmem:[#allocation2 + $0xbd4] sm:$0xf]  ;;  %3738 = vmatpush.bf16.msra.mxu2 %v4427_v51  ;;  %v4395_v55 = vor.u32 %v5791_v53, %v4392_v62  ;;  %v5916_v58 = vld [vmem:[#allocation2 + $0x5f4] sm:$0xf0] }
 0x475   :  { %v5640_v6 = vld [vmem:[#allocation2 + $0xbf0] sm:$0xf0]  ;;  %3762 = vmatpush.bf16.msrb.mxu1 %v5003_v61  ;;  %3775 = vmatpush.bf16.msra.mxu0 %v5259_v10  ;;  %v4846_v10 = vld [vmem:[#allocation2 + $0x598] sm:$0xf] }
 0x476   :  { %v5935_v7 = vld [vmem:[#allocation2 + $0x694] sm:$0xf]  ;;  %v5643_v41 = vor.u32 %v6103_v0, %v5640_v6  ;;  %v4334_v0 = vld [vmem:[#allocation2 + $0x198] sm:$0xf] }
 0x477   :  { %v4968_v15 = vld [vmem:[#allocation2 + $0x6b0] sm:$0xf0]  ;;  %3750 = vmatpush.bf16.msrb.mxu3 %v4715_v3  ;;  %v5780_v3 = vld [vmem:[#allocation2 + $0x1b4] sm:$0xf0] }
 0x478   :  { %v5863_v8 = vld [vmem:[#allocation2 + $0x454] sm:$0xf]  ;;  %v4971_v18 = vor.u32 %v5935_v7, %v4968_v15  ;;  %3739 = vmatpush.bf16.msra.mxu2 %v4395_v55  ;;  %v4623_v7 = vor.u32 %v5852_v56, %v4622_v49  ;;  %v4590_v15 = vld [vmem:[#allocation2 + $0x398] sm:$0xf] }
 0x479   :  { %v4680_v17 = vld [vmem:[#allocation2 + $0x470] sm:$0xf0]  ;;  %v5908_v55 = vld [vmem:[#allocation2 + $0x5b4] sm:$0xf0] }
 0x47a   :  { %v5999_v13 = vld [vmem:[#allocation2 + $0x894] sm:$0xf]  ;;  %v4683_v20 = vor.u32 %v5863_v8, %v4680_v17  ;;  %3763 = vmatpush.bf16.msrb.mxu1 %v4971_v18  ;;  %v4879_v8 = vor.u32 %v5916_v58, %v4878_v57  ;;  %v5820_v58 = vld [vmem:[#allocation2 + $0x2f4] sm:$0xf0] }
 0x47b   :  { %v5224_v14 = vld [vmem:[#allocation2 + $0x8b0] sm:$0xf0]  ;;  %3740 = vmatmul.bf16.vlgmr.msra.gmra.mxu2 %v6633_v35 }
 0x47c   :  { %v6095_v19 = vld [vmem:[#allocation2 + $0xb94] sm:$0xf]  ;;  %v5227_v29 = vor.u32 %v5999_v13, %v5224_v14  ;;  %3784 = vmatpush.bf16.msrb.mxu2 %v5643_v41  ;;  %3751 = vmatpush.bf16.msrb.mxu3 %v4683_v20  ;;  %v3481_v13 = vpop.f32.mrf.mxu1  ;;  %v4335_v14 = vor.u32 %v5780_v3, %v4334_v0  ;;  %v5772_v20 = vld [vmem:[#allocation2 + $0x174] sm:$0xf0] }
 0x47d   :  { %v5608_v21 = vld [vmem:[#allocation2 + $0xbb0] sm:$0xf0]  ;;  %v3482_v18 = vadd.f32 %v3481_v13, %v6719_v11  ;;  %v5134_v0 = vld [vmem:[#allocation2 + $0x7d8] sm:$0xf] }
 0x47e   :  { %v5927_v22 = vld [vmem:[#allocation2 + $0x654] sm:$0xf]  ;;  %v5611_v33 = vor.u32 %v6095_v19, %v5608_v21  ;;  %3776 = vmatpush.bf16.msra.mxu0 %v5227_v29  ;;  %v4302_v19 = vld [vmem:[#allocation2 + $0x158] sm:$0xf]  ;;  %v4591_v21 = vor.u32 %v5844_v9, %v4590_v15 }
 0x47f   :  { %v4936_v23 = vld [vmem:[#allocation2 + $0x670] sm:$0xf0]  ;;  %v5900_v29 = vld [vmem:[#allocation2 + $0x574] sm:$0xf0] }
 0x480   :  { %v5855_v25 = vld [vmem:[#allocation2 + $0x414] sm:$0xf]  ;;  %v4939_v34 = vor.u32 %v5927_v22, %v4936_v23  ;;  %3785 = vmatpush.bf16.msrb.mxu2 %v5611_v33  ;;  %v4558_v22 = vld [vmem:[#allocation2 + $0x358] sm:$0xf]  ;;  %v4847_v23 = vor.u32 %v5908_v55, %v4846_v10  ;;  %v4004_v55 = vperm.slane %v6702_v2, 2 }
 0x481   :  { %v4648_v27 = vld [vmem:[#allocation2 + $0x430] sm:$0xf0]  ;;  %v5748_v15 = vld [vmem:[#allocation2 + $0xb4] sm:$0xf0] }
 0x482   :  { %v6119_v28 = vld [vmem:[#allocation2 + $0xc54] sm:$0xf]  ;;  %v4651_v39 = vor.u32 %v5855_v25, %v4648_v27  ;;  %3764 = vmatpush.bf16.msrb.mxu1 %v4939_v34  ;;  %v5836_v27 = vld [vmem:[#allocation2 + $0x374] sm:$0xf0] }
 0x483   :  { %v5704_v24 = vld [vmem:[#allocation2 + $0xc70] sm:$0xf0]  ;;  %v4270_v34 = vld [vmem:[#allocation2 + $0x118] sm:$0xf] }
 0x484   :  { %v5991_v31 = vld [vmem:[#allocation2 + $0x854] sm:$0xf]  ;;  %v5707_v44 = vor.u32 %v6119_v28, %v5704_v24  ;;  %3752 = vmatpush.bf16.msrb.mxu3 %v4651_v39  ;;  %v4814_v28 = vld [vmem:[#allocation2 + $0x558] sm:$0xf]  ;;  %v3494_v24 = vpop.f32.mrf.mxu2  ;;  %v3483_v47 = vpop.f32.mrf.mxu1 }
 0x485   :  { %v5192_v32 = vld [vmem:[#allocation2 + $0x870] sm:$0xf0]  ;;  %v3495_v33 = vadd.f32 %v3494_v24, %v3482_v18  ;;  %v4526_v39 = vld [vmem:[#allocation2 + $0x318] sm:$0xf] }
 0x486   :  { %v6087_v36 = vld [vmem:[#allocation2 + $0xb54] sm:$0xf]  ;;  %v5195_v50 = vor.u32 %v5991_v31, %v5192_v32  ;;  %v4303_v31 = vor.u32 %v5772_v20, %v4302_v19 }
 0x487   :  { %v5576_v37 = vld [vmem:[#allocation2 + $0xb70] sm:$0xf0]  ;;  %3753 = vmatmul.bf16.vlgmr.msrb.gmra.mxu3 %v6631_v30 }
 0x488   :  { %v5919_v43 = vld [vmem:[#allocation2 + $0x614] sm:$0xf]  ;;  %v5579_v53 = vor.u32 %v6087_v36, %v5576_v37  ;;  %3803 = vmatpush.bf16.msra.mxu3 %v5707_v44  ;;  %3777 = vmatpush.bf16.msra.mxu0 %v5195_v50  ;;  %v5764_v36 = vld [vmem:[#allocation2 + $0x134] sm:$0xf0]  ;;  %v4559_v37 = vor.u32 %v5836_v27, %v4558_v22 }
 0x489   :  { %v4904_v40 = vld [vmem:[#allocation2 + $0x630] sm:$0xf0]  ;;  %v5828_v44 = vld [vmem:[#allocation2 + $0x334] sm:$0xf0]  ;;  %v4271_v48 = vor.u32 %v5764_v36, %v4270_v34 }
 0x48a   :  { %v6111_v26 = vld [vmem:[#allocation2 + $0xc14] sm:$0xf]  ;;  %v4907_v54 = vor.u32 %v5919_v43, %v4904_v40  ;;  %3786 = vmatpush.bf16.msrb.mxu2 %v5579_v53  ;;  %v4815_v43 = vor.u32 %v5900_v29, %v4814_v28  ;;  %v3508_v40 = vadd.f32 %v6712_v38, %v3495_v33  ;;  %v4527_v53 = vor.u32 %v5828_v44, %v4526_v39  ;;  %v4750_v38 = vld [vmem:[#allocation2 + $0x4d8] sm:$0xf] }
 0x48b   :  { %v5672_v45 = vld [vmem:[#allocation2 + $0xc30] sm:$0xf0]  ;;  %v4718_v22 = vld [vmem:[#allocation2 + $0x498] sm:$0xf] }
 0x48c   :  { %v5983_v52 = vld [vmem:[#allocation2 + $0x814] sm:$0xf]  ;;  %v5675_v62 = vor.u32 %v6111_v26, %v5672_v45  ;;  %3765 = vmatpush.bf16.msrb.mxu1 %v4907_v54  ;;  %v4782_v45 = vld [vmem:[#allocation2 + $0x518] sm:$0xf]  ;;  %v3496_v3 = vpop.f32.mrf.mxu2  ;;  %v3533_v18 = vpop.f32.mrf.mxu1 }
 0x48d   :  { %v5160_v51 = vld [vmem:[#allocation2 + $0x830] sm:$0xf0]  ;;  %v4494_v54 = vld [vmem:[#allocation2 + $0x2d8] sm:$0xf]  ;;  %v4783_v56 = vor.u32 %v5892_v46, %v4782_v45 }
 0x48e   :  { %v6079_v60 = vld [vmem:[#allocation2 + $0xb14] sm:$0xf]  ;;  %v5163_v6 = vor.u32 %v5983_v52, %v5160_v51  ;;  %3804 = vmatpush.bf16.msra.mxu3 %v5675_v62  ;;  %v4238_v52 = vld [vmem:[#allocation2 + $0xd8] sm:$0xf] }
 0x48f   :  { %v5544_v61 = vld [vmem:[#allocation2 + $0xb30] sm:$0xf0]  ;;  %3766 = vmatmul.bf16.vlgmr.msrb.gmra.mxu1 %v6644_v12  ;;  %v5756_v51 = vld [vmem:[#allocation2 + $0xf4] sm:$0xf0] }
 0x490   :  { %v5547_v17 = vor.u32 %v6079_v60, %v5544_v61  ;;  %3810 = vmatpush.bf16.msra.mxu1 %v4367_v59  ;;  %v6071_v16 = vld [vmem:[#allocation2 + $0xad4] sm:$0xf]  ;;  %3778 = vmatpush.bf16.msra.mxu0 %v5163_v6  ;;  %v5884_v59 = vld [vmem:[#allocation2 + $0x4f4] sm:$0xf0]  ;;  %v4239_v60 = vor.u32 %v5756_v51, %v4238_v52 }
 0x491   :  { %v5512_v41 = vld [vmem:[#allocation2 + $0xaf0] sm:$0xf0]  ;;  %v5980_v6 = vld [vmem:[#allocation2 + $0x7f4] sm:$0xf0]  ;;  %v4751_v9 = vor.u32 %v5884_v59, %v4750_v38 }
 0x492   :  { %3823 = vmatpush.bf16.msrb.mxu3 %v4623_v7  ;;  %3787 = vmatpush.bf16.msrb.mxu2 %v5547_v17  ;;  %v5515_v25 = vor.u32 %v6071_v16, %v5512_v41  ;;  %v6063_v11 = vld [vmem:[#allocation2 + $0xa94] sm:$0xf]  ;;  %v4206_v7 = vld [vmem:[#allocation2 + $0x98] sm:$0xf]  ;;  %v4495_v17 = vor.u32 %v5820_v58, %v4494_v54  ;;  %v6728_v41 = vpop.f32.mrf.mxu0  ;;  %v5135_v19 = vor.u32 %v5980_v6, %v5134_v0 }
 0x493   :  { %v5480_v32 = vld [vmem:[#allocation2 + $0xab0] sm:$0xf0]  ;;  %3779 = vmatmul.bf16.vlgmr.msra.gmra.mxu0 %v6640_v4  ;;  %v5812_v16 = vld [vmem:[#allocation2 + $0x2b4] sm:$0xf0]  ;;  %v4207_v20 = vor.u32 %v5748_v15, %v4206_v7 }
 0x494   :  { %3836 = vmatpush.bf16.msrb.mxu0 %v4879_v8  ;;  %3811 = vmatpush.bf16.msra.mxu1 %v4335_v14  ;;  %v5483_v26 = vor.u32 %v6063_v11, %v5480_v32  ;;  %v6055_v50 = vld [vmem:[#allocation2 + $0xa54] sm:$0xf]  ;;  %v3520_v8 = vpop.f32.mrf.mxu3  ;;  %v4462_v14 = vld [vmem:[#allocation2 + $0x298] sm:$0xf] }
 0x495   :  { %v5448_v49 = vld [vmem:[#allocation2 + $0xa70] sm:$0xf0]  ;;  %v3521_v10 = vadd.f32 %v3520_v8, %v3508_v40  ;;  %v5972_v27 = vld [vmem:[#allocation2 + $0x7b4] sm:$0xf0]  ;;  %v4463_v24 = vor.u32 %v5812_v16, %v4462_v14 }
 0x496   :  { %3824 = vmatpush.bf16.msrb.mxu3 %v4591_v21  ;;  %3788 = vmatpush.bf16.msrb.mxu2 %v5515_v25  ;;  %v5451_v57 = vor.u32 %v6055_v50, %v5448_v49  ;;  %v6047_v61 = vld [vmem:[#allocation2 + $0xa14] sm:$0xf]  ;;  %v5102_v21 = vld [vmem:[#allocation2 + $0x798] sm:$0xf] }
 0x497   :  { %v5416_v62 = vld [vmem:[#allocation2 + $0xa30] sm:$0xf0]  ;;  %5721 = vmatmul.msk.bf16.vlgmr.msra.gmra.mxu3 %vm3260_vm7, %v6650_v63  ;;  %v3534_v25 = vadd.f32 %v3533_v18, %v3521_v10  ;;  %v4174_v28 = vld [vmem:[#allocation2 + $0x58] sm:$0xf]  ;;  %v5103_v36 = vor.u32 %v5972_v27, %v5102_v21 }
 0x498   :  { %3837 = vmatpush.bf16.msrb.mxu0 %v4847_v23  ;;  %3812 = vmatpush.bf16.msra.mxu1 %v4303_v31  ;;  %v5419_v13 = vor.u32 %v6047_v61, %v5416_v62  ;;  %v5876_v23 = vld [vmem:[#allocation2 + $0x4b4] sm:$0xf0]  ;;  %v3535_v61 = vpop.f32.mrf.mxu1 }
 0x499   :  { %v5740_v29 = vld [vmem:[#allocation2 + $0x74] sm:$0xf0]  ;;  %v3994_v11 = vmax.f32 %v3534_v25, 0.0  ;;  %v4719_v34 = vor.u32 %v5876_v23, %v4718_v22  ;;  %v6737_v22 = vld [vmem:[#allocation10] sm:$0xff] }
 0x49a   :  { %3825 = vmatpush.bf16.msrb.mxu3 %v4559_v37  ;;  %3789 = vmatpush.bf16.msrb.mxu2 %v5483_v26  ;;  %v4430_v31 = vld [vmem:[#allocation2 + $0x258] sm:$0xf]  ;;  %v4175_v37 = vor.u32 %v5740_v29, %v4174_v28  ;;  %v1247_v23 = vperm.slane %v6737_v22, 3  ;;  %v5848_v29 = vld [vmem:[#allocation2 + $0x3dc] sm:$0xf] }
 0x49b   :  { %v5804_v32 = vld [vmem:[#allocation2 + $0x274] sm:$0xf0]  ;;  %v4020_v26 = vmul.f32 %v4004_v55, %v3994_v11 }
 0x49c   :  { %3838 = vmatpush.bf16.msrb.mxu0 %v4815_v43  ;;  %3813 = vmatpush.bf16.msra.mxu1 %v4271_v48  ;;  %v5070_v33 = vld [vmem:[#allocation2 + $0x758] sm:$0xf]  ;;  %v4431_v47 = vor.u32 %v5804_v32, %v4430_v31  ;;  %v3522_v52 = vpop.f32.mrf.mxu3 }
 0x49d   :  { %v5964_v39 = vld [vmem:[#allocation2 + $0x774] sm:$0xf0]  ;;  %v4029_v51 = vsel %vm6820_vm13, %v4020_v26, 0.0 }
 0x49e   :  { %3826 = vmatpush.bf16.msrb.mxu3 %v4527_v53  ;;  %3790 = vmatpush.bf16.msrb.mxu2 %v5451_v57  ;;  %v4686_v43 = vld [vmem:[#allocation2 + $0x458] sm:$0xf]  ;;  %v3561_v57 = vpop.f32.mrf.mxu0  ;;  %v6735_v58 = vadd.f32 %v4029_v51, %v6717_v1  ;;  %v5071_v38 = vor.u32 %v5964_v39, %v5070_v33 }
 0x49f   :  { %v5868_v40 = vld [vmem:[#allocation2 + $0x474] sm:$0xf0] }
 0x4a0   :  { %3839 = vmatpush.bf16.msrb.mxu0 %v4783_v56  ;;  %3814 = vmatpush.bf16.msra.mxu1 %v4239_v60  ;;  %v4142_v44 = vld [vmem:[#allocation2 + $0x18] sm:$0xf]  ;;  %v4687_v56 = vor.u32 %v5868_v40, %v4686_v43 }
 0x4a1   :  { %v5732_v45 = vld [vmem:[#allocation2 + $0x34] sm:$0xf0] }
 0x4a2   :  { %3827 = vmatpush.bf16.msrb.mxu3 %v4495_v17  ;;  %3791 = vmatpush.bf16.msrb.mxu2 %v5419_v13  ;;  %v4398_v46 = vld [vmem:[#allocation2 + $0x218] sm:$0xf]  ;;  %v4143_v59 = vor.u32 %v5732_v45, %v4142_v44 }
 0x4a3   :  { %v5796_v48 = vld [vmem:[#allocation2 + $0x234] sm:$0xf0] }
 0x4a4   :  { %3840 = vmatpush.bf16.msrb.mxu0 %v4751_v9  ;;  %3815 = vmatpush.bf16.msra.mxu1 %v4207_v20  ;;  %v5390_v50 = vld [vmem:[#allocation2 + $0x9d8] sm:$0xf]  ;;  %v4399_v8 = vor.u32 %v5796_v48, %v4398_v46  ;;  %v3572_v46 = vpop.f32.mrf.mxu1  ;;  %v4592_v48 = vld [vmem:[#allocation2 + $0x3b8] sm:$0xf0] }
 0x4a5   :  { %3792 = vmatmul.bf16.vlgmr.msrb.gmra.mxu2 %v6642_v5  ;;  %v6044_v49 = vld [vmem:[#allocation2 + $0x9f4] sm:$0xf0] }
 0x4a6   :  { %3849 = vmatpush.bf16.msra.mxu2 %v5135_v19  ;;  %3828 = vmatpush.bf16.msrb.mxu3 %v4463_v24  ;;  %v5646_v53 = vld [vmem:[#allocation2 + $0xbd8] sm:$0xf]  ;;  %v5391_v3 = vor.u32 %v6044_v49, %v5390_v50  ;;  %v4624_v24 = vld [vmem:[#allocation2 + $0x3f8] sm:$0xf0] }
 0x4a7   :  { %v6108_v54 = vld [vmem:[#allocation2 + $0xbf4] sm:$0xf0]  ;;  %v4627_v44 = vor.u32 %v5848_v29, %v4624_v24 }
 0x4a8   :  { %3841 = vmatpush.bf16.msrb.mxu0 %v4719_v34  ;;  %3816 = vmatpush.bf16.msra.mxu1 %v4175_v37  ;;  %v5038_v60 = vld [vmem:[#allocation2 + $0x718] sm:$0xf]  ;;  %v5647_v10 = vor.u32 %v6108_v54, %v5646_v53  ;;  %v3546_v34 = vpop.f32.mrf.mxu2 }
 0x4a9   :  { %v4654_v62 = vld [vmem:[#allocation2 + $0x418] sm:$0xf]  ;;  %v3547_v26 = vadd.f32 %v3546_v34, %v1247_v23  ;;  %v4528_v23 = vld [vmem:[#allocation2 + $0x338] sm:$0xf0] }
 0x4aa   :  { %3850 = vmatpush.bf16.msra.mxu2 %v5103_v36  ;;  %v5860_v0 = vld [vmem:[#allocation2 + $0x434] sm:$0xf0]  ;;  %3829 = vmatpush.bf16.msrb.mxu3 %v4431_v47  ;;  %v5840_v47 = vld [vmem:[#allocation2 + $0x39c] sm:$0xf] }
 0x4ab   :  { %v5956_v6 = vld [vmem:[#allocation2 + $0x734] sm:$0xf0]  ;;  %v4655_v13 = vor.u32 %v5860_v0, %v4654_v62  ;;  %v3560_v49 = vadd.f32 %v6728_v41, %v3547_v26  ;;  %v5832_v62 = vld [vmem:[#allocation2 + $0x35c] sm:$0xf] }
 0x4ac   :  { %v5710_v7 = vld [vmem:[#allocation2 + $0xc58] sm:$0xf]  ;;  %3842 = vmatpush.bf16.msrb.mxu0 %v4687_v56  ;;  %3817 = vmatpush.bf16.msra.mxu1 %v4143_v59  ;;  %v5039_v14 = vor.u32 %v5956_v6, %v5038_v60  ;;  %v4595_v59 = vor.u32 %v5840_v47, %v4592_v48  ;;  %v4560_v0 = vld [vmem:[#allocation2 + $0x378] sm:$0xf0] }
 0x4ad   :  { %v6124_v15 = vld [vmem:[#allocation2 + $0xc74] sm:$0xf0]  ;;  %v3573_v60 = vadd.f32 %v3572_v46, %v3560_v49  ;;  %v5768_v47 = vld [vmem:[#allocation2 + $0x15c] sm:$0xf] }
 0x4ae   :  { %v5358_v17 = vld [vmem:[#allocation2 + $0x998] sm:$0xf]  ;;  %3851 = vmatpush.bf16.msra.mxu2 %v5071_v38  ;;  %v5711_v20 = vor.u32 %v6124_v15, %v5710_v7  ;;  %3830 = vmatpush.bf16.msrb.mxu3 %v4399_v8  ;;  %v4304_v48 = vld [vmem:[#allocation2 + $0x178] sm:$0xf0] }
 0x4af   :  { %v6036_v9 = vld [vmem:[#allocation2 + $0x9b4] sm:$0xf0]  ;;  %3818 = vmatmul.bf16.vlgmr.msra.gmra.mxu1 %v6635_v42 }
 0x4b0   :  { %v5614_v55 = vld [vmem:[#allocation2 + $0xb98] sm:$0xf]  ;;  %3862 = vmatpush.bf16.msrb.mxu1 %v5391_v3  ;;  %v5359_v21 = vor.u32 %v6036_v9, %v5358_v17  ;;  %3843 = vmatpush.bf16.msrb.mxu0 %v4655_v13  ;;  %v6744_v3 = vpop.f32.mrf.mxu0  ;;  %v3548_v8 = vpop.f32.mrf.mxu2  ;;  %v4368_v13 = vld [vmem:[#allocation2 + $0x1f8] sm:$0xf0] }
 0x4b1   :  { %v6100_v1 = vld [vmem:[#allocation2 + $0xbb4] sm:$0xf0]  ;;  %3831 = vmatmul.bf16.vlgmr.msrb.gmra.mxu3 %v6633_v35 }
 0x4b2   :  { %v5006_v16 = vld [vmem:[#allocation2 + $0x6d8] sm:$0xf]  ;;  %3875 = vmatpush.bf16.msra.mxu3 %v5647_v10  ;;  %v5615_v31 = vor.u32 %v6100_v1, %v5614_v55  ;;  %3852 = vmatpush.bf16.msra.mxu2 %v5039_v14  ;;  %v5784_v55 = vld [vmem:[#allocation2 + $0x1dc] sm:$0xf]  ;;  %v4563_v1 = vor.u32 %v5832_v62, %v4560_v0  ;;  %v4307_v62 = vor.u32 %v5768_v47, %v4304_v48 }
 0x4b3   :  { %v5948_v18 = vld [vmem:[#allocation2 + $0x6f4] sm:$0xf0]  ;;  %3844 = vmatmul.bf16.vlgmr.msrb.gmra.mxu0 %v6631_v30  ;;  %v4371_v24 = vor.u32 %v5784_v55, %v4368_v13  ;;  %v4848_v55 = vld [vmem:[#allocation2 + $0x5b8] sm:$0xf0] }
 0x4b4   :  { %v5326_v19 = vld [vmem:[#allocation2 + $0x958] sm:$0xf]  ;;  %v5007_v11 = vor.u32 %v5948_v18, %v5006_v16  ;;  %3894 = vmatpush.bf16.msra.mxu0 %v5711_v20  ;;  %3863 = vmatpush.bf16.msrb.mxu1 %v5359_v21  ;;  %v3574_v18 = vpop.f32.mrf.mxu1  ;;  %v3585_v20 = vpop.f32.mrf.mxu3  ;;  %v5824_v21 = vld [vmem:[#allocation2 + $0x31c] sm:$0xf] }
 0x4b5   :  { %v5678_v25 = vld [vmem:[#allocation2 + $0xc18] sm:$0xf]  ;;  %v6746_v29 = vadd.f32 %v3585_v20, %v3573_v60  ;;  %v5800_v13 = vld [vmem:[#allocation2 + $0x25c] sm:$0xf] }
 0x4b6   :  { %v6116_v27 = vld [vmem:[#allocation2 + $0xc34] sm:$0xf0]  ;;  %3876 = vmatpush.bf16.msra.mxu3 %v5615_v31  ;;  %3853 = vmatpush.bf16.msra.mxu2 %v5007_v11  ;;  %v5776_v11 = vld [vmem:[#allocation2 + $0x19c] sm:$0xf] }
 0x4b7   :  { %v6028_v28 = vld [vmem:[#allocation2 + $0x974] sm:$0xf0]  ;;  %v5679_v36 = vor.u32 %v6116_v27, %v5678_v25  ;;  %v5968_v18 = vld [vmem:[#allocation2 + $0x79c] sm:$0xf] }
 0x4b8   :  { %v5582_v32 = vld [vmem:[#allocation2 + $0xb58] sm:$0xf]  ;;  %v5327_v37 = vor.u32 %v6028_v28, %v5326_v19  ;;  %v5752_v20 = vld [vmem:[#allocation2 + $0xdc] sm:$0xf] }
 0x4b9   :  { %v6092_v33 = vld [vmem:[#allocation2 + $0xb74] sm:$0xf0]  ;;  %3895 = vmatpush.bf16.msra.mxu0 %v5679_v36  ;;  %v4531_v36 = vor.u32 %v5824_v21, %v4528_v23  ;;  %v4240_v21 = vld [vmem:[#allocation2 + $0xf8] sm:$0xf0] }
 0x4ba   :  { %v4974_v39 = vld [vmem:[#allocation2 + $0x698] sm:$0xf]  ;;  %v5583_v50 = vor.u32 %v6092_v33, %v5582_v32  ;;  %3864 = vmatpush.bf16.msrb.mxu1 %v5327_v37  ;;  %v4336_v32 = vld [vmem:[#allocation2 + $0x1b8] sm:$0xf0]  ;;  %v3613_v37 = vpop.f32.mrf.mxu0 }
 0x4bb   :  { %v5940_v43 = vld [vmem:[#allocation2 + $0x6b4] sm:$0xf0]  ;;  %v5072_v37 = vld [vmem:[#allocation2 + $0x778] sm:$0xf0] }
 0x4bc   :  { %v5294_v40 = vld [vmem:[#allocation2 + $0x918] sm:$0xf]  ;;  %v4975_v52 = vor.u32 %v5940_v43, %v4974_v39  ;;  %3877 = vmatpush.bf16.msra.mxu3 %v5583_v50  ;;  %v5816_v43 = vld [vmem:[#allocation2 + $0x2dc] sm:$0xf] }
 0x4bd   :  { %v6020_v45 = vld [vmem:[#allocation2 + $0x934] sm:$0xf0]  ;;  %3914 = vmatpush.bf16.msrb.mxu0 %v4627_v44  ;;  %v4784_v47 = vld [vmem:[#allocation2 + $0x538] sm:$0xf0] }
 0x4be   :  { %v5550_v51 = vld [vmem:[#allocation2 + $0xb18] sm:$0xf]  ;;  %v5295_v54 = vor.u32 %v6020_v45, %v5294_v40  ;;  %3854 = vmatpush.bf16.msra.mxu2 %v4975_v52  ;;  %v4496_v40 = vld [vmem:[#allocation2 + $0x2f8] sm:$0xf0]  ;;  %v4339_v45 = vor.u32 %v5776_v11, %v4336_v32 }
 0x4bf   :  { %v6084_v53 = vld [vmem:[#allocation2 + $0xb34] sm:$0xf0]  ;;  %v5912_v52 = vld [vmem:[#allocation2 + $0x5dc] sm:$0xf] }
 0x4c0   :  { %v4942_v56 = vld [vmem:[#allocation2 + $0x658] sm:$0xf]  ;;  %v5551_v41 = vor.u32 %v6084_v53, %v5550_v51  ;;  %3865 = vmatpush.bf16.msrb.mxu1 %v5295_v54  ;;  %v6748_v51 = vpop.f32.mrf.mxu1  ;;  %v4499_v53 = vor.u32 %v5816_v43, %v4496_v40  ;;  %v5960_v11 = vld [vmem:[#allocation2 + $0x75c] sm:$0xf] }
 0x4c1   :  { %v5932_v57 = vld [vmem:[#allocation2 + $0x674] sm:$0xf0]  ;;  %3915 = vmatpush.bf16.msrb.mxu0 %v4595_v59  ;;  %v3587_v59 = vpop.f32.mrf.mxu3  ;;  %v5792_v32 = vld [vmem:[#allocation2 + $0x21c] sm:$0xf] }
 0x4c2   :  { %v5262_v38 = vld [vmem:[#allocation2 + $0x8d8] sm:$0xf]  ;;  %v4943_v6 = vor.u32 %v5932_v57, %v4942_v56  ;;  %3878 = vmatpush.bf16.msra.mxu3 %v5551_v41  ;;  %v4880_v56 = vld [vmem:[#allocation2 + $0x5f8] sm:$0xf0]  ;;  %v4005_v59 = vperm.slane %v6702_v2, 3 }
 0x4c3   :  { %v6012_v61 = vld [vmem:[#allocation2 + $0x8f4] sm:$0xf0]  ;;  %v5808_v57 = vld [vmem:[#allocation2 + $0x29c] sm:$0xf]  ;;  %5722 = vmatmul.msk.bf16.vlgmr.msra.gmra.mxu0 %vm3260_vm7, %v6650_v63  ;;  %v4883_v8 = vor.u32 %v5912_v52, %v4880_v56 }
 0x4c4   :  { %v5518_v7 = vld [vmem:[#allocation2 + $0xad8] sm:$0xf]  ;;  %v5263_v17 = vor.u32 %v6012_v61, %v5262_v38  ;;  %3855 = vmatpush.bf16.msra.mxu2 %v4943_v6  ;;  %v4464_v38 = vld [vmem:[#allocation2 + $0x2b8] sm:$0xf0] }
 0x4c5   :  { %v6076_v15 = vld [vmem:[#allocation2 + $0xaf4] sm:$0xf0]  ;;  %3916 = vmatpush.bf16.msrb.mxu0 %v4563_v1  ;;  %v5976_v41 = vld [vmem:[#allocation2 + $0x7dc] sm:$0xf] }
 0x4c6   :  { %v4910_v9 = vld [vmem:[#allocation2 + $0x618] sm:$0xf]  ;;  %v5519_v19 = vor.u32 %v6076_v15, %v5518_v7  ;;  %3866 = vmatpush.bf16.msrb.mxu1 %v5263_v17  ;;  %v5136_v6 = vld [vmem:[#allocation2 + $0x7f8] sm:$0xf0]  ;;  %v4467_v17 = vor.u32 %v5808_v57, %v4464_v38 }
 0x4c7   :  { %v5924_v10 = vld [vmem:[#allocation2 + $0x634] sm:$0xf0]  ;;  %v5760_v7 = vld [vmem:[#allocation2 + $0x11c] sm:$0xf]  ;;  %v5139_v1 = vor.u32 %v5976_v41, %v5136_v6 }
 0x4c8   :  { %v5230_v14 = vld [vmem:[#allocation2 + $0x898] sm:$0xf]  ;;  %v4911_v25 = vor.u32 %v5924_v10, %v4910_v9  ;;  %3879 = vmatpush.bf16.msra.mxu3 %v5519_v19  ;;  %v4272_v15 = vld [vmem:[#allocation2 + $0x138] sm:$0xf0] }
 0x4c9   :  { %v6004_v16 = vld [vmem:[#allocation2 + $0x8b4] sm:$0xf0]  ;;  %3917 = vmatpush.bf16.msrb.mxu0 %v4531_v36  ;;  %v5904_v10 = vld [vmem:[#allocation2 + $0x59c] sm:$0xf]  ;;  %v4243_v36 = vor.u32 %v5752_v20, %v4240_v21 }
 0x4ca   :  { %v5486_v27 = vld [vmem:[#allocation2 + $0xa98] sm:$0xf]  ;;  %v5231_v31 = vor.u32 %v6004_v16, %v5230_v14  ;;  %3856 = vmatpush.bf16.msra.mxu2 %v4911_v25  ;;  %v4432_v14 = vld [vmem:[#allocation2 + $0x278] sm:$0xf0]  ;;  %v4275_v16 = vor.u32 %v5760_v7, %v4272_v15  ;;  %v4851_v23 = vor.u32 %v5904_v10, %v4848_v55  ;;  %v3626_v25 = vpop.f32.mrf.mxu1  ;;  %v1248_v15 = vperm.slane %v6737_v22, 4 }
 0x4cb   :  { %v6068_v28 = vld [vmem:[#allocation2 + $0xab4] sm:$0xf0]  ;;  %v5104_v19 = vld [vmem:[#allocation2 + $0x7b8] sm:$0xf0] }
 0x4cc   :  { %v5198_v33 = vld [vmem:[#allocation2 + $0x858] sm:$0xf]  ;;  %v5487_v39 = vor.u32 %v6068_v28, %v5486_v27  ;;  %3867 = vmatpush.bf16.msrb.mxu1 %v5231_v31  ;;  %v5896_v27 = vld [vmem:[#allocation2 + $0x55c] sm:$0xf]  ;;  %v5107_v31 = vor.u32 %v5968_v18, %v5104_v19 }
 0x4cd   :  { %v5996_v34 = vld [vmem:[#allocation2 + $0x874] sm:$0xf0]  ;;  %3857 = vmatmul.bf16.vlgmr.msra.gmra.mxu2 %v6644_v12  ;;  %3918 = vmatpush.bf16.msrb.mxu0 %v4499_v53  ;;  %v4816_v28 = vld [vmem:[#allocation2 + $0x578] sm:$0xf0] }
 0x4ce   :  { %v5454_v26 = vld [vmem:[#allocation2 + $0xa58] sm:$0xf]  ;;  %3901 = vmatpush.bf16.msrb.mxu2 %v4371_v24  ;;  %v5199_v46 = vor.u32 %v5996_v34, %v5198_v33  ;;  %3880 = vmatpush.bf16.msra.mxu3 %v5487_v39  ;;  %v4435_v24 = vor.u32 %v5800_v13, %v4432_v14  ;;  %v4400_v33 = vld [vmem:[#allocation2 + $0x238] sm:$0xf0]  ;;  %v3598_v34 = vpop.f32.mrf.mxu2 }
 0x4cf   :  { %v6060_v44 = vld [vmem:[#allocation2 + $0xa74] sm:$0xf0]  ;;  %v6104_v39 = vld [vmem:[#allocation2 + $0xbdc] sm:$0xf]  ;;  %v3599_v40 = vadd.f32 %v3598_v34, %v6746_v29  ;;  %v4403_v48 = vor.u32 %v5792_v32, %v4400_v33 }
 0x4d0   :  { %v5166_v50 = vld [vmem:[#allocation2 + $0x818] sm:$0xf]  ;;  %v5455_v54 = vor.u32 %v6060_v44, %v5454_v26  ;;  %3868 = vmatpush.bf16.msrb.mxu1 %v5199_v46  ;;  %v5648_v43 = vld [vmem:[#allocation2 + $0xbf8] sm:$0xf0] }
 0x4d1   :  { %v5988_v49 = vld [vmem:[#allocation2 + $0x834] sm:$0xf0]  ;;  %3919 = vmatpush.bf16.msrb.mxu0 %v4467_v17  ;;  %v5744_v26 = vld [vmem:[#allocation2 + $0x9c] sm:$0xf]  ;;  %v5651_v52 = vor.u32 %v6104_v39, %v5648_v43 }
 0x4d2   :  { %v5422_v60 = vld [vmem:[#allocation2 + $0xa18] sm:$0xf]  ;;  %3902 = vmatpush.bf16.msrb.mxu2 %v4339_v45  ;;  %v5167_v0 = vor.u32 %v5988_v49, %v5166_v50  ;;  %3881 = vmatpush.bf16.msra.mxu3 %v5455_v54  ;;  %v4208_v44 = vld [vmem:[#allocation2 + $0xb8] sm:$0xf0]  ;;  %v4819_v45 = vor.u32 %v5896_v27, %v4816_v28  ;;  %v3612_v50 = vadd.f32 %v6744_v3, %v3599_v40  ;;  %v3650_v17 = vpop.f32.mrf.mxu1  ;;  %v3637_v27 = vpop.f32.mrf.mxu3 }
 0x4d3   :  { %v6052_v61 = vld [vmem:[#allocation2 + $0xa34] sm:$0xf0]  ;;  %v5888_v46 = vld [vmem:[#allocation2 + $0x51c] sm:$0xf]  ;;  %v5075_v49 = vor.u32 %v5960_v11, %v5072_v37  ;;  %v4211_v54 = vor.u32 %v5744_v26, %v4208_v44  ;;  %v3638_v32 = vadd.f32 %v3637_v27, %v1248_v15 }
 0x4d4   :  { %v5423_v9 = vor.u32 %v6052_v61, %v5422_v60  ;;  %3869 = vmatpush.bf16.msrb.mxu1 %v5167_v0  ;;  %v5952_v53 = vld [vmem:[#allocation2 + $0x71c] sm:$0xf]  ;;  %v3625_v38 = vadd.f32 %v6748_v51, %v3612_v50 }
 0x4d5   :  { %3920 = vmatpush.bf16.msrb.mxu0 %v4435_v24  ;;  %v5040_v56 = vld [vmem:[#allocation2 + $0x738] sm:$0xf0]  ;;  %v6767_v26 = vadd.f32 %v3650_v17, %v3638_v32 }
 0x4d6   :  { %3903 = vmatpush.bf16.msrb.mxu2 %v4307_v62  ;;  %3882 = vmatpush.bf16.msra.mxu3 %v5423_v9  ;;  %v6096_v29 = vld [vmem:[#allocation2 + $0xb9c] sm:$0xf]  ;;  %v4787_v62 = vor.u32 %v5888_v46, %v4784_v47  ;;  %v3995_v41 = vmax.f32 %v3625_v38, 0.0  ;;  %v5043_v6 = vor.u32 %v5952_v53, %v5040_v56  ;;  %v3600_v9 = vpop.f32.mrf.mxu2 }
 0x4d7   :  { %3870 = vmatmul.bf16.vlgmr.msrb.gmra.mxu1 %v6640_v4  ;;  %v5616_v57 = vld [vmem:[#allocation2 + $0xbb8] sm:$0xf0] }
 0x4d8   :  { %3927 = vmatpush.bf16.msra.mxu1 %v4883_v8  ;;  %v5736_v60 = vld [vmem:[#allocation2 + $0x5c] sm:$0xf]  ;;  %v5619_v7 = vor.u32 %v6096_v29, %v5616_v57  ;;  %v4021_v13 = vmul.f32 %v4005_v59, %v3995_v41 }
 0x4d9   :  { %3883 = vmatmul.bf16.vlgmr.msra.gmra.mxu3 %v6642_v5  ;;  %v4176_v61 = vld [vmem:[#allocation2 + $0x78] sm:$0xf0]  ;;  %3921 = vmatpush.bf16.msrb.mxu0 %v4403_v48 }
 0x4da   :  { %3940 = vmatpush.bf16.msrb.mxu3 %v5139_v1  ;;  %3904 = vmatpush.bf16.msrb.mxu2 %v4275_v16  ;;  %v5880_v0 = vld [vmem:[#allocation2 + $0x4dc] sm:$0xf]  ;;  %v4179_v51 = vor.u32 %v5736_v60, %v4176_v61  ;;  %v6760_v1 = vpop.f32.mrf.mxu0  ;;  %v4031_v25 = vsel %vm6821_vm2, %v4021_v13, 0.0  ;;  %v3652_v46 = vpop.f32.mrf.mxu1 }
 0x4db   :  { %v4752_v3 = vld [vmem:[#allocation2 + $0x4f8] sm:$0xf0]  ;;  %v3639_v60 = vpop.f32.mrf.mxu3 }
 0x4dc   :  { %3928 = vmatpush.bf16.msra.mxu1 %v4851_v23  ;;  %v5944_v8 = vld [vmem:[#allocation2 + $0x6dc] sm:$0xf]  ;;  %v4755_v19 = vor.u32 %v5880_v0, %v4752_v3  ;;  %3922 = vmatmul.bf16.vlgmr.msrb.gmra.mxu0 %v6633_v35 }
 0x4dd   :  { %3966 = vmatpush.bf16.msra.mxu0 %v5651_v52  ;;  %v5008_v2 = vld [vmem:[#allocation2 + $0x6f8] sm:$0xf0] }
 0x4de   :  { %3941 = vmatpush.bf16.msrb.mxu3 %v5107_v31  ;;  %3905 = vmatpush.bf16.msrb.mxu2 %v4243_v36  ;;  %v6088_v10 = vld [vmem:[#allocation2 + $0xb5c] sm:$0xf]  ;;  %v5011_v28 = vor.u32 %v5944_v8, %v5008_v2  ;;  %v6765_v31 = vadd.f32 %v4031_v25, %v6735_v58  ;;  %v3663_v25 = vpop.f32.mrf.mxu2 }
 0x4df   :  { %v5584_v55 = vld [vmem:[#allocation2 + $0xb78] sm:$0xf0] }
 0x4e0   :  { %3929 = vmatpush.bf16.msra.mxu1 %v4819_v45  ;;  %v5728_v14 = vld [vmem:[#allocation2 + $0x1c] sm:$0xf]  ;;  %v5587_v24 = vor.u32 %v6088_v10, %v5584_v55 }
 0x4e1   :  { %v4144_v16 = vld [vmem:[#allocation2 + $0x38] sm:$0xf0]  ;;  %3967 = vmatpush.bf16.msra.mxu0 %v5619_v7 }
 0x4e2   :  { %3942 = vmatpush.bf16.msrb.mxu3 %v5075_v49  ;;  %3906 = vmatpush.bf16.msrb.mxu2 %v4211_v54  ;;  %v6040_v18 = vld [vmem:[#allocation2 + $0x9dc] sm:$0xf]  ;;  %v4147_v11 = vor.u32 %v5728_v14, %v4144_v16  ;;  %v3678_v49 = vpop.f32.mrf.mxu0 }
 0x4e3   :  { %v5392_v20 = vld [vmem:[#allocation2 + $0x9f8] sm:$0xf0]  ;;  %v6777_v49 = vld [vmem:[#allocation11] sm:$0xff] }
 0x4e4   :  { %3930 = vmatpush.bf16.msra.mxu1 %v4787_v62  ;;  %v5872_v21 = vld [vmem:[#allocation2 + $0x49c] sm:$0xf]  ;;  %v5395_v36 = vor.u32 %v6040_v18, %v5392_v20 }
 0x4e5   :  { %v4720_v23 = vld [vmem:[#allocation2 + $0x4b8] sm:$0xf0]  ;;  %3968 = vmatpush.bf16.msra.mxu0 %v5587_v24 }
 0x4e6   :  { %3943 = vmatpush.bf16.msrb.mxu3 %v5043_v6  ;;  %3907 = vmatpush.bf16.msrb.mxu2 %v4179_v51  ;;  %v5936_v33 = vld [vmem:[#allocation2 + $0x69c] sm:$0xf]  ;;  %v4723_v37 = vor.u32 %v5872_v21, %v4720_v23 }
 0x4e7   :  { %v4976_v34 = vld [vmem:[#allocation2 + $0x6b8] sm:$0xf0] }
 0x4e8   :  { %3931 = vmatpush.bf16.msra.mxu1 %v4755_v19  ;;  %v6032_v35 = vld [vmem:[#allocation2 + $0x99c] sm:$0xf]  ;;  %v4979_v58 = vor.u32 %v5936_v33, %v4976_v34 }
 0x4e9   :  { %v6080_v39 = vld [vmem:[#allocation2 + $0xb1c] sm:$0xf] }
 0x4ea   :  { %v5552_v43 = vld [vmem:[#allocation2 + $0xb38] sm:$0xf0]  ;;  %3944 = vmatpush.bf16.msrb.mxu3 %v5011_v28  ;;  %3908 = vmatpush.bf16.msrb.mxu2 %v4147_v11  ;;  %v3664_v11 = vadd.f32 %v3663_v25, %v6767_v26 }
 0x4eb   :  { %v5360_v40 = vld [vmem:[#allocation2 + $0x9b8] sm:$0xf0]  ;;  %v5555_v47 = vor.u32 %v6080_v39, %v5552_v43  ;;  %v3702_v39 = vpop.f32.mrf.mxu1  ;;  %v3665_v43 = vpop.f32.mrf.mxu2 }
 0x4ec   :  { %v5864_v44 = vld [vmem:[#allocation2 + $0x45c] sm:$0xf]  ;;  %v5363_v52 = vor.u32 %v6032_v35, %v5360_v40  ;;  %3932 = vmatpush.bf16.msra.mxu1 %v4723_v37  ;;  %v3677_v34 = vadd.f32 %v6760_v1, %v3664_v11 }
 0x4ed   :  { %v4688_v45 = vld [vmem:[#allocation2 + $0x478] sm:$0xf0]  ;;  %3909 = vmatmul.bf16.vlgmr.msrb.gmra.mxu2 %v6635_v42  ;;  %3969 = vmatpush.bf16.msra.mxu0 %v5555_v47 }
 0x4ee   :  { %v5928_v48 = vld [vmem:[#allocation2 + $0x65c] sm:$0xf]  ;;  %3953 = vmatpush.bf16.msra.mxu2 %v5395_v36  ;;  %v4691_v54 = vor.u32 %v5864_v44, %v4688_v45  ;;  %3945 = vmatpush.bf16.msrb.mxu3 %v4979_v58  ;;  %v3728_v45 = vpop.f32.mrf.mxu0 }
 0x4ef   :  { %v4944_v50 = vld [vmem:[#allocation2 + $0x678] sm:$0xf0] }
 0x4f0   :  { %v6024_v53 = vld [vmem:[#allocation2 + $0x95c] sm:$0xf]  ;;  %v4947_v61 = vor.u32 %v5928_v48, %v4944_v50  ;;  %3933 = vmatpush.bf16.msra.mxu1 %v4691_v54 }
 0x4f1   :  { %v6072_v56 = vld [vmem:[#allocation2 + $0xadc] sm:$0xf] }
 0x4f2   :  { %v5520_v29 = vld [vmem:[#allocation2 + $0xaf8] sm:$0xf0]  ;;  %3954 = vmatpush.bf16.msra.mxu2 %v5363_v52  ;;  %3946 = vmatpush.bf16.msrb.mxu3 %v4947_v61  ;;  %v4006_v52 = vperm.slane %v6777_v49, 4 }
 0x4f3   :  { %v5328_v57 = vld [vmem:[#allocation2 + $0x978] sm:$0xf0]  ;;  %v5523_v3 = vor.u32 %v6072_v56, %v5520_v29  ;;  %v3704_v47 = vpop.f32.mrf.mxu1  ;;  %v3715_v48 = vpop.f32.mrf.mxu2 }
 0x4f4   :  { %v5856_v38 = vld [vmem:[#allocation2 + $0x41c] sm:$0xf]  ;;  %v5331_v7 = vor.u32 %v6024_v53, %v5328_v57 }
 0x4f5   :  { %v4656_v59 = vld [vmem:[#allocation2 + $0x438] sm:$0xf0]  ;;  %3970 = vmatpush.bf16.msra.mxu0 %v5523_v3 }
 0x4f6   :  { %v6120_v62 = vld [vmem:[#allocation2 + $0xc5c] sm:$0xf]  ;;  %v4659_v15 = vor.u32 %v5856_v38, %v4656_v59  ;;  %3955 = vmatpush.bf16.msra.mxu2 %v5331_v7  ;;  %v3730_v53 = vpop.f32.mrf.mxu0 }
 0x4f7   :  { %v5712_v0 = vld [vmem:[#allocation2 + $0xc78] sm:$0xf0] }
 0x4f8   :  { %v5920_v41 = vld [vmem:[#allocation2 + $0x61c] sm:$0xf]  ;;  %v5715_v2 = vor.u32 %v6120_v62, %v5712_v0  ;;  %3934 = vmatpush.bf16.msra.mxu1 %v4659_v15 }
 0x4f9   :  { %v4912_v6 = vld [vmem:[#allocation2 + $0x638] sm:$0xf0] }
 0x4fa   :  { %v6064_v8 = vld [vmem:[#allocation2 + $0xa9c] sm:$0xf]  ;;  %v4915_v42 = vor.u32 %v5920_v41, %v4912_v6 }
 0x4fb   :  { %v5488_v17 = vld [vmem:[#allocation2 + $0xab8] sm:$0xf0]  ;;  %3935 = vmatmul.bf16.vlgmr.msra.gmra.mxu1 %v6631_v30  ;;  %v3717_v38 = vpop.f32.mrf.mxu2 }
 0x4fc   :  { %v6016_v51 = vld [vmem:[#allocation2 + $0x91c] sm:$0xf]  ;;  %v5491_v13 = vor.u32 %v6064_v8, %v5488_v17  ;;  %3985 = vmatpush.bf16.msrb.mxu1 %v5715_v2  ;;  %3947 = vmatpush.bf16.msrb.mxu3 %v4915_v42 }
 0x4fd   :  { %v5296_v9 = vld [vmem:[#allocation2 + $0x938] sm:$0xf0] }
 0x4fe   :  { %v6112_v10 = vld [vmem:[#allocation2 + $0xc1c] sm:$0xf]  ;;  %v5299_v14 = vor.u32 %v6016_v51, %v5296_v9  ;;  %3971 = vmatpush.bf16.msra.mxu0 %v5491_v13 }
 0x4ff   :  { %v5680_v55 = vld [vmem:[#allocation2 + $0xc38] sm:$0xf0]  ;;  %3948 = vmatmul.bf16.vlgmr.msrb.gmra.mxu3 %v6644_v12  ;;  %v3689_v12 = vpop.f32.mrf.mxu3 }
 0x500   :  { %v6056_v16 = vld [vmem:[#allocation2 + $0xa5c] sm:$0xf]  ;;  %v5683_v21 = vor.u32 %v6112_v10, %v5680_v55  ;;  %3956 = vmatpush.bf16.msra.mxu2 %v5299_v14  ;;  %v3690_v58 = vadd.f32 %v3689_v12, %v3677_v34  ;;  %v4007_v10 = vperm.slane %v6777_v49, 5  ;;  %v1250_v55 = vperm.slane %v6737_v22, 6 }
 0x501   :  { %v5456_v18 = vld [vmem:[#allocation2 + $0xa78] sm:$0xf0]  ;;  %v4008_v12 = vperm.slane %v6777_v49, 6 }
 0x502   :  { %v6008_v19 = vld [vmem:[#allocation2 + $0x8dc] sm:$0xf]  ;;  %v5459_v23 = vor.u32 %v6056_v16, %v5456_v18  ;;  %3986 = vmatpush.bf16.msrb.mxu1 %v5683_v21  ;;  %v3703_v46 = vadd.f32 %v3702_v39, %v3690_v58 }
 0x503   :  { %v5264_v20 = vld [vmem:[#allocation2 + $0x8f8] sm:$0xf0]  ;;  %v3741_v60 = vpop.f32.mrf.mxu2 }
 0x504   :  { %v5267_v27 = vor.u32 %v6008_v19, %v5264_v20  ;;  %v6048_v28 = vld [vmem:[#allocation2 + $0xa1c] sm:$0xf]  ;;  %3972 = vmatpush.bf16.msra.mxu0 %v5459_v23  ;;  %v3716_v50 = vadd.f32 %v3715_v48, %v3703_v46 }
 0x505   :  { %v5424_v24 = vld [vmem:[#allocation2 + $0xa38] sm:$0xf0] }
 0x506   :  { %v6000_v32 = vld [vmem:[#allocation2 + $0x89c] sm:$0xf]  ;;  %v5427_v36 = vor.u32 %v6048_v28, %v5424_v24  ;;  %3957 = vmatpush.bf16.msra.mxu2 %v5267_v27  ;;  %v3996_v54 = vmax.f32 %v3716_v50, 0.0 }
 0x507   :  { %v5232_v33 = vld [vmem:[#allocation2 + $0x8b8] sm:$0xf0] }
 0x508   :  { %v5235_v30 = vor.u32 %v6000_v32, %v5232_v33  ;;  %v5992_v35 = vld [vmem:[#allocation2 + $0x85c] sm:$0xf]  ;;  %3973 = vmatpush.bf16.msra.mxu0 %v5427_v36  ;;  %v4022_v56 = vmul.f32 %v4006_v52, %v3996_v54 }
 0x509   :  { %v5200_v37 = vld [vmem:[#allocation2 + $0x878] sm:$0xf0] }
 0x50a   :  { %3958 = vmatpush.bf16.msra.mxu2 %v5235_v30  ;;  %v5203_v40 = vor.u32 %v5992_v35, %v5200_v37  ;;  %v5984_v44 = vld [vmem:[#allocation2 + $0x81c] sm:$0xf]  ;;  %v4033_v29 = vsel %vm6822_vm6, %v4022_v56, 0.0 }
 0x50b   :  { %v5168_v26 = vld [vmem:[#allocation2 + $0x838] sm:$0xf0]  ;;  %3974 = vmatmul.bf16.vlgmr.msra.gmra.mxu0 %v6642_v5  ;;  %5723 = vmatmul.msk.bf16.vlgmr.msrb.gmra.mxu1 %vm3260_vm7, %v6650_v63  ;;  %v3691_v5 = vpop.f32.mrf.mxu3  ;;  %v4034_v57 = vadd.f32 %v4033_v29, %v6765_v31  ;;  %v1249_v63 = vperm.slane %v6737_v22, 5  ;;  %v3743_v6 = vpop.f32.mrf.mxu2  ;;  %v1251_v29 = vperm.slane %v6737_v22, 7 }
 0x50c   :  { %v5171_v1 = vor.u32 %v5984_v44, %v5168_v26  ;;  %v3767_v62 = vpop.f32.mrf.mxu1 }
 0x50d   :  { %v3729_v59 = vadd.f32 %v3728_v45, %v1249_v63 }
 0x50e   :  { %3959 = vmatpush.bf16.msra.mxu2 %v5203_v40 }
 0x50f   :  { %v3742_v61 = vadd.f32 %v3741_v60, %v3729_v59 }
 0x510   :  { %v3780_v0 = vpop.f32.mrf.mxu0 }
 0x512   :  { %3960 = vmatpush.bf16.msra.mxu2 %v5171_v1 }
 0x513   :  { %v3754_v3 = vpop.f32.mrf.mxu3 }
 0x514   :  { %v3755_v41 = vadd.f32 %v3754_v3, %v3742_v61 }
 0x515   :  { %3961 = vmatmul.bf16.vlgmr.msra.gmra.mxu2 %v6640_v4  ;;  %v3769_v4 = vpop.f32.mrf.mxu1 }
 0x516   :  { %v3768_v7 = vadd.f32 %v3767_v62, %v3755_v41  ;;  %v4009_v4 = vperm.slane %v6777_v49, 7 }
 0x518   :  { %v3781_v15 = vadd.f32 %v3780_v0, %v3768_v7  ;;  %v3782_v8 = vpop.f32.mrf.mxu0 }
 0x51b   :  { %v3756_v17 = vpop.f32.mrf.mxu3 }
 0x523   :  { %v3806_v51 = vpop.f32.mrf.mxu3 }
 0x528   :  { %v3793_v9 = vpop.f32.mrf.mxu2 }
 0x529   :  { %v3794_v2 = vadd.f32 %v3793_v9, %v3781_v15 }
 0x52b   :  { %v3808_v31 = vpop.f32.mrf.mxu3  ;;  %v3807_v42 = vadd.f32 %v3806_v51, %v3794_v2  ;;  %v6157_v2 = vld [vmem:[#allocation5] ss:$0 sm:$0xff] }
 0x52c   :  { %v3819_v14 = vpop.f32.mrf.mxu1 }
 0x52d   :  { %v3997_v13 = vmax.f32 %v3807_v42, 0.0  ;;  %v3820_v19 = vadd.f32 %v3819_v14, %v1250_v55 }
 0x52f   :  { %v4023_v18 = vmul.f32 %v4007_v10, %v3997_v13 }
 0x530   :  { %v3845_v16 = vpop.f32.mrf.mxu0  ;;  %v3795_v20 = vpop.f32.mrf.mxu2 }
 0x531   :  { %v4035_v21 = vsel %vm6823_vm3, %v4023_v18, 0.0 }
 0x532   :  { %v4036_v23 = vadd.f32 %v4035_v21, %v4034_v57 }
 0x534   :  { %v3832_v25 = vpop.f32.mrf.mxu3  ;;  %v3821_v28 = vpop.f32.mrf.mxu1 }
 0x535   :  { %v3833_v27 = vadd.f32 %v3832_v25, %v3820_v19 }
 0x537   :  { %v3846_v11 = vadd.f32 %v3845_v16, %v3833_v27 }
 0x538   :  { %v3847_v24 = vpop.f32.mrf.mxu0 }
 0x53c   :  { %v3834_v32 = vpop.f32.mrf.mxu3 }
 0x540   :  { %v3897_v33 = vpop.f32.mrf.mxu0 }
 0x548   :  { %v3899_v30 = vpop.f32.mrf.mxu0 }
 0x550   :  { %v3858_v34 = vpop.f32.mrf.mxu2 }
 0x551   :  { %v3859_v35 = vadd.f32 %v3858_v34, %v3846_v11 }
 0x554   :  { %v3871_v36 = vpop.f32.mrf.mxu1 }
 0x555   :  { %v3872_v39 = vadd.f32 %v3871_v36, %v3859_v35 }
 0x558   :  { %v3860_v37 = vpop.f32.mrf.mxu2 }
 0x559   :  { %v3923_v26 = vpop.f32.mrf.mxu0 }
 0x55c   :  { %v3884_v43 = vpop.f32.mrf.mxu3  ;;  %v3873_v40 = vpop.f32.mrf.mxu1 }
 0x55d   :  { %v3885_v44 = vadd.f32 %v3884_v43, %v3872_v39 }
 0x55f   :  { %v3898_v45 = vadd.f32 %v3897_v33, %v3885_v44 }
 0x561   :  { %v3998_v58 = vmax.f32 %v3898_v45, 0.0  ;;  %v3925_v48 = vpop.f32.mrf.mxu0 }
 0x563   :  { %v4024_v1 = vmul.f32 %v4008_v12, %v3998_v58 }
 0x564   :  { %v3886_v46 = vpop.f32.mrf.mxu3 }
 0x565   :  { %v4037_v47 = vsel %vm6824_vm5, %v4024_v1, 0.0 }
 0x566   :  { %v4038_v50 = vadd.f32 %v4037_v47, %v4036_v23 }
 0x570   :  { %v3910_v52 = vpop.f32.mrf.mxu2 }
 0x571   :  { %v3911_v38 = vadd.f32 %v3910_v52, %v1251_v29 }
 0x573   :  { %v3924_v60 = vadd.f32 %v3923_v26, %v3911_v38 }
 0x578   :  { %v3936_v53 = vpop.f32.mrf.mxu1  ;;  %v3912_v54 = vpop.f32.mrf.mxu2 }
 0x579   :  { %v3937_v62 = vadd.f32 %v3936_v53, %v3924_v60 }
 0x580   :  { %v3938_v5 = vpop.f32.mrf.mxu1 }
 0x582   :  { %v3949_v56 = vpop.f32.mrf.mxu3 }
 0x583   :  { %v3950_v3 = vadd.f32 %v3949_v56, %v3937_v62 }
 0x588   :  { %v3975_v57 = vpop.f32.mrf.mxu0  ;;  %v3988_v63 = vpop.f32.mrf.mxu1 }
 0x58a   :  { %v3951_v59 = vpop.f32.mrf.mxu3 }
 0x590   :  { %v3977_v61 = vpop.f32.mrf.mxu0  ;;  %v3990_v0 = vpop.f32.mrf.mxu1 }
 0x598   :  { %v3962_v41 = vpop.f32.mrf.mxu2 }
 0x599   :  { %v3963_v6 = vadd.f32 %v3962_v41, %v3950_v3 }
 0x59b   :  { %v3976_v7 = vadd.f32 %v3975_v57, %v3963_v6 }
 0x59d   :  { %v3989_v15 = vadd.f32 %v3988_v63, %v3976_v7 }
 0x59f   :  { %v3999_v8 = vmax.f32 %v3989_v15, 0.0 }
 0x5a0   :  { %v3964_v17 = vpop.f32.mrf.mxu2 }
 0x5a1   :  { %v4025_v51 = vmul.f32 %v4009_v4, %v3999_v8 }
 0x5a3   :  { %v4039_v22 = vsel %vm6825_vm8, %v4025_v51, 0.0 }
 0x5a4   :  { %v4040_v9 = vadd.f32 %v4039_v22, %v4038_v50 }
 0x5a6   :  { %4041 = vadd.xlane.f32.xlu0 %v4040_v9 }
 0x619   :  { %v4042_v31 = vpop.xlane.xlu0 %4041 }
 0x61a   :  { %v4047_v42 = vadd.f32 %v6157_v2, %v4042_v31 }
 0x61c   :  { %4049 = vst.msk [vmem:[%s6802_s7] sm:$0x3] %vm4048_vm11, %v4047_v42 }
 0x61d   :  { %4054 = vsyncpa [#allocation7], 1 }
 0x61e   :  { %4055 = vsyncpa [#allocation9], 1 }
 0x61f   :  { %4056 = vsyncpa [#allocation12], 1 }
 0x620   :  { %4057 = vsyncmov [#allocation4] }
 0x623   :  { %s4058_s16 = vpop.sfrf %4057 }
 0x624   :  { %p5724_p0 = scmp.ne.s32.totalorder %s4058_s16, 0 }
 0x626   :  { %4062 = shalt.err (%p5724_p0)  }

</bundles_post_ra>
